<compile_context>
chip_gen: v7x
topology: tpu7x:2x2x1
jax: 0.10.0
libtpu: 0.0.40
codegen_flags: <defaults>
</compile_context>

<pallas_src>
import numpy as np
import jax
import jax.numpy as jnp
from jax.experimental import pallas as pl
from jax.experimental.pallas import tpu as pltpu


# (name, Cin, Cout, resolution it runs at, apply ReLU)
_LAYERS = (
    ("in0",   4, 8, 16, True),
    ("in1",   8, 8, 16, True),
    ("down0", 8, 8,  8, True),
    ("down1", 8, 8,  8, True),
    ("bot0",  8, 8,  4, True),
    ("bot1",  8, 8,  4, True),
    ("up0",  16, 8,  8, True),
    ("up1",   8, 8,  8, True),
    ("out0", 16, 8, 16, True),
    ("out1",  8, 4, 16, False),
)
_CMAX = 8        # max Cout (packed weight rows are padded to this)
_CIN_MAX = 16    # max (concatenated) Cin
_H = _W = 16


def _pdims(r):
    """Per-image padded spatial length and padded row pitch at resolution r."""
    wp = r + 2
    return (r + 2) * wp, wp


# ----------------------------------------------------------------------------
# Trace-time constants (numpy) for the padded, batch-folded layout
# ----------------------------------------------------------------------------
def _interior_mask(r, nb):
    lp, wp = _pdims(r)
    m = np.zeros((1, nb * lp), np.float32)
    for n in range(nb):
        for y in range(r):
            for x in range(r):
                m[0, n * lp + (y + 1) * wp + (x + 1)] = 1.0
    return m


def _pool_select(r, nb):
    """0/1 matrix compacting shifted-max values to the half-res padded layout."""
    lp_i, wp_i = _pdims(r)
    lp_o, wp_o = _pdims(r // 2)
    sel = np.zeros((nb * lp_i - wp_i - 1, nb * lp_o), np.float32)
    for n in range(nb):
        for yo in range(r // 2):
            for xo in range(r // 2):
                src = n * lp_i + (2 * yo + 1) * wp_i + (2 * xo + 1)
                dst = n * lp_o + (yo + 1) * wp_o + (xo + 1)
                sel[src, dst] = 1.0
    return sel


def _upsample_mat(r, nb):
    """0/1 matrix for 2x nearest upsampling in the padded layout."""
    lp_i, wp_i = _pdims(r)
    lp_o, wp_o = _pdims(2 * r)
    up = np.zeros((nb * lp_i, nb * lp_o), np.float32)
    for n in range(nb):
        for yo in range(2 * r):
            for xo in range(2 * r):
                src = n * lp_i + (yo // 2 + 1) * wp_i + (xo // 2 + 1)
                dst = n * lp_o + (yo + 1) * wp_o + (xo + 1)
                up[src, dst] = 1.0
    return up


def _pack_params(params):
    """All conv weights + biases -> one (8, n_weight_cols + n_layers) array."""
    wcols, woffs, off = [], {}, 0
    for name, cin, cout, _, _ in _LAYERS:
        w, _ = params[name]                                   # (3,3,Cin,Cout) HWIO
        wk = jnp.transpose(w, (3, 0, 1, 2)).reshape(cout, 9 * cin)
        if cout < _CMAX:
            wk = jnp.concatenate(
                [wk, jnp.zeros((_CMAX - cout, 9 * cin), wk.dtype)], axis=0)
        wcols.append(wk)
        woffs[name] = off
        off += 9 * cin
    bias_base = off
    bcols = []
    for name, _, cout, _, _ in _LAYERS:
        _, b = params[name]
        bcols.append(jnp.zeros((_CMAX, 1), jnp.float32).at[0:cout, 0].set(b))
    wb = jnp.concatenate(wcols + bcols, axis=1).astype(jnp.float32)
    return wb, woffs, bias_base


def _choose_fold(n, max_fold):
    # Largest divisor of n that still leaves >= 2 grid steps, so a v7x megacore
    # can shard the grid over both TensorCores.  (v5e/v6e have 1 TC; larger
    # folds would also be fine there.)
    best = 1
    for nb in range(1, max_fold + 1):
        if n % nb == 0 and (n // nb >= 2 or n == 1):
            best = nb
    return best


# ----------------------------------------------------------------------------
# Host wrapper + fused kernel
# ----------------------------------------------------------------------------
def unet_forward(params, x_nchw, max_fold=4):
    n, c0, h, w = x_nchw.shape
    assert (c0, h, w) == (4, _H, _W)
    nb = _choose_fold(n, max_fold)
    g = n // nb

    lp16, wp16 = _pdims(16)
    lp8, wp8 = _pdims(8)
    lp4, wp4 = _pdims(4)
    l16, l8, l4 = nb * lp16, nb * lp8, nb * lp4
    guard = wp16 + 1                       # largest |tap shift| over all scales

    # resolution -> (folded length, padded row pitch, halo-mask lane offset)
    res_info = {16: (l16, wp16, 0), 8: (l8, wp8, l16), 4: (l4, wp4, l16 + l8)}

    wb, woffs, bias_base = _pack_params(params)
    layer_info = {name: (cin, cout, r, relu, woffs[name], bias_base + li)
                  for li, (name, cin, cout, r, relu) in enumerate(_LAYERS)}

    masks = jnp.concatenate(
        [jnp.asarray(_interior_mask(r, nb)) for r in (16, 8, 4)], axis=1)
    pool16 = jnp.asarray(_pool_select(16, nb))
    pool8 = jnp.asarray(_pool_select(8, nb))
    up4 = jnp.asarray(_upsample_mat(4, nb))
    up8 = jnp.asarray(_upsample_mat(8, nb))

    # Host-side layout prep: zero-pad every image to 18x18 (this IS the conv's
    # zero padding) and fold `nb` images onto the lane axis.
    xp = jnp.pad(x_nchw.astype(jnp.float32), ((0, 0), (0, 0), (1, 1), (1, 1)))
    xp = xp.reshape(g, nb, c0, _H + 2, _W + 2).transpose(0, 2, 1, 3, 4)
    xp = xp.reshape(g, c0, l16)

    def kernel(x_ref, wb_ref, mask_ref, p16_ref, p8_ref, u4_ref, u8_ref,
               o_ref, gbuf, cbuf, s0buf, s1buf):

        def conv(name, pieces):
            cin, cout, r, relu, woff, bcol = layer_info[name]
            length, wp, moff = res_info[r]
            # Stage the (channel-concatenated) input into the guarded scratch.
            # Only interior lanes are written; guard / stale lanes are never
            # zeroed because anything read from them can only reach per-image
            # halo output columns, which the select below forces back to 0.
            row = 0
            for piece in pieces:
                pc = piece.shape[0]
                gbuf[row:row + pc, guard:guard + length] = piece
                row += pc
            # im2col: 9 lane-shifted copies -> a single (9*Cin, L) block so the
            # whole conv is ONE MXU matmul instead of 9 tiny K<=16 matmuls.
            for ky in range(3):
                for kx in range(3):
                    t = (ky - 1) * wp + (kx - 1)
                    dst = (3 * ky + kx) * cin
                    cbuf[dst:dst + cin, 0:length] = (
                        gbuf[0:cin, guard + t:guard + t + length])
            k = 9 * cin
            y = jnp.dot(wb_ref[0:cout, woff:woff + k], cbuf[0:k, 0:length],
                        preferred_element_type=jnp.float32)
            y = y + wb_ref[0:cout, bcol:bcol + 1]
            if relu:
                y = jnp.maximum(y, 0.0)
            # Re-zero per-image halo lanes: keeps the zero-padding invariant for
            # the next layer and kills any junk picked up from guard lanes.
            halo = mask_ref[0:1, moff:moff + length] > 0.0
            return jnp.where(halo, y, 0.0)

        def maxpool(src_ref, r, sel):
            length, wp, _ = res_info[r]
            lm = length - wp - 1
            m = jnp.maximum(
                jnp.maximum(src_ref[0:_CMAX, 0:lm], src_ref[0:_CMAX, 1:1 + lm]),
                jnp.maximum(src_ref[0:_CMAX, wp:wp + lm],
                            src_ref[0:_CMAX, wp + 1:wp + 1 + lm]))
            # Compaction into the half-res padded layout on the MXU.
            return jnp.dot(m, sel, preferred_element_type=jnp.float32)

        x = x_ref[0]                                     # (4, l16), zero halos

        # ConvsDown[0] ('in') @ 16x16
        x = conv("in0", [x])
        x = conv("in1", [x])
        s0buf[...] = x                                   # park skip0 in VMEM

        # ConvsDown[1] ('down'): pool + convs @ 8x8
        x = maxpool(s0buf, 16, p16_ref[...])
        x = conv("down0", [x])
        x = conv("down1", [x])
        s1buf[...] = x                                   # park skip1 in VMEM

        # ConvBottom: pool + convs @ 4x4 + nearest upsample -> 8x8
        x = maxpool(s1buf, 8, p8_ref[...])
        x = conv("bot0", [x])
        x = conv("bot1", [x])
        x = jnp.dot(x, u4_ref[...], preferred_element_type=jnp.float32)

        # ConvsUp[0] ('up'): cat(x, skip1) + convs @ 8x8 + upsample -> 16x16
        x = conv("up0", [x, s1buf[...]])
        x = conv("up1", [x])
        x = jnp.dot(x, u8_ref[...], preferred_element_type=jnp.float32)

        # ConvsUp[1] ('out'): cat(x, skip0) + conv-relu + conv (no ReLU)
        x = conv("out0", [x, s0buf[...]])
        x = conv("out1", [x])

        o_ref[0] = x.astype(o_ref.dtype)                 # lane-dense (4, l16) store

    def _const_spec(a):
        return pl.BlockSpec(a.shape, lambda i: (0, 0))

    out = pl.pallas_call(
        kernel,
        out_shape=jax.ShapeDtypeStruct((g, 4, l16), jnp.float32),
        grid=(g,),
        in_specs=[pl.BlockSpec((1, c0, l16), lambda i: (i, 0, 0)),
                  _const_spec(wb), _const_spec(masks),
                  _const_spec(pool16), _const_spec(pool8),
                  _const_spec(up4), _const_spec(up8)],
        out_specs=pl.BlockSpec((1, 4, l16), lambda i: (i, 0, 0)),
        scratch_shapes=[
            pltpu.VMEM((_CIN_MAX, 2 * guard + l16), jnp.float32),  # guarded staging
            pltpu.VMEM((9 * _CIN_MAX, l16), jnp.float32),          # im2col block
            pltpu.VMEM((_CMAX, l16), jnp.float32),                 # skip0
            pltpu.VMEM((_CMAX, l8), jnp.float32),                  # skip1
        ],
        compiler_params=pltpu.CompilerParams(
            dimension_semantics=("parallel",)),
    )(xp, wb, masks, pool16, pool8, up4, up8)

    # Unfold the batch and strip the per-image halo.
    out = out.reshape(g, 4, nb, _H + 2, _W + 2).transpose(0, 2, 1, 3, 4)
    out = out.reshape(n, 4, _H + 2, _W + 2)[:, :, 1:_H + 1, 1:_W + 1]
    return out.astype(x_nchw.dtype)


# ----------------------------------------------------------------------------
# Parameter init (deterministic, matches nn.Conv2d default U(-1/sqrt(fan_in),.))
# ----------------------------------------------------------------------------
def init_conv(key, cin, cout):
    kw, kb = jax.random.split(key)
    bound = 1.0 / np.sqrt(cin * 9)
    w = jax.random.uniform(kw, (3, 3, cin, cout), jnp.float32, -bound, bound)
    b = jax.random.uniform(kb, (cout,), jnp.float32, -bound, bound)
    return w, b


def init_unet_params(key):
    keys = jax.random.split(key, len(_LAYERS))
    return {name: init_conv(k, cin, cout)
            for k, (name, cin, cout, _, _) in zip(keys, _LAYERS)}


# ----------------------------------------------------------------------------
# Pure-JAX reference (mirrors the PyTorch module) for the correctness check
# ----------------------------------------------------------------------------
def _conv_ref(x, w, b, relu):
    y = jax.lax.conv_general_dilated(
        x, w, window_strides=(1, 1), padding="SAME",
        dimension_numbers=("NCHW", "HWIO", "NCHW"),
        precision=jax.lax.Precision.HIGHEST)
    y = y + b[None, :, None, None]
    return jnp.maximum(y, 0.0) if relu else y


def _pool_ref(x):
    n, c, h, w = x.shape
    return x.reshape(n, c, h // 2, 2, w // 2, 2).max(axis=(3, 5))


def _up_ref(x):
    return jnp.repeat(jnp.repeat(x, 2, axis=2), 2, axis=3)


def unet_reference(params, x):
    p = params
    x = _conv_ref(x, *p["in0"], True)
    x = _conv_ref(x, *p["in1"], True)
    s0 = x
    x = _pool_ref(x)
    x = _conv_ref(x, *p["down0"], True)
    x = _conv_ref(x, *p["down1"], True)
    s1 = x
    x = _pool_ref(x)
    x = _conv_ref(x, *p["bot0"], True)
    x = _conv_ref(x, *p["bot1"], True)
    x = _up_ref(x)
    x = jnp.concatenate([x, s1], axis=1)
    x = _conv_ref(x, *p["up0"], True)
    x = _conv_ref(x, *p["up1"], True)
    x = _up_ref(x)
    x = jnp.concatenate([x, s0], axis=1)
    x = _conv_ref(x, *p["out0"], True)
    x = _conv_ref(x, *p["out1"], False)
    return x


# ----------------------------------------------------------------------------
if __name__ == "__main__":
    key = jax.random.PRNGKey(0)
    k_params, k_x = jax.random.split(key)

    params = init_unet_params(k_params)
    x = jax.random.normal(k_x, (2, 4, 16, 16), jnp.float32)     # NCHW like PyTorch

    fwd = jax.jit(unet_forward)
    out = jax.block_until_ready(fwd(params, x))

    assert out.shape == (2, 4, 16, 16), out.shape
    assert bool(jnp.all(jnp.isfinite(out)))

    ref = jax.block_until_ready(jax.jit(unet_reference)(params, x))
    max_err = float(jnp.max(jnp.abs(out - ref)))
    assert bool(jnp.allclose(out, ref, atol=1e-2, rtol=1e-2)), max_err

    print("KERNEL_OK")
</pallas_src>

<mosaic_0001>
module attributes {stable_mosaic.version = 11 : i64} {
  func.func @kernel(%arg0: i32, %arg1: memref<1x4x324xf32, #tpu.memory_space<vmem>>, %arg2: memref<8x838xf32, #tpu.memory_space<vmem>>, %arg3: memref<1x460xf32, #tpu.memory_space<vmem>>, %arg4: memref<305x100xf32, #tpu.memory_space<vmem>>, %arg5: memref<89x36xf32, #tpu.memory_space<vmem>>, %arg6: memref<36x100xf32, #tpu.memory_space<vmem>>, %arg7: memref<100x324xf32, #tpu.memory_space<vmem>>, %arg8: memref<1x4x324xf32, #tpu.memory_space<vmem>>, %arg9: memref<16x362xf32, #tpu.memory_space<vmem>>, %arg10: memref<144x324xf32, #tpu.memory_space<vmem>>, %arg11: memref<8x324xf32, #tpu.memory_space<vmem>>, %arg12: memref<8x100xf32, #tpu.memory_space<vmem>>) attributes {dimension_semantics = [#tpu.dimension_semantics<parallel>], iteration_bounds = array<i64: 2>, scalar_prefetch = 0 : i64, scratch_operands = 4 : i64, tpu.core_type = #tpu.core_type<tc>, window_params = [{transform_indices = @transform_0, window_bounds = array<i64: 1, 4, 324>}, {pipeline_mode = #tpu.pipeline_mode<synchronous>, transform_indices = @transform_1, window_bounds = array<i64: 8, 838>}, {pipeline_mode = #tpu.pipeline_mode<synchronous>, transform_indices = @transform_2, window_bounds = array<i64: 1, 460>}, {pipeline_mode = #tpu.pipeline_mode<synchronous>, transform_indices = @transform_3, window_bounds = array<i64: 305, 100>}, {pipeline_mode = #tpu.pipeline_mode<synchronous>, transform_indices = @transform_4, window_bounds = array<i64: 89, 36>}, {pipeline_mode = #tpu.pipeline_mode<synchronous>, transform_indices = @transform_5, window_bounds = array<i64: 36, 100>}, {pipeline_mode = #tpu.pipeline_mode<synchronous>, transform_indices = @transform_6, window_bounds = array<i64: 100, 324>}, {transform_indices = @transform_7, window_bounds = array<i64: 1, 4, 324>}]} {
    %c0 = arith.constant 0 : index
    %c0_0 = arith.constant 0 : index
    %c0_1 = arith.constant 0 : index
    %0 = vector.load %arg1[%c0, %c0_0, %c0_1] : memref<1x4x324xf32, #tpu.memory_space<vmem>>, vector<1x4x324xf32>
    %1 = vector.shape_cast %0 : vector<1x4x324xf32> to vector<4x324xf32>
    %c0_2 = arith.constant 0 : index
    %c19 = arith.constant 19 : index
    %2 = vector.load %arg9[%c0_2, %c19] : memref<16x362xf32, #tpu.memory_space<vmem>>, vector<4x324xf32>
    tpu.vector_store %arg9[%c0_2, %c19], %1 {strides = array<i32>} : memref<16x362xf32, #tpu.memory_space<vmem>>, vector<4x324xf32>,
    %c0_3 = arith.constant 0 : index
    %c0_4 = arith.constant 0 : index
    %3 = vector.load %arg9[%c0_3, %c0_4] : memref<16x362xf32, #tpu.memory_space<vmem>>, vector<4x324xf32>
    %c0_5 = arith.constant 0 : index
    %c0_6 = arith.constant 0 : index
    %4 = vector.load %arg10[%c0_5, %c0_6] : memref<144x324xf32, #tpu.memory_space<vmem>>, vector<4x324xf32>
    tpu.vector_store %arg10[%c0_5, %c0_6], %3 {strides = array<i32>} : memref<144x324xf32, #tpu.memory_space<vmem>>, vector<4x324xf32>,
    %c0_7 = arith.constant 0 : index
    %c1 = arith.constant 1 : index
    %5 = vector.load %arg9[%c0_7, %c1] : memref<16x362xf32, #tpu.memory_space<vmem>>, vector<4x324xf32>
    %c4 = arith.constant 4 : index
    %c0_8 = arith.constant 0 : index
    %6 = vector.load %arg10[%c4, %c0_8] : memref<144x324xf32, #tpu.memory_space<vmem>>, vector<4x324xf32>
    tpu.vector_store %arg10[%c4, %c0_8], %5 {strides = array<i32>} : memref<144x324xf32, #tpu.memory_space<vmem>>, vector<4x324xf32>,
    %c0_9 = arith.constant 0 : index
    %c2 = arith.constant 2 : index
    %7 = vector.load %arg9[%c0_9, %c2] : memref<16x362xf32, #tpu.memory_space<vmem>>, vector<4x324xf32>
    %c8 = arith.constant 8 : index
    %c0_10 = arith.constant 0 : index
    %8 = vector.load %arg10[%c8, %c0_10] : memref<144x324xf32, #tpu.memory_space<vmem>>, vector<4x324xf32>
    tpu.vector_store %arg10[%c8, %c0_10], %7 {strides = array<i32>} : memref<144x324xf32, #tpu.memory_space<vmem>>, vector<4x324xf32>,
    %c0_11 = arith.constant 0 : index
    %c18 = arith.constant 18 : index
    %9 = vector.load %arg9[%c0_11, %c18] : memref<16x362xf32, #tpu.memory_space<vmem>>, vector<4x324xf32>
    %c12 = arith.constant 12 : index
    %c0_12 = arith.constant 0 : index
    %10 = vector.load %arg10[%c12, %c0_12] : memref<144x324xf32, #tpu.memory_space<vmem>>, vector<4x324xf32>
    tpu.vector_store %arg10[%c12, %c0_12], %9 {strides = array<i32>} : memref<144x324xf32, #tpu.memory_space<vmem>>, vector<4x324xf32>,
    %c0_13 = arith.constant 0 : index
    %c19_14 = arith.constant 19 : index
    %11 = vector.load %arg9[%c0_13, %c19_14] : memref<16x362xf32, #tpu.memory_space<vmem>>, vector<4x324xf32>
    %c16 = arith.constant 16 : index
    %c0_15 = arith.constant 0 : index
    %12 = vector.load %arg10[%c16, %c0_15] : memref<144x324xf32, #tpu.memory_space<vmem>>, vector<4x324xf32>
    tpu.vector_store %arg10[%c16, %c0_15], %11 {strides = array<i32>} : memref<144x324xf32, #tpu.memory_space<vmem>>, vector<4x324xf32>,
    %c0_16 = arith.constant 0 : index
    %c20 = arith.constant 20 : index
    %13 = vector.load %arg9[%c0_16, %c20] : memref<16x362xf32, #tpu.memory_space<vmem>>, vector<4x324xf32>
    %c20_17 = arith.constant 20 : index
    %c0_18 = arith.constant 0 : index
    %14 = vector.load %arg10[%c20_17, %c0_18] : memref<144x324xf32, #tpu.memory_space<vmem>>, vector<4x324xf32>
    tpu.vector_store %arg10[%c20_17, %c0_18], %13 {strides = array<i32>} : memref<144x324xf32, #tpu.memory_space<vmem>>, vector<4x324xf32>,
    %c0_19 = arith.constant 0 : index
    %c36 = arith.constant 36 : index
    %15 = vector.load %arg9[%c0_19, %c36] : memref<16x362xf32, #tpu.memory_space<vmem>>, vector<4x324xf32>
    %c24 = arith.constant 24 : index
    %c0_20 = arith.constant 0 : index
    %16 = vector.load %arg10[%c24, %c0_20] : memref<144x324xf32, #tpu.memory_space<vmem>>, vector<4x324xf32>
    tpu.vector_store %arg10[%c24, %c0_20], %15 {strides = array<i32>} : memref<144x324xf32, #tpu.memory_space<vmem>>, vector<4x324xf32>,
    %c0_21 = arith.constant 0 : index
    %c37 = arith.constant 37 : index
    %17 = vector.load %arg9[%c0_21, %c37] : memref<16x362xf32, #tpu.memory_space<vmem>>, vector<4x324xf32>
    %c28 = arith.constant 28 : index
    %c0_22 = arith.constant 0 : index
    %18 = vector.load %arg10[%c28, %c0_22] : memref<144x324xf32, #tpu.memory_space<vmem>>, vector<4x324xf32>
    tpu.vector_store %arg10[%c28, %c0_22], %17 {strides = array<i32>} : memref<144x324xf32, #tpu.memory_space<vmem>>, vector<4x324xf32>,
    %c0_23 = arith.constant 0 : index
    %c38 = arith.constant 38 : index
    %19 = vector.load %arg9[%c0_23, %c38] : memref<16x362xf32, #tpu.memory_space<vmem>>, vector<4x324xf32>
    %c32 = arith.constant 32 : index
    %c0_24 = arith.constant 0 : index
    %20 = vector.load %arg10[%c32, %c0_24] : memref<144x324xf32, #tpu.memory_space<vmem>>, vector<4x324xf32>
    tpu.vector_store %arg10[%c32, %c0_24], %19 {strides = array<i32>} : memref<144x324xf32, #tpu.memory_space<vmem>>, vector<4x324xf32>,
    %c0_25 = arith.constant 0 : index
    %c0_26 = arith.constant 0 : index
    %21 = vector.load %arg2[%c0_25, %c0_26] : memref<8x838xf32, #tpu.memory_space<vmem>>, vector<8x36xf32>
    %c0_27 = arith.constant 0 : index
    %c0_28 = arith.constant 0 : index
    %22 = vector.load %arg10[%c0_27, %c0_28] : memref<144x324xf32, #tpu.memory_space<vmem>>, vector<36x324xf32>
    %cst = arith.constant dense<0.000000e+00> : vector<8x324xf32>
    %23 = tpu.matmul %21, %22, %cst {dimension_numbers = #tpu.dot_dimension_numbers<[1], [0], [0], [1], [0, 0, 1, 1], [], []>} : vector<8x36xf32>, vector<36x324xf32>, vector<8x324xf32> -> vector<8x324xf32>
    %c0_29 = arith.constant 0 : index
    %c828 = arith.constant 828 : index
    %24 = vector.load %arg2[%c0_29, %c828] : memref<8x838xf32, #tpu.memory_space<vmem>>, vector<8x1xf32>
    %25 = vector.broadcast %24 : vector<8x1xf32> to vector<8x324xf32>
    %26 = arith.addf %23, %25 : vector<8x324xf32>
    %cst_30 = arith.constant 0.000000e+00 : f32
    %27 = vector.broadcast %cst_30 : f32 to vector<8x324xf32>
    %28 = arith.maximumf %26, %27 : vector<8x324xf32>
    %c0_31 = arith.constant 0 : index
    %c0_32 = arith.constant 0 : index
    %29 = vector.load %arg3[%c0_31, %c0_32] : memref<1x460xf32, #tpu.memory_space<vmem>>, vector<1x324xf32>
    %cst_33 = arith.constant 0.000000e+00 : f32
    %30 = vector.broadcast %cst_33 : f32 to vector<1x324xf32>
    %31 = arith.cmpf ogt, %29, %30 : vector<1x324xf32>
    %cst_34 = arith.constant 0.000000e+00 : f32
    %32 = vector.shape_cast %31 : vector<1x324xi1> to vector<1x324xi1>
    %33 = vector.broadcast %32 : vector<1x324xi1> to vector<8x324xi1>
    %34 = vector.broadcast %cst_34 : f32 to vector<8x324xf32>
    %35 = arith.select %33, %28, %34 : vector<8x324xi1>, vector<8x324xf32>
    %c0_35 = arith.constant 0 : index
    %c19_36 = arith.constant 19 : index
    %36 = vector.load %arg9[%c0_35, %c19_36] : memref<16x362xf32, #tpu.memory_space<vmem>>, vector<8x324xf32>
    tpu.vector_store %arg9[%c0_35, %c19_36], %35 {strides = array<i32>} : memref<16x362xf32, #tpu.memory_space<vmem>>, vector<8x324xf32>,
    %c0_37 = arith.constant 0 : index
    %c0_38 = arith.constant 0 : index
    %37 = vector.load %arg9[%c0_37, %c0_38] : memref<16x362xf32, #tpu.memory_space<vmem>>, vector<8x324xf32>
    %c0_39 = arith.constant 0 : index
    %c0_40 = arith.constant 0 : index
    %38 = vector.load %arg10[%c0_39, %c0_40] : memref<144x324xf32, #tpu.memory_space<vmem>>, vector<8x324xf32>
    tpu.vector_store %arg10[%c0_39, %c0_40], %37 {strides = array<i32>} : memref<144x324xf32, #tpu.memory_space<vmem>>, vector<8x324xf32>,
    %c0_41 = arith.constant 0 : index
    %c1_42 = arith.constant 1 : index
    %39 = vector.load %arg9[%c0_41, %c1_42] : memref<16x362xf32, #tpu.memory_space<vmem>>, vector<8x324xf32>
    %c8_43 = arith.constant 8 : index
    %c0_44 = arith.constant 0 : index
    %40 = vector.load %arg10[%c8_43, %c0_44] : memref<144x324xf32, #tpu.memory_space<vmem>>, vector<8x324xf32>
    tpu.vector_store %arg10[%c8_43, %c0_44], %39 {strides = array<i32>} : memref<144x324xf32, #tpu.memory_space<vmem>>, vector<8x324xf32>,
    %c0_45 = arith.constant 0 : index
    %c2_46 = arith.constant 2 : index
    %41 = vector.load %arg9[%c0_45, %c2_46] : memref<16x362xf32, #tpu.memory_space<vmem>>, vector<8x324xf32>
    %c16_47 = arith.constant 16 : index
    %c0_48 = arith.constant 0 : index
    %42 = vector.load %arg10[%c16_47, %c0_48] : memref<144x324xf32, #tpu.memory_space<vmem>>, vector<8x324xf32>
    tpu.vector_store %arg10[%c16_47, %c0_48], %41 {strides = array<i32>} : memref<144x324xf32, #tpu.memory_space<vmem>>, vector<8x324xf32>,
    %c0_49 = arith.constant 0 : index
    %c18_50 = arith.constant 18 : index
    %43 = vector.load %arg9[%c0_49, %c18_50] : memref<16x362xf32, #tpu.memory_space<vmem>>, vector<8x324xf32>
    %c24_51 = arith.constant 24 : index
    %c0_52 = arith.constant 0 : index
    %44 = vector.load %arg10[%c24_51, %c0_52] : memref<144x324xf32, #tpu.memory_space<vmem>>, vector<8x324xf32>
    tpu.vector_store %arg10[%c24_51, %c0_52], %43 {strides = array<i32>} : memref<144x324xf32, #tpu.memory_space<vmem>>, vector<8x324xf32>,
    %c0_53 = arith.constant 0 : index
    %c19_54 = arith.constant 19 : index
    %45 = vector.load %arg9[%c0_53, %c19_54] : memref<16x362xf32, #tpu.memory_space<vmem>>, vector<8x324xf32>
    %c32_55 = arith.constant 32 : index
    %c0_56 = arith.constant 0 : index
    %46 = vector.load %arg10[%c32_55, %c0_56] : memref<144x324xf32, #tpu.memory_space<vmem>>, vector<8x324xf32>
    tpu.vector_store %arg10[%c32_55, %c0_56], %45 {strides = array<i32>} : memref<144x324xf32, #tpu.memory_space<vmem>>, vector<8x324xf32>,
    %c0_57 = arith.constant 0 : index
    %c20_58 = arith.constant 20 : index
    %47 = vector.load %arg9[%c0_57, %c20_58] : memref<16x362xf32, #tpu.memory_space<vmem>>, vector<8x324xf32>
    %c40 = arith.constant 40 : index
    %c0_59 = arith.constant 0 : index
    %48 = vector.load %arg10[%c40, %c0_59] : memref<144x324xf32, #tpu.memory_space<vmem>>, vector<8x324xf32>
    tpu.vector_store %arg10[%c40, %c0_59], %47 {strides = array<i32>} : memref<144x324xf32, #tpu.memory_space<vmem>>, vector<8x324xf32>,
    %c0_60 = arith.constant 0 : index
    %c36_61 = arith.constant 36 : index
    %49 = vector.load %arg9[%c0_60, %c36_61] : memref<16x362xf32, #tpu.memory_space<vmem>>, vector<8x324xf32>
    %c48 = arith.constant 48 : index
    %c0_62 = arith.constant 0 : index
    %50 = vector.load %arg10[%c48, %c0_62] : memref<144x324xf32, #tpu.memory_space<vmem>>, vector<8x324xf32>
    tpu.vector_store %arg10[%c48, %c0_62], %49 {strides = array<i32>} : memref<144x324xf32, #tpu.memory_space<vmem>>, vector<8x324xf32>,
    %c0_63 = arith.constant 0 : index
    %c37_64 = arith.constant 37 : index
    %51 = vector.load %arg9[%c0_63, %c37_64] : memref<16x362xf32, #tpu.memory_space<vmem>>, vector<8x324xf32>
    %c56 = arith.constant 56 : index
    %c0_65 = arith.constant 0 : index
    %52 = vector.load %arg10[%c56, %c0_65] : memref<144x324xf32, #tpu.memory_space<vmem>>, vector<8x324xf32>
    tpu.vector_store %arg10[%c56, %c0_65], %51 {strides = array<i32>} : memref<144x324xf32, #tpu.memory_space<vmem>>, vector<8x324xf32>,
    %c0_66 = arith.constant 0 : index
    %c38_67 = arith.constant 38 : index
    %53 = vector.load %arg9[%c0_66, %c38_67] : memref<16x362xf32, #tpu.memory_space<vmem>>, vector<8x324xf32>
    %c64 = arith.constant 64 : index
    %c0_68 = arith.constant 0 : index
    %54 = vector.load %arg10[%c64, %c0_68] : memref<144x324xf32, #tpu.memory_space<vmem>>, vector<8x324xf32>
    tpu.vector_store %arg10[%c64, %c0_68], %53 {strides = array<i32>} : memref<144x324xf32, #tpu.memory_space<vmem>>, vector<8x324xf32>,
    %c0_69 = arith.constant 0 : index
    %c36_70 = arith.constant 36 : index
    %55 = vector.load %arg2[%c0_69, %c36_70] : memref<8x838xf32, #tpu.memory_space<vmem>>, vector<8x72xf32>
    %c0_71 = arith.constant 0 : index
    %c0_72 = arith.constant 0 : index
    %56 = vector.load %arg10[%c0_71, %c0_72] : memref<144x324xf32, #tpu.memory_space<vmem>>, vector<72x324xf32>
    %cst_73 = arith.constant dense<0.000000e+00> : vector<8x324xf32>
    %57 = tpu.matmul %55, %56, %cst_73 {dimension_numbers = #tpu.dot_dimension_numbers<[1], [0], [0], [1], [0, 0, 1, 1], [], []>} : vector<8x72xf32>, vector<72x324xf32>, vector<8x324xf32> -> vector<8x324xf32>
    %c0_74 = arith.constant 0 : index
    %c829 = arith.constant 829 : index
    %58 = vector.load %arg2[%c0_74, %c829] : memref<8x838xf32, #tpu.memory_space<vmem>>, vector<8x1xf32>
    %59 = vector.broadcast %58 : vector<8x1xf32> to vector<8x324xf32>
    %60 = arith.addf %57, %59 : vector<8x324xf32>
    %cst_75 = arith.constant 0.000000e+00 : f32
    %61 = vector.broadcast %cst_75 : f32 to vector<8x324xf32>
    %62 = arith.maximumf %60, %61 : vector<8x324xf32>
    %c0_76 = arith.constant 0 : index
    %c0_77 = arith.constant 0 : index
    %63 = vector.load %arg3[%c0_76, %c0_77] : memref<1x460xf32, #tpu.memory_space<vmem>>, vector<1x324xf32>
    %cst_78 = arith.constant 0.000000e+00 : f32
    %64 = vector.broadcast %cst_78 : f32 to vector<1x324xf32>
    %65 = arith.cmpf ogt, %63, %64 : vector<1x324xf32>
    %cst_79 = arith.constant 0.000000e+00 : f32
    %66 = vector.shape_cast %65 : vector<1x324xi1> to vector<1x324xi1>
    %67 = vector.broadcast %66 : vector<1x324xi1> to vector<8x324xi1>
    %68 = vector.broadcast %cst_79 : f32 to vector<8x324xf32>
    %69 = arith.select %67, %62, %68 : vector<8x324xi1>, vector<8x324xf32>
    %c0_80 = arith.constant 0 : index
    %c0_81 = arith.constant 0 : index
    %70 = vector.load %arg11[%c0_80, %c0_81] : memref<8x324xf32, #tpu.memory_space<vmem>>, vector<8x324xf32>
    tpu.vector_store %arg11[%c0_80, %c0_81], %69 {strides = array<i32>} : memref<8x324xf32, #tpu.memory_space<vmem>>, vector<8x324xf32>,
    %c0_82 = arith.constant 0 : index
    %c0_83 = arith.constant 0 : index
    %71 = vector.load %arg4[%c0_82, %c0_83] : memref<305x100xf32, #tpu.memory_space<vmem>>, vector<305x100xf32>
    %c0_84 = arith.constant 0 : index
    %c0_85 = arith.constant 0 : index
    %72 = vector.load %arg11[%c0_84, %c0_85] : memref<8x324xf32, #tpu.memory_space<vmem>>, vector<8x305xf32>
    %c0_86 = arith.constant 0 : index
    %c1_87 = arith.constant 1 : index
    %73 = vector.load %arg11[%c0_86, %c1_87] : memref<8x324xf32, #tpu.memory_space<vmem>>, vector<8x305xf32>
    %74 = arith.maximumf %72, %73 : vector<8x305xf32>
    %c0_88 = arith.constant 0 : index
    %c18_89 = arith.constant 18 : index
    %75 = vector.load %arg11[%c0_88, %c18_89] : memref<8x324xf32, #tpu.memory_space<vmem>>, vector<8x305xf32>
    %c0_90 = arith.constant 0 : index
    %c19_91 = arith.constant 19 : index
    %76 = vector.load %arg11[%c0_90, %c19_91] : memref<8x324xf32, #tpu.memory_space<vmem>>, vector<8x305xf32>
    %77 = arith.maximumf %75, %76 : vector<8x305xf32>
    %78 = arith.maximumf %74, %77 : vector<8x305xf32>
    %cst_92 = arith.constant dense<0.000000e+00> : vector<8x100xf32>
    %79 = tpu.matmul %78, %71, %cst_92 {dimension_numbers = #tpu.dot_dimension_numbers<[1], [0], [0], [1], [0, 0, 1, 1], [], []>} : vector<8x305xf32>, vector<305x100xf32>, vector<8x100xf32> -> vector<8x100xf32>
    %c0_93 = arith.constant 0 : index
    %c19_94 = arith.constant 19 : index
    %80 = vector.load %arg9[%c0_93, %c19_94] : memref<16x362xf32, #tpu.memory_space<vmem>>, vector<8x100xf32>
    tpu.vector_store %arg9[%c0_93, %c19_94], %79 {strides = array<i32>} : memref<16x362xf32, #tpu.memory_space<vmem>>, vector<8x100xf32>,
    %c0_95 = arith.constant 0 : index
    %c8_96 = arith.constant 8 : index
    %81 = vector.load %arg9[%c0_95, %c8_96] : memref<16x362xf32, #tpu.memory_space<vmem>>, vector<8x100xf32>
    %c0_97 = arith.constant 0 : index
    %c0_98 = arith.constant 0 : index
    %82 = vector.load %arg10[%c0_97, %c0_98] : memref<144x324xf32, #tpu.memory_space<vmem>>, vector<8x100xf32>
    tpu.vector_store %arg10[%c0_97, %c0_98], %81 {strides = array<i32>} : memref<144x324xf32, #tpu.memory_space<vmem>>, vector<8x100xf32>,
    %c0_99 = arith.constant 0 : index
    %c9 = arith.constant 9 : index
    %83 = vector.load %arg9[%c0_99, %c9] : memref<16x362xf32, #tpu.memory_space<vmem>>, vector<8x100xf32>
    %c8_100 = arith.constant 8 : index
    %c0_101 = arith.constant 0 : index
    %84 = vector.load %arg10[%c8_100, %c0_101] : memref<144x324xf32, #tpu.memory_space<vmem>>, vector<8x100xf32>
    tpu.vector_store %arg10[%c8_100, %c0_101], %83 {strides = array<i32>} : memref<144x324xf32, #tpu.memory_space<vmem>>, vector<8x100xf32>,
    %c0_102 = arith.constant 0 : index
    %c10 = arith.constant 10 : index
    %85 = vector.load %arg9[%c0_102, %c10] : memref<16x362xf32, #tpu.memory_space<vmem>>, vector<8x100xf32>
    %c16_103 = arith.constant 16 : index
    %c0_104 = arith.constant 0 : index
    %86 = vector.load %arg10[%c16_103, %c0_104] : memref<144x324xf32, #tpu.memory_space<vmem>>, vector<8x100xf32>
    tpu.vector_store %arg10[%c16_103, %c0_104], %85 {strides = array<i32>} : memref<144x324xf32, #tpu.memory_space<vmem>>, vector<8x100xf32>,
    %c0_105 = arith.constant 0 : index
    %c18_106 = arith.constant 18 : index
    %87 = vector.load %arg9[%c0_105, %c18_106] : memref<16x362xf32, #tpu.memory_space<vmem>>, vector<8x100xf32>
    %c24_107 = arith.constant 24 : index
    %c0_108 = arith.constant 0 : index
    %88 = vector.load %arg10[%c24_107, %c0_108] : memref<144x324xf32, #tpu.memory_space<vmem>>, vector<8x100xf32>
    tpu.vector_store %arg10[%c24_107, %c0_108], %87 {strides = array<i32>} : memref<144x324xf32, #tpu.memory_space<vmem>>, vector<8x100xf32>,
    %c0_109 = arith.constant 0 : index
    %c19_110 = arith.constant 19 : index
    %89 = vector.load %arg9[%c0_109, %c19_110] : memref<16x362xf32, #tpu.memory_space<vmem>>, vector<8x100xf32>
    %c32_111 = arith.constant 32 : index
    %c0_112 = arith.constant 0 : index
    %90 = vector.load %arg10[%c32_111, %c0_112] : memref<144x324xf32, #tpu.memory_space<vmem>>, vector<8x100xf32>
    tpu.vector_store %arg10[%c32_111, %c0_112], %89 {strides = array<i32>} : memref<144x324xf32, #tpu.memory_space<vmem>>, vector<8x100xf32>,
    %c0_113 = arith.constant 0 : index
    %c20_114 = arith.constant 20 : index
    %91 = vector.load %arg9[%c0_113, %c20_114] : memref<16x362xf32, #tpu.memory_space<vmem>>, vector<8x100xf32>
    %c40_115 = arith.constant 40 : index
    %c0_116 = arith.constant 0 : index
    %92 = vector.load %arg10[%c40_115, %c0_116] : memref<144x324xf32, #tpu.memory_space<vmem>>, vector<8x100xf32>
    tpu.vector_store %arg10[%c40_115, %c0_116], %91 {strides = array<i32>} : memref<144x324xf32, #tpu.memory_space<vmem>>, vector<8x100xf32>,
    %c0_117 = arith.constant 0 : index
    %c28_118 = arith.constant 28 : index
    %93 = vector.load %arg9[%c0_117, %c28_118] : memref<16x362xf32, #tpu.memory_space<vmem>>, vector<8x100xf32>
    %c48_119 = arith.constant 48 : index
    %c0_120 = arith.constant 0 : index
    %94 = vector.load %arg10[%c48_119, %c0_120] : memref<144x324xf32, #tpu.memory_space<vmem>>, vector<8x100xf32>
    tpu.vector_store %arg10[%c48_119, %c0_120], %93 {strides = array<i32>} : memref<144x324xf32, #tpu.memory_space<vmem>>, vector<8x100xf32>,
    %c0_121 = arith.constant 0 : index
    %c29 = arith.constant 29 : index
    %95 = vector.load %arg9[%c0_121, %c29] : memref<16x362xf32, #tpu.memory_space<vmem>>, vector<8x100xf32>
    %c56_122 = arith.constant 56 : index
    %c0_123 = arith.constant 0 : index
    %96 = vector.load %arg10[%c56_122, %c0_123] : memref<144x324xf32, #tpu.memory_space<vmem>>, vector<8x100xf32>
    tpu.vector_store %arg10[%c56_122, %c0_123], %95 {strides = array<i32>} : memref<144x324xf32, #tpu.memory_space<vmem>>, vector<8x100xf32>,
    %c0_124 = arith.constant 0 : index
    %c30 = arith.constant 30 : index
    %97 = vector.load %arg9[%c0_124, %c30] : memref<16x362xf32, #tpu.memory_space<vmem>>, vector<8x100xf32>
    %c64_125 = arith.constant 64 : index
    %c0_126 = arith.constant 0 : index
    %98 = vector.load %arg10[%c64_125, %c0_126] : memref<144x324xf32, #tpu.memory_space<vmem>>, vector<8x100xf32>
    tpu.vector_store %arg10[%c64_125, %c0_126], %97 {strides = array<i32>} : memref<144x324xf32, #tpu.memory_space<vmem>>, vector<8x100xf32>,
    %c0_127 = arith.constant 0 : index
    %c108 = arith.constant 108 : index
    %99 = vector.load %arg2[%c0_127, %c108] : memref<8x838xf32, #tpu.memory_space<vmem>>, vector<8x72xf32>
    %c0_128 = arith.constant 0 : index
    %c0_129 = arith.constant 0 : index
    %100 = vector.load %arg10[%c0_128, %c0_129] : memref<144x324xf32, #tpu.memory_space<vmem>>, vector<72x100xf32>
    %cst_130 = arith.constant dense<0.000000e+00> : vector<8x100xf32>
    %101 = tpu.matmul %99, %100, %cst_130 {dimension_numbers = #tpu.dot_dimension_numbers<[1], [0], [0], [1], [0, 0, 1, 1], [], []>} : vector<8x72xf32>, vector<72x100xf32>, vector<8x100xf32> -> vector<8x100xf32>
    %c0_131 = arith.constant 0 : index
    %c830 = arith.constant 830 : index
    %102 = vector.load %arg2[%c0_131, %c830] : memref<8x838xf32, #tpu.memory_space<vmem>>, vector<8x1xf32>
    %103 = vector.broadcast %102 : vector<8x1xf32> to vector<8x100xf32>
    %104 = arith.addf %101, %103 : vector<8x100xf32>
    %cst_132 = arith.constant 0.000000e+00 : f32
    %105 = vector.broadcast %cst_132 : f32 to vector<8x100xf32>
    %106 = arith.maximumf %104, %105 : vector<8x100xf32>
    %c0_133 = arith.constant 0 : index
    %c324 = arith.constant 324 : index
    %107 = vector.load %arg3[%c0_133, %c324] : memref<1x460xf32, #tpu.memory_space<vmem>>, vector<1x100xf32>
    %cst_134 = arith.constant 0.000000e+00 : f32
    %108 = vector.broadcast %cst_134 : f32 to vector<1x100xf32>
    %109 = arith.cmpf ogt, %107, %108 : vector<1x100xf32>
    %cst_135 = arith.constant 0.000000e+00 : f32
    %110 = vector.shape_cast %109 : vector<1x100xi1> to vector<1x100xi1>
    %111 = vector.broadcast %110 : vector<1x100xi1> to vector<8x100xi1>
    %112 = vector.broadcast %cst_135 : f32 to vector<8x100xf32>
    %113 = arith.select %111, %106, %112 : vector<8x100xi1>, vector<8x100xf32>
    %c0_136 = arith.constant 0 : index
    %c19_137 = arith.constant 19 : index
    %114 = vector.load %arg9[%c0_136, %c19_137] : memref<16x362xf32, #tpu.memory_space<vmem>>, vector<8x100xf32>
    tpu.vector_store %arg9[%c0_136, %c19_137], %113 {strides = array<i32>} : memref<16x362xf32, #tpu.memory_space<vmem>>, vector<8x100xf32>,
    %c0_138 = arith.constant 0 : index
    %c8_139 = arith.constant 8 : index
    %115 = vector.load %arg9[%c0_138, %c8_139] : memref<16x362xf32, #tpu.memory_space<vmem>>, vector<8x100xf32>
    %c0_140 = arith.constant 0 : index
    %c0_141 = arith.constant 0 : index
    %116 = vector.load %arg10[%c0_140, %c0_141] : memref<144x324xf32, #tpu.memory_space<vmem>>, vector<8x100xf32>
    tpu.vector_store %arg10[%c0_140, %c0_141], %115 {strides = array<i32>} : memref<144x324xf32, #tpu.memory_space<vmem>>, vector<8x100xf32>,
    %c0_142 = arith.constant 0 : index
    %c9_143 = arith.constant 9 : index
    %117 = vector.load %arg9[%c0_142, %c9_143] : memref<16x362xf32, #tpu.memory_space<vmem>>, vector<8x100xf32>
    %c8_144 = arith.constant 8 : index
    %c0_145 = arith.constant 0 : index
    %118 = vector.load %arg10[%c8_144, %c0_145] : memref<144x324xf32, #tpu.memory_space<vmem>>, vector<8x100xf32>
    tpu.vector_store %arg10[%c8_144, %c0_145], %117 {strides = array<i32>} : memref<144x324xf32, #tpu.memory_space<vmem>>, vector<8x100xf32>,
    %c0_146 = arith.constant 0 : index
    %c10_147 = arith.constant 10 : index
    %119 = vector.load %arg9[%c0_146, %c10_147] : memref<16x362xf32, #tpu.memory_space<vmem>>, vector<8x100xf32>
    %c16_148 = arith.constant 16 : index
    %c0_149 = arith.constant 0 : index
    %120 = vector.load %arg10[%c16_148, %c0_149] : memref<144x324xf32, #tpu.memory_space<vmem>>, vector<8x100xf32>
    tpu.vector_store %arg10[%c16_148, %c0_149], %119 {strides = array<i32>} : memref<144x324xf32, #tpu.memory_space<vmem>>, vector<8x100xf32>,
    %c0_150 = arith.constant 0 : index
    %c18_151 = arith.constant 18 : index
    %121 = vector.load %arg9[%c0_150, %c18_151] : memref<16x362xf32, #tpu.memory_space<vmem>>, vector<8x100xf32>
    %c24_152 = arith.constant 24 : index
    %c0_153 = arith.constant 0 : index
    %122 = vector.load %arg10[%c24_152, %c0_153] : memref<144x324xf32, #tpu.memory_space<vmem>>, vector<8x100xf32>
    tpu.vector_store %arg10[%c24_152, %c0_153], %121 {strides = array<i32>} : memref<144x324xf32, #tpu.memory_space<vmem>>, vector<8x100xf32>,
    %c0_154 = arith.constant 0 : index
    %c19_155 = arith.constant 19 : index
    %123 = vector.load %arg9[%c0_154, %c19_155] : memref<16x362xf32, #tpu.memory_space<vmem>>, vector<8x100xf32>
    %c32_156 = arith.constant 32 : index
    %c0_157 = arith.constant 0 : index
    %124 = vector.load %arg10[%c32_156, %c0_157] : memref<144x324xf32, #tpu.memory_space<vmem>>, vector<8x100xf32>
    tpu.vector_store %arg10[%c32_156, %c0_157], %123 {strides = array<i32>} : memref<144x324xf32, #tpu.memory_space<vmem>>, vector<8x100xf32>,
    %c0_158 = arith.constant 0 : index
    %c20_159 = arith.constant 20 : index
    %125 = vector.load %arg9[%c0_158, %c20_159] : memref<16x362xf32, #tpu.memory_space<vmem>>, vector<8x100xf32>
    %c40_160 = arith.constant 40 : index
    %c0_161 = arith.constant 0 : index
    %126 = vector.load %arg10[%c40_160, %c0_161] : memref<144x324xf32, #tpu.memory_space<vmem>>, vector<8x100xf32>
    tpu.vector_store %arg10[%c40_160, %c0_161], %125 {strides = array<i32>} : memref<144x324xf32, #tpu.memory_space<vmem>>, vector<8x100xf32>,
    %c0_162 = arith.constant 0 : index
    %c28_163 = arith.constant 28 : index
    %127 = vector.load %arg9[%c0_162, %c28_163] : memref<16x362xf32, #tpu.memory_space<vmem>>, vector<8x100xf32>
    %c48_164 = arith.constant 48 : index
    %c0_165 = arith.constant 0 : index
    %128 = vector.load %arg10[%c48_164, %c0_165] : memref<144x324xf32, #tpu.memory_space<vmem>>, vector<8x100xf32>
    tpu.vector_store %arg10[%c48_164, %c0_165], %127 {strides = array<i32>} : memref<144x324xf32, #tpu.memory_space<vmem>>, vector<8x100xf32>,
    %c0_166 = arith.constant 0 : index
    %c29_167 = arith.constant 29 : index
    %129 = vector.load %arg9[%c0_166, %c29_167] : memref<16x362xf32, #tpu.memory_space<vmem>>, vector<8x100xf32>
    %c56_168 = arith.constant 56 : index
    %c0_169 = arith.constant 0 : index
    %130 = vector.load %arg10[%c56_168, %c0_169] : memref<144x324xf32, #tpu.memory_space<vmem>>, vector<8x100xf32>
    tpu.vector_store %arg10[%c56_168, %c0_169], %129 {strides = array<i32>} : memref<144x324xf32, #tpu.memory_space<vmem>>, vector<8x100xf32>,
    %c0_170 = arith.constant 0 : index
    %c30_171 = arith.constant 30 : index
    %131 = vector.load %arg9[%c0_170, %c30_171] : memref<16x362xf32, #tpu.memory_space<vmem>>, vector<8x100xf32>
    %c64_172 = arith.constant 64 : index
    %c0_173 = arith.constant 0 : index
    %132 = vector.load %arg10[%c64_172, %c0_173] : memref<144x324xf32, #tpu.memory_space<vmem>>, vector<8x100xf32>
    tpu.vector_store %arg10[%c64_172, %c0_173], %131 {strides = array<i32>} : memref<144x324xf32, #tpu.memory_space<vmem>>, vector<8x100xf32>,
    %c0_174 = arith.constant 0 : index
    %c180 = arith.constant 180 : index
    %133 = vector.load %arg2[%c0_174, %c180] : memref<8x838xf32, #tpu.memory_space<vmem>>, vector<8x72xf32>
    %c0_175 = arith.constant 0 : index
    %c0_176 = arith.constant 0 : index
    %134 = vector.load %arg10[%c0_175, %c0_176] : memref<144x324xf32, #tpu.memory_space<vmem>>, vector<72x100xf32>
    %cst_177 = arith.constant dense<0.000000e+00> : vector<8x100xf32>
    %135 = tpu.matmul %133, %134, %cst_177 {dimension_numbers = #tpu.dot_dimension_numbers<[1], [0], [0], [1], [0, 0, 1, 1], [], []>} : vector<8x72xf32>, vector<72x100xf32>, vector<8x100xf32> -> vector<8x100xf32>
    %c0_178 = arith.constant 0 : index
    %c831 = arith.constant 831 : index
    %136 = vector.load %arg2[%c0_178, %c831] : memref<8x838xf32, #tpu.memory_space<vmem>>, vector<8x1xf32>
    %137 = vector.broadcast %136 : vector<8x1xf32> to vector<8x100xf32>
    %138 = arith.addf %135, %137 : vector<8x100xf32>
    %cst_179 = arith.constant 0.000000e+00 : f32
    %139 = vector.broadcast %cst_179 : f32 to vector<8x100xf32>
    %140 = arith.maximumf %138, %139 : vector<8x100xf32>
    %c0_180 = arith.constant 0 : index
    %c324_181 = arith.constant 324 : index
    %141 = vector.load %arg3[%c0_180, %c324_181] : memref<1x460xf32, #tpu.memory_space<vmem>>, vector<1x100xf32>
    %cst_182 = arith.constant 0.000000e+00 : f32
    %142 = vector.broadcast %cst_182 : f32 to vector<1x100xf32>
    %143 = arith.cmpf ogt, %141, %142 : vector<1x100xf32>
    %cst_183 = arith.constant 0.000000e+00 : f32
    %144 = vector.shape_cast %143 : vector<1x100xi1> to vector<1x100xi1>
    %145 = vector.broadcast %144 : vector<1x100xi1> to vector<8x100xi1>
    %146 = vector.broadcast %cst_183 : f32 to vector<8x100xf32>
    %147 = arith.select %145, %140, %146 : vector<8x100xi1>, vector<8x100xf32>
    %c0_184 = arith.constant 0 : index
    %c0_185 = arith.constant 0 : index
    %148 = vector.load %arg12[%c0_184, %c0_185] : memref<8x100xf32, #tpu.memory_space<vmem>>, vector<8x100xf32>
    tpu.vector_store %arg12[%c0_184, %c0_185], %147 {strides = array<i32>} : memref<8x100xf32, #tpu.memory_space<vmem>>, vector<8x100xf32>,
    %c0_186 = arith.constant 0 : index
    %c0_187 = arith.constant 0 : index
    %149 = vector.load %arg5[%c0_186, %c0_187] : memref<89x36xf32, #tpu.memory_space<vmem>>, vector<89x36xf32>
    %c0_188 = arith.constant 0 : index
    %c0_189 = arith.constant 0 : index
    %150 = vector.load %arg12[%c0_188, %c0_189] : memref<8x100xf32, #tpu.memory_space<vmem>>, vector<8x89xf32>
    %c0_190 = arith.constant 0 : index
    %c1_191 = arith.constant 1 : index
    %151 = vector.load %arg12[%c0_190, %c1_191] : memref<8x100xf32, #tpu.memory_space<vmem>>, vector<8x89xf32>
    %152 = arith.maximumf %150, %151 : vector<8x89xf32>
    %c0_192 = arith.constant 0 : index
    %c10_193 = arith.constant 10 : index
    %153 = vector.load %arg12[%c0_192, %c10_193] : memref<8x100xf32, #tpu.memory_space<vmem>>, vector<8x89xf32>
    %c0_194 = arith.constant 0 : index
    %c11 = arith.constant 11 : index
    %154 = vector.load %arg12[%c0_194, %c11] : memref<8x100xf32, #tpu.memory_space<vmem>>, vector<8x89xf32>
    %155 = arith.maximumf %153, %154 : vector<8x89xf32>
    %156 = arith.maximumf %152, %155 : vector<8x89xf32>
    %cst_195 = arith.constant dense<0.000000e+00> : vector<8x36xf32>
    %157 = tpu.matmul %156, %149, %cst_195 {dimension_numbers = #tpu.dot_dimension_numbers<[1], [0], [0], [1], [0, 0, 1, 1], [], []>} : vector<8x89xf32>, vector<89x36xf32>, vector<8x36xf32> -> vector<8x36xf32>
    %c0_196 = arith.constant 0 : index
    %c19_197 = arith.constant 19 : index
    %158 = vector.load %arg9[%c0_196, %c19_197] : memref<16x362xf32, #tpu.memory_space<vmem>>, vector<8x36xf32>
    tpu.vector_store %arg9[%c0_196, %c19_197], %157 {strides = array<i32>} : memref<16x362xf32, #tpu.memory_space<vmem>>, vector<8x36xf32>,
    %c0_198 = arith.constant 0 : index
    %c12_199 = arith.constant 12 : index
    %159 = vector.load %arg9[%c0_198, %c12_199] : memref<16x362xf32, #tpu.memory_space<vmem>>, vector<8x36xf32>
    %c0_200 = arith.constant 0 : index
    %c0_201 = arith.constant 0 : index
    %160 = vector.load %arg10[%c0_200, %c0_201] : memref<144x324xf32, #tpu.memory_space<vmem>>, vector<8x36xf32>
    tpu.vector_store %arg10[%c0_200, %c0_201], %159 {strides = array<i32>} : memref<144x324xf32, #tpu.memory_space<vmem>>, vector<8x36xf32>,
    %c0_202 = arith.constant 0 : index
    %c13 = arith.constant 13 : index
    %161 = vector.load %arg9[%c0_202, %c13] : memref<16x362xf32, #tpu.memory_space<vmem>>, vector<8x36xf32>
    %c8_203 = arith.constant 8 : index
    %c0_204 = arith.constant 0 : index
    %162 = vector.load %arg10[%c8_203, %c0_204] : memref<144x324xf32, #tpu.memory_space<vmem>>, vector<8x36xf32>
    tpu.vector_store %arg10[%c8_203, %c0_204], %161 {strides = array<i32>} : memref<144x324xf32, #tpu.memory_space<vmem>>, vector<8x36xf32>,
    %c0_205 = arith.constant 0 : index
    %c14 = arith.constant 14 : index
    %163 = vector.load %arg9[%c0_205, %c14] : memref<16x362xf32, #tpu.memory_space<vmem>>, vector<8x36xf32>
    %c16_206 = arith.constant 16 : index
    %c0_207 = arith.constant 0 : index
    %164 = vector.load %arg10[%c16_206, %c0_207] : memref<144x324xf32, #tpu.memory_space<vmem>>, vector<8x36xf32>
    tpu.vector_store %arg10[%c16_206, %c0_207], %163 {strides = array<i32>} : memref<144x324xf32, #tpu.memory_space<vmem>>, vector<8x36xf32>,
    %c0_208 = arith.constant 0 : index
    %c18_209 = arith.constant 18 : index
    %165 = vector.load %arg9[%c0_208, %c18_209] : memref<16x362xf32, #tpu.memory_space<vmem>>, vector<8x36xf32>
    %c24_210 = arith.constant 24 : index
    %c0_211 = arith.constant 0 : index
    %166 = vector.load %arg10[%c24_210, %c0_211] : memref<144x324xf32, #tpu.memory_space<vmem>>, vector<8x36xf32>
    tpu.vector_store %arg10[%c24_210, %c0_211], %165 {strides = array<i32>} : memref<144x324xf32, #tpu.memory_space<vmem>>, vector<8x36xf32>,
    %c0_212 = arith.constant 0 : index
    %c19_213 = arith.constant 19 : index
    %167 = vector.load %arg9[%c0_212, %c19_213] : memref<16x362xf32, #tpu.memory_space<vmem>>, vector<8x36xf32>
    %c32_214 = arith.constant 32 : index
    %c0_215 = arith.constant 0 : index
    %168 = vector.load %arg10[%c32_214, %c0_215] : memref<144x324xf32, #tpu.memory_space<vmem>>, vector<8x36xf32>
    tpu.vector_store %arg10[%c32_214, %c0_215], %167 {strides = array<i32>} : memref<144x324xf32, #tpu.memory_space<vmem>>, vector<8x36xf32>,
    %c0_216 = arith.constant 0 : index
    %c20_217 = arith.constant 20 : index
    %169 = vector.load %arg9[%c0_216, %c20_217] : memref<16x362xf32, #tpu.memory_space<vmem>>, vector<8x36xf32>
    %c40_218 = arith.constant 40 : index
    %c0_219 = arith.constant 0 : index
    %170 = vector.load %arg10[%c40_218, %c0_219] : memref<144x324xf32, #tpu.memory_space<vmem>>, vector<8x36xf32>
    tpu.vector_store %arg10[%c40_218, %c0_219], %169 {strides = array<i32>} : memref<144x324xf32, #tpu.memory_space<vmem>>, vector<8x36xf32>,
    %c0_220 = arith.constant 0 : index
    %c24_221 = arith.constant 24 : index
    %171 = vector.load %arg9[%c0_220, %c24_221] : memref<16x362xf32, #tpu.memory_space<vmem>>, vector<8x36xf32>
    %c48_222 = arith.constant 48 : index
    %c0_223 = arith.constant 0 : index
    %172 = vector.load %arg10[%c48_222, %c0_223] : memref<144x324xf32, #tpu.memory_space<vmem>>, vector<8x36xf32>
    tpu.vector_store %arg10[%c48_222, %c0_223], %171 {strides = array<i32>} : memref<144x324xf32, #tpu.memory_space<vmem>>, vector<8x36xf32>,
    %c0_224 = arith.constant 0 : index
    %c25 = arith.constant 25 : index
    %173 = vector.load %arg9[%c0_224, %c25] : memref<16x362xf32, #tpu.memory_space<vmem>>, vector<8x36xf32>
    %c56_225 = arith.constant 56 : index
    %c0_226 = arith.constant 0 : index
    %174 = vector.load %arg10[%c56_225, %c0_226] : memref<144x324xf32, #tpu.memory_space<vmem>>, vector<8x36xf32>
    tpu.vector_store %arg10[%c56_225, %c0_226], %173 {strides = array<i32>} : memref<144x324xf32, #tpu.memory_space<vmem>>, vector<8x36xf32>,
    %c0_227 = arith.constant 0 : index
    %c26 = arith.constant 26 : index
    %175 = vector.load %arg9[%c0_227, %c26] : memref<16x362xf32, #tpu.memory_space<vmem>>, vector<8x36xf32>
    %c64_228 = arith.constant 64 : index
    %c0_229 = arith.constant 0 : index
    %176 = vector.load %arg10[%c64_228, %c0_229] : memref<144x324xf32, #tpu.memory_space<vmem>>, vector<8x36xf32>
    tpu.vector_store %arg10[%c64_228, %c0_229], %175 {strides = array<i32>} : memref<144x324xf32, #tpu.memory_space<vmem>>, vector<8x36xf32>,
    %c0_230 = arith.constant 0 : index
    %c252 = arith.constant 252 : index
    %177 = vector.load %arg2[%c0_230, %c252] : memref<8x838xf32, #tpu.memory_space<vmem>>, vector<8x72xf32>
    %c0_231 = arith.constant 0 : index
    %c0_232 = arith.constant 0 : index
    %178 = vector.load %arg10[%c0_231, %c0_232] : memref<144x324xf32, #tpu.memory_space<vmem>>, vector<72x36xf32>
    %cst_233 = arith.constant dense<0.000000e+00> : vector<8x36xf32>
    %179 = tpu.matmul %177, %178, %cst_233 {dimension_numbers = #tpu.dot_dimension_numbers<[1], [0], [0], [1], [0, 0, 1, 1], [], []>} : vector<8x72xf32>, vector<72x36xf32>, vector<8x36xf32> -> vector<8x36xf32>
    %c0_234 = arith.constant 0 : index
    %c832 = arith.constant 832 : index
    %180 = vector.load %arg2[%c0_234, %c832] : memref<8x838xf32, #tpu.memory_space<vmem>>, vector<8x1xf32>
    %181 = vector.broadcast %180 : vector<8x1xf32> to vector<8x36xf32>
    %182 = arith.addf %179, %181 : vector<8x36xf32>
    %cst_235 = arith.constant 0.000000e+00 : f32
    %183 = vector.broadcast %cst_235 : f32 to vector<8x36xf32>
    %184 = arith.maximumf %182, %183 : vector<8x36xf32>
    %c0_236 = arith.constant 0 : index
    %c424 = arith.constant 424 : index
    %185 = vector.load %arg3[%c0_236, %c424] : memref<1x460xf32, #tpu.memory_space<vmem>>, vector<1x36xf32>
    %cst_237 = arith.constant 0.000000e+00 : f32
    %186 = vector.broadcast %cst_237 : f32 to vector<1x36xf32>
    %187 = arith.cmpf ogt, %185, %186 : vector<1x36xf32>
    %cst_238 = arith.constant 0.000000e+00 : f32
    %188 = vector.shape_cast %187 : vector<1x36xi1> to vector<1x36xi1>
    %189 = vector.broadcast %188 : vector<1x36xi1> to vector<8x36xi1>
    %190 = vector.broadcast %cst_238 : f32 to vector<8x36xf32>
    %191 = arith.select %189, %184, %190 : vector<8x36xi1>, vector<8x36xf32>
    %c0_239 = arith.constant 0 : index
    %c19_240 = arith.constant 19 : index
    %192 = vector.load %arg9[%c0_239, %c19_240] : memref<16x362xf32, #tpu.memory_space<vmem>>, vector<8x36xf32>
    tpu.vector_store %arg9[%c0_239, %c19_240], %191 {strides = array<i32>} : memref<16x362xf32, #tpu.memory_space<vmem>>, vector<8x36xf32>,
    %c0_241 = arith.constant 0 : index
    %c12_242 = arith.constant 12 : index
    %193 = vector.load %arg9[%c0_241, %c12_242] : memref<16x362xf32, #tpu.memory_space<vmem>>, vector<8x36xf32>
    %c0_243 = arith.constant 0 : index
    %c0_244 = arith.constant 0 : index
    %194 = vector.load %arg10[%c0_243, %c0_244] : memref<144x324xf32, #tpu.memory_space<vmem>>, vector<8x36xf32>
    tpu.vector_store %arg10[%c0_243, %c0_244], %193 {strides = array<i32>} : memref<144x324xf32, #tpu.memory_space<vmem>>, vector<8x36xf32>,
    %c0_245 = arith.constant 0 : index
    %c13_246 = arith.constant 13 : index
    %195 = vector.load %arg9[%c0_245, %c13_246] : memref<16x362xf32, #tpu.memory_space<vmem>>, vector<8x36xf32>
    %c8_247 = arith.constant 8 : index
    %c0_248 = arith.constant 0 : index
    %196 = vector.load %arg10[%c8_247, %c0_248] : memref<144x324xf32, #tpu.memory_space<vmem>>, vector<8x36xf32>
    tpu.vector_store %arg10[%c8_247, %c0_248], %195 {strides = array<i32>} : memref<144x324xf32, #tpu.memory_space<vmem>>, vector<8x36xf32>,
    %c0_249 = arith.constant 0 : index
    %c14_250 = arith.constant 14 : index
    %197 = vector.load %arg9[%c0_249, %c14_250] : memref<16x362xf32, #tpu.memory_space<vmem>>, vector<8x36xf32>
    %c16_251 = arith.constant 16 : index
    %c0_252 = arith.constant 0 : index
    %198 = vector.load %arg10[%c16_251, %c0_252] : memref<144x324xf32, #tpu.memory_space<vmem>>, vector<8x36xf32>
    tpu.vector_store %arg10[%c16_251, %c0_252], %197 {strides = array<i32>} : memref<144x324xf32, #tpu.memory_space<vmem>>, vector<8x36xf32>,
    %c0_253 = arith.constant 0 : index
    %c18_254 = arith.constant 18 : index
    %199 = vector.load %arg9[%c0_253, %c18_254] : memref<16x362xf32, #tpu.memory_space<vmem>>, vector<8x36xf32>
    %c24_255 = arith.constant 24 : index
    %c0_256 = arith.constant 0 : index
    %200 = vector.load %arg10[%c24_255, %c0_256] : memref<144x324xf32, #tpu.memory_space<vmem>>, vector<8x36xf32>
    tpu.vector_store %arg10[%c24_255, %c0_256], %199 {strides = array<i32>} : memref<144x324xf32, #tpu.memory_space<vmem>>, vector<8x36xf32>,
    %c0_257 = arith.constant 0 : index
    %c19_258 = arith.constant 19 : index
    %201 = vector.load %arg9[%c0_257, %c19_258] : memref<16x362xf32, #tpu.memory_space<vmem>>, vector<8x36xf32>
    %c32_259 = arith.constant 32 : index
    %c0_260 = arith.constant 0 : index
    %202 = vector.load %arg10[%c32_259, %c0_260] : memref<144x324xf32, #tpu.memory_space<vmem>>, vector<8x36xf32>
    tpu.vector_store %arg10[%c32_259, %c0_260], %201 {strides = array<i32>} : memref<144x324xf32, #tpu.memory_space<vmem>>, vector<8x36xf32>,
    %c0_261 = arith.constant 0 : index
    %c20_262 = arith.constant 20 : index
    %203 = vector.load %arg9[%c0_261, %c20_262] : memref<16x362xf32, #tpu.memory_space<vmem>>, vector<8x36xf32>
    %c40_263 = arith.constant 40 : index
    %c0_264 = arith.constant 0 : index
    %204 = vector.load %arg10[%c40_263, %c0_264] : memref<144x324xf32, #tpu.memory_space<vmem>>, vector<8x36xf32>
    tpu.vector_store %arg10[%c40_263, %c0_264], %203 {strides = array<i32>} : memref<144x324xf32, #tpu.memory_space<vmem>>, vector<8x36xf32>,
    %c0_265 = arith.constant 0 : index
    %c24_266 = arith.constant 24 : index
    %205 = vector.load %arg9[%c0_265, %c24_266] : memref<16x362xf32, #tpu.memory_space<vmem>>, vector<8x36xf32>
    %c48_267 = arith.constant 48 : index
    %c0_268 = arith.constant 0 : index
    %206 = vector.load %arg10[%c48_267, %c0_268] : memref<144x324xf32, #tpu.memory_space<vmem>>, vector<8x36xf32>
    tpu.vector_store %arg10[%c48_267, %c0_268], %205 {strides = array<i32>} : memref<144x324xf32, #tpu.memory_space<vmem>>, vector<8x36xf32>,
    %c0_269 = arith.constant 0 : index
    %c25_270 = arith.constant 25 : index
    %207 = vector.load %arg9[%c0_269, %c25_270] : memref<16x362xf32, #tpu.memory_space<vmem>>, vector<8x36xf32>
    %c56_271 = arith.constant 56 : index
    %c0_272 = arith.constant 0 : index
    %208 = vector.load %arg10[%c56_271, %c0_272] : memref<144x324xf32, #tpu.memory_space<vmem>>, vector<8x36xf32>
    tpu.vector_store %arg10[%c56_271, %c0_272], %207 {strides = array<i32>} : memref<144x324xf32, #tpu.memory_space<vmem>>, vector<8x36xf32>,
    %c0_273 = arith.constant 0 : index
    %c26_274 = arith.constant 26 : index
    %209 = vector.load %arg9[%c0_273, %c26_274] : memref<16x362xf32, #tpu.memory_space<vmem>>, vector<8x36xf32>
    %c64_275 = arith.constant 64 : index
    %c0_276 = arith.constant 0 : index
    %210 = vector.load %arg10[%c64_275, %c0_276] : memref<144x324xf32, #tpu.memory_space<vmem>>, vector<8x36xf32>
    tpu.vector_store %arg10[%c64_275, %c0_276], %209 {strides = array<i32>} : memref<144x324xf32, #tpu.memory_space<vmem>>, vector<8x36xf32>,
    %c0_277 = arith.constant 0 : index
    %c324_278 = arith.constant 324 : index
    %211 = vector.load %arg2[%c0_277, %c324_278] : memref<8x838xf32, #tpu.memory_space<vmem>>, vector<8x72xf32>
    %c0_279 = arith.constant 0 : index
    %c0_280 = arith.constant 0 : index
    %212 = vector.load %arg10[%c0_279, %c0_280] : memref<144x324xf32, #tpu.memory_space<vmem>>, vector<72x36xf32>
    %cst_281 = arith.constant dense<0.000000e+00> : vector<8x36xf32>
    %213 = tpu.matmul %211, %212, %cst_281 {dimension_numbers = #tpu.dot_dimension_numbers<[1], [0], [0], [1], [0, 0, 1, 1], [], []>} : vector<8x72xf32>, vector<72x36xf32>, vector<8x36xf32> -> vector<8x36xf32>
    %c0_282 = arith.constant 0 : index
    %c833 = arith.constant 833 : index
    %214 = vector.load %arg2[%c0_282, %c833] : memref<8x838xf32, #tpu.memory_space<vmem>>, vector<8x1xf32>
    %215 = vector.broadcast %214 : vector<8x1xf32> to vector<8x36xf32>
    %216 = arith.addf %213, %215 : vector<8x36xf32>
    %cst_283 = arith.constant 0.000000e+00 : f32
    %217 = vector.broadcast %cst_283 : f32 to vector<8x36xf32>
    %218 = arith.maximumf %216, %217 : vector<8x36xf32>
    %c0_284 = arith.constant 0 : index
    %c424_285 = arith.constant 424 : index
    %219 = vector.load %arg3[%c0_284, %c424_285] : memref<1x460xf32, #tpu.memory_space<vmem>>, vector<1x36xf32>
    %cst_286 = arith.constant 0.000000e+00 : f32
    %220 = vector.broadcast %cst_286 : f32 to vector<1x36xf32>
    %221 = arith.cmpf ogt, %219, %220 : vector<1x36xf32>
    %cst_287 = arith.constant 0.000000e+00 : f32
    %222 = vector.shape_cast %221 : vector<1x36xi1> to vector<1x36xi1>
    %223 = vector.broadcast %222 : vector<1x36xi1> to vector<8x36xi1>
    %224 = vector.broadcast %cst_287 : f32 to vector<8x36xf32>
    %225 = arith.select %223, %218, %224 : vector<8x36xi1>, vector<8x36xf32>
    %c0_288 = arith.constant 0 : index
    %c0_289 = arith.constant 0 : index
    %226 = vector.load %arg6[%c0_288, %c0_289] : memref<36x100xf32, #tpu.memory_space<vmem>>, vector<36x100xf32>
    %cst_290 = arith.constant dense<0.000000e+00> : vector<8x100xf32>
    %227 = tpu.matmul %225, %226, %cst_290 {dimension_numbers = #tpu.dot_dimension_numbers<[1], [0], [0], [1], [0, 0, 1, 1], [], []>} : vector<8x36xf32>, vector<36x100xf32>, vector<8x100xf32> -> vector<8x100xf32>
    %c0_291 = arith.constant 0 : index
    %c0_292 = arith.constant 0 : index
    %228 = vector.load %arg12[%c0_291, %c0_292] : memref<8x100xf32, #tpu.memory_space<vmem>>, vector<8x100xf32>
    %c0_293 = arith.constant 0 : index
    %c19_294 = arith.constant 19 : index
    %229 = vector.load %arg9[%c0_293, %c19_294] : memref<16x362xf32, #tpu.memory_space<vmem>>, vector<8x100xf32>
    tpu.vector_store %arg9[%c0_293, %c19_294], %227 {strides = array<i32>} : memref<16x362xf32, #tpu.memory_space<vmem>>, vector<8x100xf32>,
    %c8_295 = arith.constant 8 : index
    %c19_296 = arith.constant 19 : index
    %230 = vector.load %arg9[%c8_295, %c19_296] : memref<16x362xf32, #tpu.memory_space<vmem>>, vector<8x100xf32>
    tpu.vector_store %arg9[%c8_295, %c19_296], %228 {strides = array<i32>} : memref<16x362xf32, #tpu.memory_space<vmem>>, vector<8x100xf32>,
    %c0_297 = arith.constant 0 : index
    %c8_298 = arith.constant 8 : index
    %231 = vector.load %arg9[%c0_297, %c8_298] : memref<16x362xf32, #tpu.memory_space<vmem>>, vector<16x100xf32>
    %c0_299 = arith.constant 0 : index
    %c0_300 = arith.constant 0 : index
    %232 = vector.load %arg10[%c0_299, %c0_300] : memref<144x324xf32, #tpu.memory_space<vmem>>, vector<16x100xf32>
    tpu.vector_store %arg10[%c0_299, %c0_300], %231 {strides = array<i32>} : memref<144x324xf32, #tpu.memory_space<vmem>>, vector<16x100xf32>,
    %c0_301 = arith.constant 0 : index
    %c9_302 = arith.constant 9 : index
    %233 = vector.load %arg9[%c0_301, %c9_302] : memref<16x362xf32, #tpu.memory_space<vmem>>, vector<16x100xf32>
    %c16_303 = arith.constant 16 : index
    %c0_304 = arith.constant 0 : index
    %234 = vector.load %arg10[%c16_303, %c0_304] : memref<144x324xf32, #tpu.memory_space<vmem>>, vector<16x100xf32>
    tpu.vector_store %arg10[%c16_303, %c0_304], %233 {strides = array<i32>} : memref<144x324xf32, #tpu.memory_space<vmem>>, vector<16x100xf32>,
    %c0_305 = arith.constant 0 : index
    %c10_306 = arith.constant 10 : index
    %235 = vector.load %arg9[%c0_305, %c10_306] : memref<16x362xf32, #tpu.memory_space<vmem>>, vector<16x100xf32>
    %c32_307 = arith.constant 32 : index
    %c0_308 = arith.constant 0 : index
    %236 = vector.load %arg10[%c32_307, %c0_308] : memref<144x324xf32, #tpu.memory_space<vmem>>, vector<16x100xf32>
    tpu.vector_store %arg10[%c32_307, %c0_308], %235 {strides = array<i32>} : memref<144x324xf32, #tpu.memory_space<vmem>>, vector<16x100xf32>,
    %c0_309 = arith.constant 0 : index
    %c18_310 = arith.constant 18 : index
    %237 = vector.load %arg9[%c0_309, %c18_310] : memref<16x362xf32, #tpu.memory_space<vmem>>, vector<16x100xf32>
    %c48_311 = arith.constant 48 : index
    %c0_312 = arith.constant 0 : index
    %238 = vector.load %arg10[%c48_311, %c0_312] : memref<144x324xf32, #tpu.memory_space<vmem>>, vector<16x100xf32>
    tpu.vector_store %arg10[%c48_311, %c0_312], %237 {strides = array<i32>} : memref<144x324xf32, #tpu.memory_space<vmem>>, vector<16x100xf32>,
    %c0_313 = arith.constant 0 : index
    %c19_314 = arith.constant 19 : index
    %239 = vector.load %arg9[%c0_313, %c19_314] : memref<16x362xf32, #tpu.memory_space<vmem>>, vector<16x100xf32>
    %c64_315 = arith.constant 64 : index
    %c0_316 = arith.constant 0 : index
    %240 = vector.load %arg10[%c64_315, %c0_316] : memref<144x324xf32, #tpu.memory_space<vmem>>, vector<16x100xf32>
    tpu.vector_store %arg10[%c64_315, %c0_316], %239 {strides = array<i32>} : memref<144x324xf32, #tpu.memory_space<vmem>>, vector<16x100xf32>,
    %c0_317 = arith.constant 0 : index
    %c20_318 = arith.constant 20 : index
    %241 = vector.load %arg9[%c0_317, %c20_318] : memref<16x362xf32, #tpu.memory_space<vmem>>, vector<16x100xf32>
    %c80 = arith.constant 80 : index
    %c0_319 = arith.constant 0 : index
    %242 = vector.load %arg10[%c80, %c0_319] : memref<144x324xf32, #tpu.memory_space<vmem>>, vector<16x100xf32>
    tpu.vector_store %arg10[%c80, %c0_319], %241 {strides = array<i32>} : memref<144x324xf32, #tpu.memory_space<vmem>>, vector<16x100xf32>,
    %c0_320 = arith.constant 0 : index
    %c28_321 = arith.constant 28 : index
    %243 = vector.load %arg9[%c0_320, %c28_321] : memref<16x362xf32, #tpu.memory_space<vmem>>, vector<16x100xf32>
    %c96 = arith.constant 96 : index
    %c0_322 = arith.constant 0 : index
    %244 = vector.load %arg10[%c96, %c0_322] : memref<144x324xf32, #tpu.memory_space<vmem>>, vector<16x100xf32>
    tpu.vector_store %arg10[%c96, %c0_322], %243 {strides = array<i32>} : memref<144x324xf32, #tpu.memory_space<vmem>>, vector<16x100xf32>,
    %c0_323 = arith.constant 0 : index
    %c29_324 = arith.constant 29 : index
    %245 = vector.load %arg9[%c0_323, %c29_324] : memref<16x362xf32, #tpu.memory_space<vmem>>, vector<16x100xf32>
    %c112 = arith.constant 112 : index
    %c0_325 = arith.constant 0 : index
    %246 = vector.load %arg10[%c112, %c0_325] : memref<144x324xf32, #tpu.memory_space<vmem>>, vector<16x100xf32>
    tpu.vector_store %arg10[%c112, %c0_325], %245 {strides = array<i32>} : memref<144x324xf32, #tpu.memory_space<vmem>>, vector<16x100xf32>,
    %c0_326 = arith.constant 0 : index
    %c30_327 = arith.constant 30 : index
    %247 = vector.load %arg9[%c0_326, %c30_327] : memref<16x362xf32, #tpu.memory_space<vmem>>, vector<16x100xf32>
    %c128 = arith.constant 128 : index
    %c0_328 = arith.constant 0 : index
    %248 = vector.load %arg10[%c128, %c0_328] : memref<144x324xf32, #tpu.memory_space<vmem>>, vector<16x100xf32>
    tpu.vector_store %arg10[%c128, %c0_328], %247 {strides = array<i32>} : memref<144x324xf32, #tpu.memory_space<vmem>>, vector<16x100xf32>,
    %c0_329 = arith.constant 0 : index
    %c396 = arith.constant 396 : index
    %249 = vector.load %arg2[%c0_329, %c396] : memref<8x838xf32, #tpu.memory_space<vmem>>, vector<8x144xf32>
    %c0_330 = arith.constant 0 : index
    %c0_331 = arith.constant 0 : index
    %250 = vector.load %arg10[%c0_330, %c0_331] : memref<144x324xf32, #tpu.memory_space<vmem>>, vector<144x100xf32>
    %cst_332 = arith.constant dense<0.000000e+00> : vector<8x100xf32>
    %251 = tpu.matmul %249, %250, %cst_332 {dimension_numbers = #tpu.dot_dimension_numbers<[1], [0], [0], [1], [0, 0, 1, 1], [], []>} : vector<8x144xf32>, vector<144x100xf32>, vector<8x100xf32> -> vector<8x100xf32>
    %c0_333 = arith.constant 0 : index
    %c834 = arith.constant 834 : index
    %252 = vector.load %arg2[%c0_333, %c834] : memref<8x838xf32, #tpu.memory_space<vmem>>, vector<8x1xf32>
    %253 = vector.broadcast %252 : vector<8x1xf32> to vector<8x100xf32>
    %254 = arith.addf %251, %253 : vector<8x100xf32>
    %cst_334 = arith.constant 0.000000e+00 : f32
    %255 = vector.broadcast %cst_334 : f32 to vector<8x100xf32>
    %256 = arith.maximumf %254, %255 : vector<8x100xf32>
    %c0_335 = arith.constant 0 : index
    %c324_336 = arith.constant 324 : index
    %257 = vector.load %arg3[%c0_335, %c324_336] : memref<1x460xf32, #tpu.memory_space<vmem>>, vector<1x100xf32>
    %cst_337 = arith.constant 0.000000e+00 : f32
    %258 = vector.broadcast %cst_337 : f32 to vector<1x100xf32>
    %259 = arith.cmpf ogt, %257, %258 : vector<1x100xf32>
    %cst_338 = arith.constant 0.000000e+00 : f32
    %260 = vector.shape_cast %259 : vector<1x100xi1> to vector<1x100xi1>
    %261 = vector.broadcast %260 : vector<1x100xi1> to vector<8x100xi1>
    %262 = vector.broadcast %cst_338 : f32 to vector<8x100xf32>
    %263 = arith.select %261, %256, %262 : vector<8x100xi1>, vector<8x100xf32>
    %c0_339 = arith.constant 0 : index
    %c19_340 = arith.constant 19 : index
    %264 = vector.load %arg9[%c0_339, %c19_340] : memref<16x362xf32, #tpu.memory_space<vmem>>, vector<8x100xf32>
    tpu.vector_store %arg9[%c0_339, %c19_340], %263 {strides = array<i32>} : memref<16x362xf32, #tpu.memory_space<vmem>>, vector<8x100xf32>,
    %c0_341 = arith.constant 0 : index
    %c8_342 = arith.constant 8 : index
    %265 = vector.load %arg9[%c0_341, %c8_342] : memref<16x362xf32, #tpu.memory_space<vmem>>, vector<8x100xf32>
    %c0_343 = arith.constant 0 : index
    %c0_344 = arith.constant 0 : index
    %266 = vector.load %arg10[%c0_343, %c0_344] : memref<144x324xf32, #tpu.memory_space<vmem>>, vector<8x100xf32>
    tpu.vector_store %arg10[%c0_343, %c0_344], %265 {strides = array<i32>} : memref<144x324xf32, #tpu.memory_space<vmem>>, vector<8x100xf32>,
    %c0_345 = arith.constant 0 : index
    %c9_346 = arith.constant 9 : index
    %267 = vector.load %arg9[%c0_345, %c9_346] : memref<16x362xf32, #tpu.memory_space<vmem>>, vector<8x100xf32>
    %c8_347 = arith.constant 8 : index
    %c0_348 = arith.constant 0 : index
    %268 = vector.load %arg10[%c8_347, %c0_348] : memref<144x324xf32, #tpu.memory_space<vmem>>, vector<8x100xf32>
    tpu.vector_store %arg10[%c8_347, %c0_348], %267 {strides = array<i32>} : memref<144x324xf32, #tpu.memory_space<vmem>>, vector<8x100xf32>,
    %c0_349 = arith.constant 0 : index
    %c10_350 = arith.constant 10 : index
    %269 = vector.load %arg9[%c0_349, %c10_350] : memref<16x362xf32, #tpu.memory_space<vmem>>, vector<8x100xf32>
    %c16_351 = arith.constant 16 : index
    %c0_352 = arith.constant 0 : index
    %270 = vector.load %arg10[%c16_351, %c0_352] : memref<144x324xf32, #tpu.memory_space<vmem>>, vector<8x100xf32>
    tpu.vector_store %arg10[%c16_351, %c0_352], %269 {strides = array<i32>} : memref<144x324xf32, #tpu.memory_space<vmem>>, vector<8x100xf32>,
    %c0_353 = arith.constant 0 : index
    %c18_354 = arith.constant 18 : index
    %271 = vector.load %arg9[%c0_353, %c18_354] : memref<16x362xf32, #tpu.memory_space<vmem>>, vector<8x100xf32>
    %c24_355 = arith.constant 24 : index
    %c0_356 = arith.constant 0 : index
    %272 = vector.load %arg10[%c24_355, %c0_356] : memref<144x324xf32, #tpu.memory_space<vmem>>, vector<8x100xf32>
    tpu.vector_store %arg10[%c24_355, %c0_356], %271 {strides = array<i32>} : memref<144x324xf32, #tpu.memory_space<vmem>>, vector<8x100xf32>,
    %c0_357 = arith.constant 0 : index
    %c19_358 = arith.constant 19 : index
    %273 = vector.load %arg9[%c0_357, %c19_358] : memref<16x362xf32, #tpu.memory_space<vmem>>, vector<8x100xf32>
    %c32_359 = arith.constant 32 : index
    %c0_360 = arith.constant 0 : index
    %274 = vector.load %arg10[%c32_359, %c0_360] : memref<144x324xf32, #tpu.memory_space<vmem>>, vector<8x100xf32>
    tpu.vector_store %arg10[%c32_359, %c0_360], %273 {strides = array<i32>} : memref<144x324xf32, #tpu.memory_space<vmem>>, vector<8x100xf32>,
    %c0_361 = arith.constant 0 : index
    %c20_362 = arith.constant 20 : index
    %275 = vector.load %arg9[%c0_361, %c20_362] : memref<16x362xf32, #tpu.memory_space<vmem>>, vector<8x100xf32>
    %c40_363 = arith.constant 40 : index
    %c0_364 = arith.constant 0 : index
    %276 = vector.load %arg10[%c40_363, %c0_364] : memref<144x324xf32, #tpu.memory_space<vmem>>, vector<8x100xf32>
    tpu.vector_store %arg10[%c40_363, %c0_364], %275 {strides = array<i32>} : memref<144x324xf32, #tpu.memory_space<vmem>>, vector<8x100xf32>,
    %c0_365 = arith.constant 0 : index
    %c28_366 = arith.constant 28 : index
    %277 = vector.load %arg9[%c0_365, %c28_366] : memref<16x362xf32, #tpu.memory_space<vmem>>, vector<8x100xf32>
    %c48_367 = arith.constant 48 : index
    %c0_368 = arith.constant 0 : index
    %278 = vector.load %arg10[%c48_367, %c0_368] : memref<144x324xf32, #tpu.memory_space<vmem>>, vector<8x100xf32>
    tpu.vector_store %arg10[%c48_367, %c0_368], %277 {strides = array<i32>} : memref<144x324xf32, #tpu.memory_space<vmem>>, vector<8x100xf32>,
    %c0_369 = arith.constant 0 : index
    %c29_370 = arith.constant 29 : index
    %279 = vector.load %arg9[%c0_369, %c29_370] : memref<16x362xf32, #tpu.memory_space<vmem>>, vector<8x100xf32>
    %c56_371 = arith.constant 56 : index
    %c0_372 = arith.constant 0 : index
    %280 = vector.load %arg10[%c56_371, %c0_372] : memref<144x324xf32, #tpu.memory_space<vmem>>, vector<8x100xf32>
    tpu.vector_store %arg10[%c56_371, %c0_372], %279 {strides = array<i32>} : memref<144x324xf32, #tpu.memory_space<vmem>>, vector<8x100xf32>,
    %c0_373 = arith.constant 0 : index
    %c30_374 = arith.constant 30 : index
    %281 = vector.load %arg9[%c0_373, %c30_374] : memref<16x362xf32, #tpu.memory_space<vmem>>, vector<8x100xf32>
    %c64_375 = arith.constant 64 : index
    %c0_376 = arith.constant 0 : index
    %282 = vector.load %arg10[%c64_375, %c0_376] : memref<144x324xf32, #tpu.memory_space<vmem>>, vector<8x100xf32>
    tpu.vector_store %arg10[%c64_375, %c0_376], %281 {strides = array<i32>} : memref<144x324xf32, #tpu.memory_space<vmem>>, vector<8x100xf32>,
    %c0_377 = arith.constant 0 : index
    %c540 = arith.constant 540 : index
    %283 = vector.load %arg2[%c0_377, %c540] : memref<8x838xf32, #tpu.memory_space<vmem>>, vector<8x72xf32>
    %c0_378 = arith.constant 0 : index
    %c0_379 = arith.constant 0 : index
    %284 = vector.load %arg10[%c0_378, %c0_379] : memref<144x324xf32, #tpu.memory_space<vmem>>, vector<72x100xf32>
    %cst_380 = arith.constant dense<0.000000e+00> : vector<8x100xf32>
    %285 = tpu.matmul %283, %284, %cst_380 {dimension_numbers = #tpu.dot_dimension_numbers<[1], [0], [0], [1], [0, 0, 1, 1], [], []>} : vector<8x72xf32>, vector<72x100xf32>, vector<8x100xf32> -> vector<8x100xf32>
    %c0_381 = arith.constant 0 : index
    %c835 = arith.constant 835 : index
    %286 = vector.load %arg2[%c0_381, %c835] : memref<8x838xf32, #tpu.memory_space<vmem>>, vector<8x1xf32>
    %287 = vector.broadcast %286 : vector<8x1xf32> to vector<8x100xf32>
    %288 = arith.addf %285, %287 : vector<8x100xf32>
    %cst_382 = arith.constant 0.000000e+00 : f32
    %289 = vector.broadcast %cst_382 : f32 to vector<8x100xf32>
    %290 = arith.maximumf %288, %289 : vector<8x100xf32>
    %c0_383 = arith.constant 0 : index
    %c324_384 = arith.constant 324 : index
    %291 = vector.load %arg3[%c0_383, %c324_384] : memref<1x460xf32, #tpu.memory_space<vmem>>, vector<1x100xf32>
    %cst_385 = arith.constant 0.000000e+00 : f32
    %292 = vector.broadcast %cst_385 : f32 to vector<1x100xf32>
    %293 = arith.cmpf ogt, %291, %292 : vector<1x100xf32>
    %cst_386 = arith.constant 0.000000e+00 : f32
    %294 = vector.shape_cast %293 : vector<1x100xi1> to vector<1x100xi1>
    %295 = vector.broadcast %294 : vector<1x100xi1> to vector<8x100xi1>
    %296 = vector.broadcast %cst_386 : f32 to vector<8x100xf32>
    %297 = arith.select %295, %290, %296 : vector<8x100xi1>, vector<8x100xf32>
    %c0_387 = arith.constant 0 : index
    %c0_388 = arith.constant 0 : index
    %298 = vector.load %arg7[%c0_387, %c0_388] : memref<100x324xf32, #tpu.memory_space<vmem>>, vector<100x324xf32>
    %cst_389 = arith.constant dense<0.000000e+00> : vector<8x324xf32>
    %299 = tpu.matmul %297, %298, %cst_389 {dimension_numbers = #tpu.dot_dimension_numbers<[1], [0], [0], [1], [0, 0, 1, 1], [], []>} : vector<8x100xf32>, vector<100x324xf32>, vector<8x324xf32> -> vector<8x324xf32>
    %c0_390 = arith.constant 0 : index
    %c0_391 = arith.constant 0 : index
    %300 = vector.load %arg11[%c0_390, %c0_391] : memref<8x324xf32, #tpu.memory_space<vmem>>, vector<8x324xf32>
    %c0_392 = arith.constant 0 : index
    %c19_393 = arith.constant 19 : index
    %301 = vector.load %arg9[%c0_392, %c19_393] : memref<16x362xf32, #tpu.memory_space<vmem>>, vector<8x324xf32>
    tpu.vector_store %arg9[%c0_392, %c19_393], %299 {strides = array<i32>} : memref<16x362xf32, #tpu.memory_space<vmem>>, vector<8x324xf32>,
    %c8_394 = arith.constant 8 : index
    %c19_395 = arith.constant 19 : index
    %302 = vector.load %arg9[%c8_394, %c19_395] : memref<16x362xf32, #tpu.memory_space<vmem>>, vector<8x324xf32>
    tpu.vector_store %arg9[%c8_394, %c19_395], %300 {strides = array<i32>} : memref<16x362xf32, #tpu.memory_space<vmem>>, vector<8x324xf32>,
    %c0_396 = arith.constant 0 : index
    %c0_397 = arith.constant 0 : index
    %303 = vector.load %arg9[%c0_396, %c0_397] : memref<16x362xf32, #tpu.memory_space<vmem>>, vector<16x324xf32>
    %c0_398 = arith.constant 0 : index
    %c0_399 = arith.constant 0 : index
    %304 = vector.load %arg10[%c0_398, %c0_399] : memref<144x324xf32, #tpu.memory_space<vmem>>, vector<16x324xf32>
    tpu.vector_store %arg10[%c0_398, %c0_399], %303 {strides = array<i32>} : memref<144x324xf32, #tpu.memory_space<vmem>>, vector<16x324xf32>,
    %c0_400 = arith.constant 0 : index
    %c1_401 = arith.constant 1 : index
    %305 = vector.load %arg9[%c0_400, %c1_401] : memref<16x362xf32, #tpu.memory_space<vmem>>, vector<16x324xf32>
    %c16_402 = arith.constant 16 : index
    %c0_403 = arith.constant 0 : index
    %306 = vector.load %arg10[%c16_402, %c0_403] : memref<144x324xf32, #tpu.memory_space<vmem>>, vector<16x324xf32>
    tpu.vector_store %arg10[%c16_402, %c0_403], %305 {strides = array<i32>} : memref<144x324xf32, #tpu.memory_space<vmem>>, vector<16x324xf32>,
    %c0_404 = arith.constant 0 : index
    %c2_405 = arith.constant 2 : index
    %307 = vector.load %arg9[%c0_404, %c2_405] : memref<16x362xf32, #tpu.memory_space<vmem>>, vector<16x324xf32>
    %c32_406 = arith.constant 32 : index
    %c0_407 = arith.constant 0 : index
    %308 = vector.load %arg10[%c32_406, %c0_407] : memref<144x324xf32, #tpu.memory_space<vmem>>, vector<16x324xf32>
    tpu.vector_store %arg10[%c32_406, %c0_407], %307 {strides = array<i32>} : memref<144x324xf32, #tpu.memory_space<vmem>>, vector<16x324xf32>,
    %c0_408 = arith.constant 0 : index
    %c18_409 = arith.constant 18 : index
    %309 = vector.load %arg9[%c0_408, %c18_409] : memref<16x362xf32, #tpu.memory_space<vmem>>, vector<16x324xf32>
    %c48_410 = arith.constant 48 : index
    %c0_411 = arith.constant 0 : index
    %310 = vector.load %arg10[%c48_410, %c0_411] : memref<144x324xf32, #tpu.memory_space<vmem>>, vector<16x324xf32>
    tpu.vector_store %arg10[%c48_410, %c0_411], %309 {strides = array<i32>} : memref<144x324xf32, #tpu.memory_space<vmem>>, vector<16x324xf32>,
    %c0_412 = arith.constant 0 : index
    %c19_413 = arith.constant 19 : index
    %311 = vector.load %arg9[%c0_412, %c19_413] : memref<16x362xf32, #tpu.memory_space<vmem>>, vector<16x324xf32>
    %c64_414 = arith.constant 64 : index
    %c0_415 = arith.constant 0 : index
    %312 = vector.load %arg10[%c64_414, %c0_415] : memref<144x324xf32, #tpu.memory_space<vmem>>, vector<16x324xf32>
    tpu.vector_store %arg10[%c64_414, %c0_415], %311 {strides = array<i32>} : memref<144x324xf32, #tpu.memory_space<vmem>>, vector<16x324xf32>,
    %c0_416 = arith.constant 0 : index
    %c20_417 = arith.constant 20 : index
    %313 = vector.load %arg9[%c0_416, %c20_417] : memref<16x362xf32, #tpu.memory_space<vmem>>, vector<16x324xf32>
    %c80_418 = arith.constant 80 : index
    %c0_419 = arith.constant 0 : index
    %314 = vector.load %arg10[%c80_418, %c0_419] : memref<144x324xf32, #tpu.memory_space<vmem>>, vector<16x324xf32>
    tpu.vector_store %arg10[%c80_418, %c0_419], %313 {strides = array<i32>} : memref<144x324xf32, #tpu.memory_space<vmem>>, vector<16x324xf32>,
    %c0_420 = arith.constant 0 : index
    %c36_421 = arith.constant 36 : index
    %315 = vector.load %arg9[%c0_420, %c36_421] : memref<16x362xf32, #tpu.memory_space<vmem>>, vector<16x324xf32>
    %c96_422 = arith.constant 96 : index
    %c0_423 = arith.constant 0 : index
    %316 = vector.load %arg10[%c96_422, %c0_423] : memref<144x324xf32, #tpu.memory_space<vmem>>, vector<16x324xf32>
    tpu.vector_store %arg10[%c96_422, %c0_423], %315 {strides = array<i32>} : memref<144x324xf32, #tpu.memory_space<vmem>>, vector<16x324xf32>,
    %c0_424 = arith.constant 0 : index
    %c37_425 = arith.constant 37 : index
    %317 = vector.load %arg9[%c0_424, %c37_425] : memref<16x362xf32, #tpu.memory_space<vmem>>, vector<16x324xf32>
    %c112_426 = arith.constant 112 : index
    %c0_427 = arith.constant 0 : index
    %318 = vector.load %arg10[%c112_426, %c0_427] : memref<144x324xf32, #tpu.memory_space<vmem>>, vector<16x324xf32>
    tpu.vector_store %arg10[%c112_426, %c0_427], %317 {strides = array<i32>} : memref<144x324xf32, #tpu.memory_space<vmem>>, vector<16x324xf32>,
    %c0_428 = arith.constant 0 : index
    %c38_429 = arith.constant 38 : index
    %319 = vector.load %arg9[%c0_428, %c38_429] : memref<16x362xf32, #tpu.memory_space<vmem>>, vector<16x324xf32>
    %c128_430 = arith.constant 128 : index
    %c0_431 = arith.constant 0 : index
    %320 = vector.load %arg10[%c128_430, %c0_431] : memref<144x324xf32, #tpu.memory_space<vmem>>, vector<16x324xf32>
    tpu.vector_store %arg10[%c128_430, %c0_431], %319 {strides = array<i32>} : memref<144x324xf32, #tpu.memory_space<vmem>>, vector<16x324xf32>,
    %c0_432 = arith.constant 0 : index
    %c612 = arith.constant 612 : index
    %321 = vector.load %arg2[%c0_432, %c612] : memref<8x838xf32, #tpu.memory_space<vmem>>, vector<8x144xf32>
    %c0_433 = arith.constant 0 : index
    %c0_434 = arith.constant 0 : index
    %322 = vector.load %arg10[%c0_433, %c0_434] : memref<144x324xf32, #tpu.memory_space<vmem>>, vector<144x324xf32>
    %cst_435 = arith.constant dense<0.000000e+00> : vector<8x324xf32>
    %323 = tpu.matmul %321, %322, %cst_435 {dimension_numbers = #tpu.dot_dimension_numbers<[1], [0], [0], [1], [0, 0, 1, 1], [], []>} : vector<8x144xf32>, vector<144x324xf32>, vector<8x324xf32> -> vector<8x324xf32>
    %c0_436 = arith.constant 0 : index
    %c836 = arith.constant 836 : index
    %324 = vector.load %arg2[%c0_436, %c836] : memref<8x838xf32, #tpu.memory_space<vmem>>, vector<8x1xf32>
    %325 = vector.broadcast %324 : vector<8x1xf32> to vector<8x324xf32>
    %326 = arith.addf %323, %325 : vector<8x324xf32>
    %cst_437 = arith.constant 0.000000e+00 : f32
    %327 = vector.broadcast %cst_437 : f32 to vector<8x324xf32>
    %328 = arith.maximumf %326, %327 : vector<8x324xf32>
    %c0_438 = arith.constant 0 : index
    %c0_439 = arith.constant 0 : index
    %329 = vector.load %arg3[%c0_438, %c0_439] : memref<1x460xf32, #tpu.memory_space<vmem>>, vector<1x324xf32>
    %cst_440 = arith.constant 0.000000e+00 : f32
    %330 = vector.broadcast %cst_440 : f32 to vector<1x324xf32>
    %331 = arith.cmpf ogt, %329, %330 : vector<1x324xf32>
    %cst_441 = arith.constant 0.000000e+00 : f32
    %332 = vector.shape_cast %331 : vector<1x324xi1> to vector<1x324xi1>
    %333 = vector.broadcast %332 : vector<1x324xi1> to vector<8x324xi1>
    %334 = vector.broadcast %cst_441 : f32 to vector<8x324xf32>
    %335 = arith.select %333, %328, %334 : vector<8x324xi1>, vector<8x324xf32>
    %c0_442 = arith.constant 0 : index
    %c19_443 = arith.constant 19 : index
    %336 = vector.load %arg9[%c0_442, %c19_443] : memref<16x362xf32, #tpu.memory_space<vmem>>, vector<8x324xf32>
    tpu.vector_store %arg9[%c0_442, %c19_443], %335 {strides = array<i32>} : memref<16x362xf32, #tpu.memory_space<vmem>>, vector<8x324xf32>,
    %c0_444 = arith.constant 0 : index
    %c0_445 = arith.constant 0 : index
    %337 = vector.load %arg9[%c0_444, %c0_445] : memref<16x362xf32, #tpu.memory_space<vmem>>, vector<8x324xf32>
    %c0_446 = arith.constant 0 : index
    %c0_447 = arith.constant 0 : index
    %338 = vector.load %arg10[%c0_446, %c0_447] : memref<144x324xf32, #tpu.memory_space<vmem>>, vector<8x324xf32>
    tpu.vector_store %arg10[%c0_446, %c0_447], %337 {strides = array<i32>} : memref<144x324xf32, #tpu.memory_space<vmem>>, vector<8x324xf32>,
    %c0_448 = arith.constant 0 : index
    %c1_449 = arith.constant 1 : index
    %339 = vector.load %arg9[%c0_448, %c1_449] : memref<16x362xf32, #tpu.memory_space<vmem>>, vector<8x324xf32>
    %c8_450 = arith.constant 8 : index
    %c0_451 = arith.constant 0 : index
    %340 = vector.load %arg10[%c8_450, %c0_451] : memref<144x324xf32, #tpu.memory_space<vmem>>, vector<8x324xf32>
    tpu.vector_store %arg10[%c8_450, %c0_451], %339 {strides = array<i32>} : memref<144x324xf32, #tpu.memory_space<vmem>>, vector<8x324xf32>,
    %c0_452 = arith.constant 0 : index
    %c2_453 = arith.constant 2 : index
    %341 = vector.load %arg9[%c0_452, %c2_453] : memref<16x362xf32, #tpu.memory_space<vmem>>, vector<8x324xf32>
    %c16_454 = arith.constant 16 : index
    %c0_455 = arith.constant 0 : index
    %342 = vector.load %arg10[%c16_454, %c0_455] : memref<144x324xf32, #tpu.memory_space<vmem>>, vector<8x324xf32>
    tpu.vector_store %arg10[%c16_454, %c0_455], %341 {strides = array<i32>} : memref<144x324xf32, #tpu.memory_space<vmem>>, vector<8x324xf32>,
    %c0_456 = arith.constant 0 : index
    %c18_457 = arith.constant 18 : index
    %343 = vector.load %arg9[%c0_456, %c18_457] : memref<16x362xf32, #tpu.memory_space<vmem>>, vector<8x324xf32>
    %c24_458 = arith.constant 24 : index
    %c0_459 = arith.constant 0 : index
    %344 = vector.load %arg10[%c24_458, %c0_459] : memref<144x324xf32, #tpu.memory_space<vmem>>, vector<8x324xf32>
    tpu.vector_store %arg10[%c24_458, %c0_459], %343 {strides = array<i32>} : memref<144x324xf32, #tpu.memory_space<vmem>>, vector<8x324xf32>,
    %c0_460 = arith.constant 0 : index
    %c19_461 = arith.constant 19 : index
    %345 = vector.load %arg9[%c0_460, %c19_461] : memref<16x362xf32, #tpu.memory_space<vmem>>, vector<8x324xf32>
    %c32_462 = arith.constant 32 : index
    %c0_463 = arith.constant 0 : index
    %346 = vector.load %arg10[%c32_462, %c0_463] : memref<144x324xf32, #tpu.memory_space<vmem>>, vector<8x324xf32>
    tpu.vector_store %arg10[%c32_462, %c0_463], %345 {strides = array<i32>} : memref<144x324xf32, #tpu.memory_space<vmem>>, vector<8x324xf32>,
    %c0_464 = arith.constant 0 : index
    %c20_465 = arith.constant 20 : index
    %347 = vector.load %arg9[%c0_464, %c20_465] : memref<16x362xf32, #tpu.memory_space<vmem>>, vector<8x324xf32>
    %c40_466 = arith.constant 40 : index
    %c0_467 = arith.constant 0 : index
    %348 = vector.load %arg10[%c40_466, %c0_467] : memref<144x324xf32, #tpu.memory_space<vmem>>, vector<8x324xf32>
    tpu.vector_store %arg10[%c40_466, %c0_467], %347 {strides = array<i32>} : memref<144x324xf32, #tpu.memory_space<vmem>>, vector<8x324xf32>,
    %c0_468 = arith.constant 0 : index
    %c36_469 = arith.constant 36 : index
    %349 = vector.load %arg9[%c0_468, %c36_469] : memref<16x362xf32, #tpu.memory_space<vmem>>, vector<8x324xf32>
    %c48_470 = arith.constant 48 : index
    %c0_471 = arith.constant 0 : index
    %350 = vector.load %arg10[%c48_470, %c0_471] : memref<144x324xf32, #tpu.memory_space<vmem>>, vector<8x324xf32>
    tpu.vector_store %arg10[%c48_470, %c0_471], %349 {strides = array<i32>} : memref<144x324xf32, #tpu.memory_space<vmem>>, vector<8x324xf32>,
    %c0_472 = arith.constant 0 : index
    %c37_473 = arith.constant 37 : index
    %351 = vector.load %arg9[%c0_472, %c37_473] : memref<16x362xf32, #tpu.memory_space<vmem>>, vector<8x324xf32>
    %c56_474 = arith.constant 56 : index
    %c0_475 = arith.constant 0 : index
    %352 = vector.load %arg10[%c56_474, %c0_475] : memref<144x324xf32, #tpu.memory_space<vmem>>, vector<8x324xf32>
    tpu.vector_store %arg10[%c56_474, %c0_475], %351 {strides = array<i32>} : memref<144x324xf32, #tpu.memory_space<vmem>>, vector<8x324xf32>,
    %c0_476 = arith.constant 0 : index
    %c38_477 = arith.constant 38 : index
    %353 = vector.load %arg9[%c0_476, %c38_477] : memref<16x362xf32, #tpu.memory_space<vmem>>, vector<8x324xf32>
    %c64_478 = arith.constant 64 : index
    %c0_479 = arith.constant 0 : index
    %354 = vector.load %arg10[%c64_478, %c0_479] : memref<144x324xf32, #tpu.memory_space<vmem>>, vector<8x324xf32>
    tpu.vector_store %arg10[%c64_478, %c0_479], %353 {strides = array<i32>} : memref<144x324xf32, #tpu.memory_space<vmem>>, vector<8x324xf32>,
    %c0_480 = arith.constant 0 : index
    %c756 = arith.constant 756 : index
    %355 = vector.load %arg2[%c0_480, %c756] : memref<8x838xf32, #tpu.memory_space<vmem>>, vector<4x72xf32>
    %c0_481 = arith.constant 0 : index
    %c0_482 = arith.constant 0 : index
    %356 = vector.load %arg10[%c0_481, %c0_482] : memref<144x324xf32, #tpu.memory_space<vmem>>, vector<72x324xf32>
    %cst_483 = arith.constant dense<0.000000e+00> : vector<4x324xf32>
    %357 = tpu.matmul %355, %356, %cst_483 {dimension_numbers = #tpu.dot_dimension_numbers<[1], [0], [0], [1], [0, 0, 1, 1], [], []>} : vector<4x72xf32>, vector<72x324xf32>, vector<4x324xf32> -> vector<4x324xf32>
    %c0_484 = arith.constant 0 : index
    %c837 = arith.constant 837 : index
    %358 = vector.load %arg2[%c0_484, %c837] : memref<8x838xf32, #tpu.memory_space<vmem>>, vector<4x1xf32>
    %359 = vector.broadcast %358 : vector<4x1xf32> to vector<4x324xf32>
    %360 = arith.addf %357, %359 : vector<4x324xf32>
    %c0_485 = arith.constant 0 : index
    %c0_486 = arith.constant 0 : index
    %361 = vector.load %arg3[%c0_485, %c0_486] : memref<1x460xf32, #tpu.memory_space<vmem>>, vector<1x324xf32>
    %cst_487 = arith.constant 0.000000e+00 : f32
    %362 = vector.broadcast %cst_487 : f32 to vector<1x324xf32>
    %363 = arith.cmpf ogt, %361, %362 : vector<1x324xf32>
    %cst_488 = arith.constant 0.000000e+00 : f32
    %364 = vector.shape_cast %363 : vector<1x324xi1> to vector<1x324xi1>
    %365 = vector.broadcast %364 : vector<1x324xi1> to vector<4x324xi1>
    %366 = vector.broadcast %cst_488 : f32 to vector<4x324xf32>
    %367 = arith.select %365, %360, %366 : vector<4x324xi1>, vector<4x324xf32>
    %c0_489 = arith.constant 0 : index
    %c0_490 = arith.constant 0 : index
    %c0_491 = arith.constant 0 : index
    %368 = vector.load %arg8[%c0_489, %c0_490, %c0_491] : memref<1x4x324xf32, #tpu.memory_space<vmem>>, vector<1x4x324xf32>
    %369 = vector.shape_cast %368 : vector<1x4x324xf32> to vector<4x324xf32>
    %370 = vector.shape_cast %367 : vector<4x324xf32> to vector<1x4x324xf32>
    tpu.vector_store %arg8[%c0_489, %c0_490, %c0_491], %370 {strides = array<i32>} : memref<1x4x324xf32, #tpu.memory_space<vmem>>, vector<1x4x324xf32>,
    return
  }
  func.func @transform_0(%arg0: i32) -> (i32, i32, i32) {
    %c0_i32 = arith.constant 0 : i32
    %c0_i32_0 = arith.constant 0 : i32
    %c0_i32_1 = arith.constant 0 : i32
    return %arg0, %c0_i32, %c0_i32_0 : i32, i32, i32
  }
  func.func @transform_1(%arg0: i32) -> (i32, i32) {
    %c0_i32 = arith.constant 0 : i32
    %c0_i32_0 = arith.constant 0 : i32
    %c0_i32_1 = arith.constant 0 : i32
    return %c0_i32, %c0_i32_0 : i32, i32
  }
  func.func @transform_2(%arg0: i32) -> (i32, i32) {
    %c0_i32 = arith.constant 0 : i32
    %c0_i32_0 = arith.constant 0 : i32
    %c0_i32_1 = arith.constant 0 : i32
    return %c0_i32, %c0_i32_0 : i32, i32
  }
  func.func @transform_3(%arg0: i32) -> (i32, i32) {
    %c0_i32 = arith.constant 0 : i32
    %c0_i32_0 = arith.constant 0 : i32
    %c0_i32_1 = arith.constant 0 : i32
    return %c0_i32, %c0_i32_0 : i32, i32
  }
  func.func @transform_4(%arg0: i32) -> (i32, i32) {
    %c0_i32 = arith.constant 0 : i32
    %c0_i32_0 = arith.constant 0 : i32
    %c0_i32_1 = arith.constant 0 : i32
    return %c0_i32, %c0_i32_0 : i32, i32
  }
  func.func @transform_5(%arg0: i32) -> (i32, i32) {
    %c0_i32 = arith.constant 0 : i32
    %c0_i32_0 = arith.constant 0 : i32
    %c0_i32_1 = arith.constant 0 : i32
    return %c0_i32, %c0_i32_0 : i32, i32
  }
  func.func @transform_6(%arg0: i32) -> (i32, i32) {
    %c0_i32 = arith.constant 0 : i32
    %c0_i32_0 = arith.constant 0 : i32
    %c0_i32_1 = arith.constant 0 : i32
    return %c0_i32, %c0_i32_0 : i32, i32
  }
  func.func @transform_7(%arg0: i32) -> (i32, i32, i32) {
    %c0_i32 = arith.constant 0 : i32
    %c0_i32_0 = arith.constant 0 : i32
    %c0_i32_1 = arith.constant 0 : i32
    return %arg0, %c0_i32, %c0_i32_0 : i32, i32, i32
  }
}

</mosaic_0001>

<bundles_post_ra>
// kernel: unet_forward.1
= control target key start
LH: loop header
LB: loop body
LE: loop exit
PB: predicated region body
PF: predicated region fallthrough
CT: control target
= control target key end

     0   :  { %s4857_s24 = smov 0   ;;  %s6096_s0 = inlined_call_operand.vmem [shape: f32[2,4,324], index: 0, kind: input, shape index: {}]   ;;  %s6097_s1 = inlined_call_operand.vmem [shape: f32[8,838], index: 1, kind: input, shape index: {}]   ;;  %s6098_s2 = inlined_call_operand.vmem [shape: f32[1,460], index: 2, kind: input, shape index: {}]   ;;  %s6099_s3 = inlined_call_operand.vmem [shape: f32[305,100], index: 3, kind: input, shape index: {}]   ;;  %s6100_s4 = inlined_call_operand.vmem [shape: f32[89,36], index: 4, kind: input, shape index: {}]   ;;  %s6101_s5 = inlined_call_operand.vmem [shape: f32[36,100], index: 5, kind: input, shape index: {}]   ;;  %s6102_s6 = inlined_call_operand.vmem [shape: f32[100,324], index: 6, kind: input, shape index: {}]   ;;  %s6103_s7 = inlined_call_operand.vmem [shape: f32[2,4,324], index: 7, kind: output, shape index: {}]  }
   0x1 LB: > { %s3921_s25 = sadd.s32 4294967295, %s4768_s24   ;;  %p3925_p0 = scmp.ge.s32.totalorder %s4768_s24, 1  ;;  %s4768_s24 = sphi %s4857_s24, %s17_s24  }
   0x2   : > { %p237_p1 = scmp.lt.s32.totalorder %s4768_s24, 3 }
   0x4   : > { %p238_p2 = pnand %p3925_p0, %p237_p1 }
   0x5   : > { %p269_p3 = scmp.lt.s32.totalorder (!%p238_p2), %s3921_s25, 1  ;;  %s4770_s30 = smov (!%p238_p2), 19   ;;  %vm296_vm0 = vcmask (!%p238_p2), 1043608   ;;  %vm290_vm1 = vcmask (!%p238_p2), 154624   ;;  %vm299_vm2 = vcmask (!%p238_p2), 707584   ;;  %vm6104_vm3 = vcmask (!%p238_p2), 551936  }
   0x6   : > { %241 = sbr.rel (%p238_p2) target bundleno = 7378 (0x1cd2), region = 48  ;;  %s6122_s8 = smov (!%p238_p2), 126   ;;  %v4779_v47 = vmov (!%p238_p2), 0.0   ;;  %v4780_v48 = vmov (!%p238_p2), 0.0|0.0   ;;  %v4908_v49 = vld [vmem:[%s6097_s1 + $0x30] sm:$0xff] (!%p238_p2)  ;;  %vm4781_vm4 = vmmov (!%p238_p2), 0  }
   0x7   : > { %s6126_s9 = smov (!%p238_p2), 127   ;;  %s4773_s10 = smov (!%p238_p2), 109   ;;  %589 = vmatprep.mubr.f32.mxu0 (!%p238_p2), %v4779_v47  ;;  %4386 = vmatprep.subr.bf16.mxu1 (!%p238_p2), %v4780_v48  ;;  %v4782_v50 = vmov (!%p238_p2), 60   ;;  %vm6111_vm5 = vcmask (!%p238_p2), 1031168   ;;  %vm6109_vm6 = vcmask (!%p238_p2), 891904   ;;  %vm6107_vm7 = vcmask (!%p238_p2), 752640  }
   0x8   : > { %s4774_s11 = smov (!%p238_p2), 110   ;;  %s6120_s12 = smov (!%p238_p2), 92   ;;  %4141 = vmatprep.mubr.msk.f32.mxu1 (!%p238_p2), %vm4781_vm4, %v4779_v47  ;;  %4740 = vset.pattern.permute.xlu1 (!%p238_p2), %v4782_v50  ;;  %vm331_vm8 = vcmask (!%p238_p2), 556036   ;;  %vm6112_vm9 = vcmask (!%p238_p2), 1039360   ;;  %vm6110_vm10 = vcmask (!%p238_p2), 900096   ;;  %vm6108_vm11 = vcmask (!%p238_p2), 883712  }
   0x9   : > { %s4776_s13 = smov (!%p238_p2), 108   ;;  %s6118_s14 = smov (!%p238_p2), 91   ;;  %vm6106_vm12 = vcmask (!%p238_p2), 744448   ;;  %vm6105_vm13 = vcmask (!%p238_p2), 736256   ;;  %vm515_vm14 = vcmask (!%p238_p2), 1043456   ;;  %vm511_vm15 = vcmask (!%p238_p2), 293888  }
   0xa   : > { %s6116_s15 = smov (!%p238_p2), 90   ;;  %s4785_s28 = smov (!%p238_p2), 119  }
   0xb   : > { %s4787_s16 = smov (!%p238_p2), 118   ;;  %s4788_s17 = smov (!%p238_p2), 99  }
   0xc   : > { %s4789_s18 = smov (!%p238_p2), 98   ;;  %s4790_s19 = smov (!%p238_p2), 100  }
   0xd   : > { %s6217_s25 = smov (!%p269_p3, %s3921_s25), 1  ;;  %s4792_s20 = smov 20  }
   0xe   : > { %s6115_s26 = smul.u32 12, %s6217_s25  ;;  %s6128_s23 = smov 68  }
   0xf   : > { %s6124_s21 = smov 79   ;;  %s4796_s22 = smov 76  }
  0x10   : > { %s273_s29 = scalar_lea.vmem %s6096_s0, %s6115_s26  ;;  %s4799_s26 = smov 115  }
  0x11   : > { %v279_v0 = vld [vmem:[%s273_s29] sm:$0xff]  ;;  %v280_v1 = vld [vmem:[%s273_s29 + $0x8] sm:$0xf]  ;;  %s4786_s29 = smov 120  }
  0x12   : > { %284 = vrot.lane.b32.xlu0 %v279_v0, %s4770_s30  ;;  %v283_v2 = vcombine.high %v279_v0, %v279_v0  ;;  %288 = vrot.lane.b32.xlu1 %v280_v1, %s4770_s30 }
  0x16   : > { %286 = vrot.lane.b32.xlu0 %v283_v2, %s4770_s30 }
  0x84   : > { %v285_v3 = vpop.permute.xlu0 %284  ;;  %v289_v4 = vpop.permute.xlu1 %288 }
  0x85   : > { %297 = vst.msk [vmem:[#allocation2] sm:$0xf] %vm296_vm0, %v285_v3 }
  0x88   : > { %v287_v5 = vpop.permute.xlu0 %286 }
  0x89   : > { %v291_v6 = vsel %vm290_vm1, %v285_v3, %v287_v5  ;;  %v292_v7 = vsel %vm290_vm1, %v287_v5, %v289_v4 }
  0x8a   : > { %298 = vst [vmem:[#allocation2 + $0x8] sm:$0xf] %v291_v6  ;;  %300 = vst.msk [vmem:[#allocation2 + $0x10] sm:$0xf] %vm299_vm2, %v292_v7 }
  0x8c   : > { %v333_v8 = vld [vmem:[#allocation2] sm:$0xf] }
  0x8d   : > { %v308_v9 = vld [vmem:[#allocation2] sm:$0xf]  ;;  %339 = vrot.lane.b32.xlu0 %v333_v8, %s6122_s8 }
  0x8e   : > { %v314_v10 = vrot.slane %v308_v9, 4  ;;  %v354_v11 = vld [vmem:[#allocation2] sm:$0xf] }
  0x8f   : > { %v378_v12 = vld [vmem:[#allocation2] sm:$0xf]  ;;  %v360_v14 = vrot.slane %v354_v11, 4 }
  0x90   : > { %317 = vrot.lane.b32.xlu1 %v314_v10, %s6126_s9  ;;  %v301_v13 = vld [vmem:[#allocation2] sm:$0xf] }
  0x91   : > { %384 = vrot.lane.b32.xlu0 %v378_v12, %s4773_s10  ;;  %304 = vst [vmem:[#allocation3] sm:$0xf] %v301_v13  ;;  %v399_v15 = vld [vmem:[#allocation2] sm:$0xf]  ;;  %v335_v18 = vld [vmem:[#allocation2 + $0x10] sm:$0xf] }
  0x92   : > { %v423_v16 = vld [vmem:[#allocation2] sm:$0xf]  ;;  %v405_v17 = vrot.slane %v399_v15, 4  ;;  %v303_v19 = vld [vmem:[#allocation2 + $0x10] sm:$0xf] }
  0x93   : > { %v302_v20 = vld [vmem:[#allocation2 + $0x8] sm:$0xf]  ;;  %307 = vst.msk [vmem:[#allocation3 + $0x10] sm:$0xf] %vm6104_vm3, %v303_v19  ;;  %v380_v23 = vld [vmem:[#allocation2 + $0x10] sm:$0xf] }
  0x94   : > { %363 = vrot.lane.b32.xlu1 %v360_v14, %s4774_s11  ;;  %305 = vst [vmem:[#allocation3 + $0x8] sm:$0xf] %v302_v20  ;;  %v334_v21 = vld [vmem:[#allocation2 + $0x8] sm:$0xf]  ;;  %v310_v25 = vld [vmem:[#allocation2 + $0x10] sm:$0xf] }
  0x95   : > { %429 = vrot.lane.b32.xlu0 %v423_v16, %s6120_s12  ;;  %v379_v22 = vld [vmem:[#allocation2 + $0x8] sm:$0xf]  ;;  %v425_v26 = vld [vmem:[#allocation2 + $0x10] sm:$0xf]  ;;  %v316_v28 = vrot.slane %v310_v25, 4 }
  0x96   : > { %v424_v24 = vld [vmem:[#allocation2 + $0x8] sm:$0xf]  ;;  %v356_v29 = vld [vmem:[#allocation2 + $0x10] sm:$0xf]  ;;  %v444_v42 = vld [vmem:[#allocation2] sm:$0xf] }
  0x97   : > { %v309_v27 = vld [vmem:[#allocation2 + $0x8] sm:$0xf]  ;;  %v362_v32 = vrot.slane %v356_v29, 4  ;;  %v401_v35 = vld [vmem:[#allocation2 + $0x10] sm:$0xf]  ;;  %v450_v44 = vrot.slane %v444_v42, 4 }
  0x98   : > { %408 = vrot.lane.b32.xlu1 %v405_v17, %s4776_s13  ;;  %v315_v30 = vrot.slane %v309_v27, 4  ;;  %v355_v31 = vld [vmem:[#allocation2 + $0x8] sm:$0xf]  ;;  %v407_v38 = vrot.slane %v401_v35, 4  ;;  %v446_v39 = vld [vmem:[#allocation2 + $0x10] sm:$0xf] }
  0x99   : > { %343 = vrot.lane.b32.xlu0 %v335_v18, %s6122_s8  ;;  %v400_v33 = vld [vmem:[#allocation2 + $0x8] sm:$0xf]  ;;  %v361_v34 = vrot.slane %v355_v31, 4  ;;  %v452_v41 = vrot.slane %v446_v39, 4  ;;  %v468_v45 = vld [vmem:[#allocation2] sm:$0xf] }
  0x9a   : > { %v406_v36 = vrot.slane %v400_v33, 4  ;;  %v445_v37 = vld [vmem:[#allocation2 + $0x8] sm:$0xf]  ;;  %v470_v46 = vld [vmem:[#allocation2 + $0x10] sm:$0xf] }
  0x9b   : > { %v451_v40 = vrot.slane %v445_v37, 4  ;;  %v469_v43 = vld [vmem:[#allocation2 + $0x8] sm:$0xf] }
  0x9c   : > { %341 = vrot.lane.b32.xlu1 %v334_v21, %s6122_s8 }
  0x9d   : > { %386 = vrot.lane.b32.xlu0 %v379_v22, %s4773_s10 }
  0xa0   : > { %388 = vrot.lane.b32.xlu1 %v380_v23, %s4773_s10 }
  0xa1   : > { %431 = vrot.lane.b32.xlu0 %v424_v24, %s6120_s12 }
  0xa4   : > { %433 = vrot.lane.b32.xlu1 %v425_v26, %s6120_s12 }
  0xa5   : > { %321 = vrot.lane.b32.xlu0 %v316_v28, %s6126_s9 }
  0xa8   : > { %319 = vrot.lane.b32.xlu1 %v315_v30, %s6126_s9 }
  0xa9   : > { %367 = vrot.lane.b32.xlu0 %v362_v32, %s4774_s11 }
  0xac   : > { %365 = vrot.lane.b32.xlu1 %v361_v34, %s4774_s11 }
  0xad   : > { %410 = vrot.lane.b32.xlu0 %v406_v36, %s4776_s13 }
  0xb0   : > { %412 = vrot.lane.b32.xlu1 %v407_v38, %s4776_s13 }
  0xb1   : > { %455 = vrot.lane.b32.xlu0 %v451_v40, %s6118_s14 }
  0xb4   : > { %457 = vrot.lane.b32.xlu1 %v452_v41, %s6118_s14  ;;  %v4941_v41 = vld [vmem:[%s6097_s1] sm:$0xff] }
  0xb5   : > { %476 = vrot.lane.b32.xlu0 %v469_v43, %s6116_s15 }
  0xb8   : > { %453 = vrot.lane.b32.xlu1 %v450_v44, %s6118_s14 }
  0xb9   : > { %474 = vrot.lane.b32.xlu0 %v468_v45, %s6116_s15 }
  0xbc   : > { %478 = vrot.lane.b32.xlu1 %v470_v46, %s6116_s15 }
  0xc0   : > { %508 = vperm.xlu1 %4740, %v4908_v49  }
  0xff   : > { %v340_v51 = vpop.permute.xlu0 %339 }
 0x102   : > { %v318_v52 = vpop.permute.xlu1 %317 }
 0x103   : > { %v385_v53 = vpop.permute.xlu0 %384 }
 0x106   : > { %v364_v54 = vpop.permute.xlu1 %363 }
 0x107   : > { %v430_v55 = vpop.permute.xlu0 %429 }
 0x10a   : > { %v409_v56 = vpop.permute.xlu1 %408 }
 0x10b   : > { %v344_v57 = vpop.permute.xlu0 %343 }
 0x10c   : > { %353 = vst.msk [vmem:[#allocation3 + $0x28] sm:$0xf] %vm6104_vm3, %v344_v57 }
 0x10e   : > { %v342_v58 = vpop.permute.xlu1 %341 }
 0x10f   : > { %v346_v59 = vsel %vm6111_vm5, %v340_v51, %v342_v58  ;;  %v347_v60 = vsel %vm6111_vm5, %v342_v58, %v344_v57  ;;  %v387_v61 = vpop.permute.xlu0 %386 }
 0x110   : > { %351 = vst [vmem:[#allocation3 + $0x18] sm:$0xf] %v346_v59  ;;  %352 = vst [vmem:[#allocation3 + $0x20] sm:$0xf] %v347_v60  ;;  %v391_v62 = vsel %vm6109_vm6, %v385_v53, %v387_v61  ;;  %v669_v53 = vld [vmem:[%s6098_s2] sm:$0x7] }
 0x111   : > { %396 = vst [vmem:[#allocation3 + $0x30] sm:$0xf] %v391_v62  ;;  %vm670_vm0 = vcmp.gt.f32.partialorder %v669_v53, 0.0 }
 0x112   : > { %v389_v63 = vpop.permute.xlu1 %388 }
 0x113   : > { %v392_v0 = vsel %vm6109_vm6, %v387_v61, %v389_v63  ;;  %398 = vst.msk [vmem:[#allocation3 + $0x40] sm:$0xf] %vm6104_vm3, %v389_v63  ;;  %v432_v1 = vpop.permute.xlu0 %431 }
 0x114   : > { %397 = vst [vmem:[#allocation3 + $0x38] sm:$0xf] %v392_v0  ;;  %v436_v2 = vsel %vm6107_vm7, %v430_v55, %v432_v1 }
 0x115   : > { %441 = vst [vmem:[#allocation3 + $0x48] sm:$0xf] %v436_v2 }
 0x116   : > { %v434_v3 = vpop.permute.xlu1 %433 }
 0x117   : > { %v437_v4 = vsel %vm6107_vm7, %v432_v1, %v434_v3  ;;  %443 = vst.msk [vmem:[#allocation3 + $0x58] sm:$0xf] %vm6104_vm3, %v434_v3  ;;  %v322_v5 = vpop.permute.xlu0 %321 }
 0x118   : > { %442 = vst [vmem:[#allocation3 + $0x50] sm:$0xf] %v437_v4  ;;  %332 = vst.msk [vmem:[#allocation3 + $0x10] sm:$0xf0] %vm331_vm8, %v322_v5 }
 0x11a   : > { %v320_v6 = vpop.permute.xlu1 %319 }
 0x11b   : > { %v324_v7 = vsel %vm6112_vm9, %v318_v52, %v320_v6  ;;  %v325_v8 = vsel %vm6112_vm9, %v320_v6, %v322_v5  ;;  %v368_v9 = vpop.permute.xlu0 %367  ;;  %v672_v52 = vlaneseq }
 0x11c   : > { %329 = vst [vmem:[#allocation3] sm:$0xf0] %v324_v7  ;;  %330 = vst [vmem:[#allocation3 + $0x8] sm:$0xf0] %v325_v8 }
 0x11d   : > { %377 = vst.msk [vmem:[#allocation3 + $0x28] sm:$0xf0] %vm331_vm8, %v368_v9 }
 0x11e   : > { %v366_v10 = vpop.permute.xlu1 %365 }
 0x11f   : > { %v370_v11 = vsel %vm6110_vm10, %v364_v54, %v366_v10  ;;  %v371_v12 = vsel %vm6110_vm10, %v366_v10, %v368_v9  ;;  %v411_v13 = vpop.permute.xlu0 %410  ;;  %v492_v43 = vld [vmem:[#allocation3 + $0x10] sm:$0xff]  ;;  %v673_v54 = vshrl.u32 %v672_v52, 7 }
 0x120   : > { %375 = vst [vmem:[#allocation3 + $0x18] sm:$0xf0] %v370_v11  ;;  %376 = vst [vmem:[#allocation3 + $0x20] sm:$0xf0] %v371_v12  ;;  %v415_v14 = vsel %vm6108_vm11, %v409_v56, %v411_v13  ;;  %v4783_v56 = vmov 0  }
 0x121   : > { %420 = vst [vmem:[#allocation3 + $0x30] sm:$0xf0] %v415_v14  ;;  %v4958_v55 = vsub.s32 0, %v673_v54  ;;  %v671_v57 = vsel %vm670_vm0, 1, %v4783_v56  ;;  %v4961_v58 = vsub.s32 1, %v673_v54  ;;  %v4965_v4 = vsub.s32 2, %v673_v54 }
 0x122   : > { %v413_v15 = vpop.permute.xlu1 %412 }
 0x123   : > { %v416_v16 = vsel %vm6108_vm11, %v411_v13, %v413_v15  ;;  %422 = vst.msk [vmem:[#allocation3 + $0x40] sm:$0xf0] %vm331_vm8, %v413_v15  ;;  %v456_v17 = vpop.permute.xlu0 %455  ;;  %v491_v19 = vld [vmem:[#allocation3 + $0x8] sm:$0xff]  ;;  %v490_v22 = vld [vmem:[#allocation3] sm:$0xff]  ;;  %v675_v60 = vrot.slane %v671_v57, %v4958_v55  ;;  %v679_v61 = vrot.slane %v671_v57, %v4961_v58  ;;  %v683_v7 = vrot.slane %v671_v57, %v4965_v4 }
 0x124   : > { %421 = vst [vmem:[#allocation3 + $0x38] sm:$0xf0] %v416_v16  ;;  %v495_v40 = vld [vmem:[#allocation3 + $0x28] sm:$0xff] }
 0x125   : > { %v4365_v44 = vpack.c.bf16 %v495_v40, %v492_v43  ;;  %vm684_vm2 = vcmp.eq.s32.totalorder %v675_v60, 1  ;;  %vm686_vm0 = vcmp.eq.s32.totalorder %v683_v7, 1 }
 0x126   : > { %v458_v18 = vpop.permute.xlu1 %457 }
 0x127   : > { %v461_v20 = vsel %vm6106_vm12, %v456_v17, %v458_v18  ;;  %467 = vst.msk [vmem:[#allocation3 + $0x58] sm:$0xf0] %vm331_vm8, %v458_v18  ;;  %v494_v21 = vld [vmem:[#allocation3 + $0x20] sm:$0xff]  ;;  %v493_v23 = vld [vmem:[#allocation3 + $0x18] sm:$0xff]  ;;  %v477_v24 = vpop.permute.xlu0 %476  ;;  %vm685_vm8 = vcmp.eq.s32.totalorder %v679_v61, 1 }
 0x128   : > { %466 = vst [vmem:[#allocation3 + $0x50] sm:$0xf0] %v461_v20  ;;  %v4356_v25 = vpack.c.bf16 %v494_v21, %v491_v19  ;;  %v4358_v26 = vpack.c.bf16 %v493_v23, %v490_v22  ;;  %v496_v36 = vld [vmem:[#allocation3 + $0x30] sm:$0xff]  ;;  %v4784_v20 = vmov 61  }
 0x129   : > { %4741 = vset.pattern.permute.xlu0 %v4784_v20 }
 0x12a   : > { %v454_v27 = vpop.permute.xlu1 %453  ;;  %4357 = vmatprep.subr.bf16.mxu0 %v4356_v25  ;;  %v498_v46 = vld [vmem:[#allocation3 + $0x40] sm:$0xff] }
 0x12b   : > { %v460_v28 = vsel %vm6106_vm12, %v454_v27, %v456_v17  ;;  %4359 = vmatpush1.bf16.msra.mxu0 %v4358_v26  ;;  %v475_v29 = vpop.permute.xlu0 %474  ;;  %v497_v33 = vld [vmem:[#allocation3 + $0x38] sm:$0xff] }
 0x12c   : > { %465 = vst [vmem:[#allocation3 + $0x48] sm:$0xf0] %v460_v28  ;;  %v481_v30 = vsel %vm6105_vm13, %v475_v29, %v477_v24 }
 0x12d   : > { %486 = vst [vmem:[#allocation3 + $0x60] sm:$0xf] %v481_v30 }
 0x12e   : > { %v479_v31 = vpop.permute.xlu1 %478  ;;  %v501_v45 = vld [vmem:[#allocation3 + $0x58] sm:$0xff] }
 0x12f   : > { %v482_v32 = vsel %vm6105_vm13, %v477_v24, %v479_v31  ;;  %488 = vst.msk [vmem:[#allocation3 + $0x70] sm:$0xf] %vm6104_vm3, %v479_v31  ;;  %v500_v34 = vld [vmem:[#allocation3 + $0x50] sm:$0xff]  ;;  %v4368_v50 = vpack.c.bf16 %v501_v45, %v498_v46  ;;  %vm704_vm3 = vcmask 1047704  }
 0x130   : > { %487 = vst [vmem:[#allocation3 + $0x68] sm:$0xf] %v482_v32  ;;  %v4360_v35 = vpack.c.bf16 %v500_v34, %v497_v33 }
 0x132   : > { %4361 = vmatprep.subr.bf16.mxu0 %v4360_v35 }
 0x133   : > { %v499_v37 = vld [vmem:[#allocation3 + $0x48] sm:$0xff] }
 0x134   : > { %v4362_v38 = vpack.c.bf16 %v499_v37, %v496_v36  ;;  %v502_v42 = vld [vmem:[#allocation3 + $0x60] sm:$0xf] }
 0x136   : > { %4363 = vmatpush1.bf16.msra.mxu0 %v4362_v38  ;;  %v504_v51 = vld [vmem:[#allocation3 + $0x70] sm:$0xf] }
 0x137   : > { %v503_v39 = vld [vmem:[#allocation3 + $0x68] sm:$0xf] }
 0x138   : > { %3928 = vmatprep.subr.msk.mxu0 %vm515_vm14, %v503_v39 }
 0x13a   : > { %3929 = vmatpush1.msk.msra.mxu0 %vm515_vm14, %v502_v42 }
 0x13b   : > { %3930 = vmatmul.mubr.msk.f32.vlgmr.msra.gmra.mrb[0].mxu0 %vm511_vm15, %v4941_v41  ;;  %4364 = vmatprep.subr.bf16.mxu0 %v4780_v48 }
 0x13c   : > { %4366 = vmatpush3.bf16.msra.mxu0 %v4365_v44  ;;  %4120 = vmatprep.mubr.msk.f32.mxu0 %vm4781_vm4, %v4779_v47 }
 0x13d   : > { %4367 = vmatprep.subr.bf16.mxu0 %v4780_v48 }
 0x13f   : > { %v509_v59 = vpop.permute.xlu1 %508 }
 0x140   : > { %4369 = vmatpush3.bf16.msra.mxu0 %v4368_v50 }
 0x141   : > { %4118 = vmatprep.subr.mxu0 %v4779_v47 }
 0x144   : > { %4119 = vmatpush3.msk.msra.mxu0 %vm515_vm14, %v504_v51 }
 0x145   : > { %4121 = vmatmul.mubr.msk.f32.vlgmr.msra.gmra.mrb[2].mxu0 %vm511_vm15, %v4941_v41 }
 0x146   : > { %980 = vmatprep.mubr.f32.mxu0 %v4779_v47 }
 0x20e   : > { %v591_v62 = vpop.f32.mrb[0].mxu0 }
 0x20f   : > { %v592_v63 = vadd.f32 %v591_v62, %v509_v59  ;;  %v593_v0 = vpop.f32.mrb[1].mxu0 }
 0x210   : > { %v594_v1 = vadd.f32 %v593_v0, %v509_v59 }
 0x211   : > { %v666_v2 = vmax.f32 %v592_v63, 0.0 }
 0x212   : > { %v667_v3 = vmax.f32 %v594_v1, 0.0 }
 0x213   : > { %v687_v5 = vsel %vm684_vm2, %v666_v2, 0.0  ;;  %vm6114_vm2 = vcmask 711680  }
 0x214   : > { %693 = vrot.lane.b32.xlu0 %v687_v5, %s4770_s30  ;;  %v688_v6 = vsel %vm685_vm8, %v667_v3, 0.0  ;;  %vm6113_vm8 = vcmask 556032  }
 0x215   : > { %695 = vrot.lane.b32.xlu1 %v688_v6, %s4770_s30 }
 0x218   : > { %v662_v8 = vpop.f32.mrb[2].mxu0 }
 0x219   : > { %v663_v9 = vadd.f32 %v662_v8, %v509_v59  ;;  %v4122_v10 = vpop.f32.mrb[3].mxu0 }
 0x21b   : > { %v668_v11 = vmax.f32 %v663_v9, 0.0 }
 0x21d   : > { %v689_v12 = vsel %vm686_vm0, %v668_v11, 0.0  ;;  %vm913_vm0 = vcmask 588800  }
 0x21e   : > { %697 = vrot.lane.b32.xlu0 %v689_v12, %s4770_s30 }
 0x286   : > { %v694_v13 = vpop.permute.xlu0 %693 }
 0x287   : > { %v696_v14 = vpop.permute.xlu1 %695  ;;  %705 = vst.msk [vmem:[#allocation2] sm:$0xff] %vm704_vm3, %v694_v13 }
 0x288   : > { %v4973_v15 = vsel %vm290_vm1, %v694_v13, %v696_v14 }
 0x289   : > { %706 = vst [vmem:[#allocation2 + $0x8] sm:$0xff] %v4973_v15 }
 0x28e   : > { %v4976_v16 = vld [vmem:[#allocation2] sm:$0xff] }
 0x28f   : > { %742 = vrot.lane.b32.xlu0 %v4976_v16, %s6122_s8  ;;  %722 = vrot.lane.b32.xlu1 %v4976_v16, %s6126_s9  ;;  %712 = vst [vmem:[#allocation3] sm:$0xff] %v4976_v16 }
 0x290   : > { %v698_v17 = vpop.permute.xlu0 %697 }
 0x291   : > { %v700_v18 = vsel %vm290_vm1, %v696_v14, %v698_v17 }
 0x292   : > { %708 = vst.msk [vmem:[#allocation2 + $0x10] sm:$0xff] %vm6114_vm2, %v700_v18  ;;  %vm1689_vm2 = vcmask 490496  }
 0x293   : > { %782 = vrot.lane.b32.xlu0 %v4976_v16, %s4773_s10  ;;  %762 = vrot.lane.b32.xlu1 %v4976_v16, %s4774_s11 }
 0x297   : > { %802 = vrot.lane.b32.xlu1 %v4976_v16, %s4776_s13  ;;  %744 = vrot.lane.b32.xlu0 %v4973_v15, %s6122_s8 }
 0x299   : > { %v738_v19 = vld [vmem:[#allocation2 + $0x10] sm:$0xff] }
 0x29a   : > { %715 = vst.msk [vmem:[#allocation3 + $0x10] sm:$0xff] %vm6113_vm8, %v738_v19 }
 0x29b   : > { %764 = vrot.lane.b32.xlu0 %v4973_v15, %s4774_s11  ;;  %724 = vrot.lane.b32.xlu1 %v4973_v15, %s6126_s9 }
 0x29f   : > { %784 = vrot.lane.b32.xlu0 %v4973_v15, %s4773_s10  ;;  %746 = vrot.lane.b32.xlu1 %v738_v19, %s6122_s8  ;;  %s4803_s8 = smov 104  }
 0x2a1   : > { %v879_v60 = vld [vmem:[#allocation3 + $0x10] sm:$0xff] }
 0x2a3   : > { %804 = vrot.lane.b32.xlu0 %v4973_v15, %s4776_s13  ;;  %766 = vrot.lane.b32.xlu1 %v738_v19, %s4774_s11 }
 0x2a7   : > { %786 = vrot.lane.b32.xlu1 %v738_v19, %s4773_s10  ;;  %726 = vrot.lane.b32.xlu0 %v738_v19, %s6126_s9 }
 0x2ab   : > { %806 = vrot.lane.b32.xlu1 %v738_v19, %s4776_s13  ;;  %824 = vrot.lane.b32.xlu0 %v4973_v15, %s6120_s12 }
 0x2af   : > { %826 = vrot.lane.b32.xlu1 %v738_v19, %s6120_s12  ;;  %844 = vrot.lane.b32.xlu0 %v4973_v15, %s6118_s14 }
 0x2b3   : > { %846 = vrot.lane.b32.xlu1 %v738_v19, %s6118_s14  ;;  %822 = vrot.lane.b32.xlu0 %v4976_v16, %s6120_s12 }
 0x2b7   : > { %842 = vrot.lane.b32.xlu1 %v4976_v16, %s6118_s14  ;;  %864 = vrot.lane.b32.xlu0 %v4973_v15, %s6116_s15  ;;  %s4802_s14 = smov 103  }
 0x2bb   : > { %866 = vrot.lane.b32.xlu1 %v738_v19, %s6116_s15  ;;  %862 = vrot.lane.b32.xlu0 %v4976_v16, %s6116_s15  ;;  %s4800_s15 = smov 116  }
 0x2bf   : > { %911 = vrot.lane.b32.xlu1 %v4941_v41, %s6120_s12  ;;  %907 = vperm.xlu0 %4741, %v4908_v49   ;;  %s4801_s12 = smov 114  }
 0x301   : > { %v723_v21 = vpop.permute.xlu1 %722  ;;  %v743_v22 = vpop.permute.xlu0 %742 }
 0x305   : > { %v763_v23 = vpop.permute.xlu1 %762  ;;  %v783_v24 = vpop.permute.xlu0 %782 }
 0x309   : > { %v803_v25 = vpop.permute.xlu1 %802  ;;  %v745_v26 = vpop.permute.xlu0 %744 }
 0x30a   : > { %v748_v27 = vsel %vm6111_vm5, %v743_v22, %v745_v26 }
 0x30b   : > { %753 = vst [vmem:[#allocation3 + $0x30] sm:$0xff] %v748_v27 }
 0x30d   : > { %v725_v28 = vpop.permute.xlu1 %724  ;;  %v765_v29 = vpop.permute.xlu0 %764 }
 0x30e   : > { %v728_v30 = vsel %vm6112_vm9, %v723_v21, %v725_v28  ;;  %v768_v31 = vsel %vm6110_vm10, %v763_v23, %v765_v29 }
 0x30f   : > { %733 = vst [vmem:[#allocation3 + $0x18] sm:$0xff] %v728_v30  ;;  %773 = vst [vmem:[#allocation3 + $0x48] sm:$0xff] %v768_v31  ;;  %v4372_v45 = vpack.c.bf16 %v728_v30, %v4976_v16  ;;  %v4376_v54 = vpack.c.bf16 %v768_v31, %v748_v27 }
 0x311   : > { %v747_v32 = vpop.permute.xlu1 %746  ;;  %v785_v33 = vpop.permute.xlu0 %784 }
 0x312   : > { %755 = vst.msk [vmem:[#allocation3 + $0x40] sm:$0xff] %vm6113_vm8, %v747_v32  ;;  %v788_v34 = vsel %vm6109_vm6, %v783_v24, %v785_v33  ;;  %v749_v44 = vsel %vm6111_vm5, %v745_v26, %v747_v32 }
 0x313   : > { %793 = vst [vmem:[#allocation3 + $0x60] sm:$0xff] %v788_v34 }
 0x315   : > { %v767_v35 = vpop.permute.xlu1 %766  ;;  %v805_v36 = vpop.permute.xlu0 %804 }
 0x316   : > { %775 = vst.msk [vmem:[#allocation3 + $0x58] sm:$0xff] %vm6113_vm8, %v767_v35  ;;  %v808_v37 = vsel %vm6108_vm11, %v803_v25, %v805_v36  ;;  %v769_v40 = vsel %vm6110_vm10, %v765_v29, %v767_v35 }
 0x317   : > { %813 = vst [vmem:[#allocation3 + $0x78] sm:$0xff] %v808_v37  ;;  %v4374_v51 = vpack.c.bf16 %v769_v40, %v749_v44  ;;  %v4380_v1 = vpack.c.bf16 %v808_v37, %v788_v34 }
 0x319   : > { %v787_v38 = vpop.permute.xlu1 %786  ;;  %v727_v39 = vpop.permute.xlu0 %726  ;;  %v885_v5 = vld [vmem:[#allocation3 + $0x40] sm:$0xff] }
 0x31a   : > { %795 = vst.msk [vmem:[#allocation3 + $0x70] sm:$0xff] %vm6113_vm8, %v787_v38  ;;  %v729_v42 = vsel %vm6112_vm9, %v725_v28, %v727_v39  ;;  %735 = vst.msk [vmem:[#allocation3 + $0x28] sm:$0xff] %vm6113_vm8, %v727_v39  ;;  %v789_v53 = vsel %vm6109_vm6, %v785_v33, %v787_v38  ;;  %v1060_v28 = vld [vmem:[%s6098_s2] sm:$0x7]  ;;  %vm1377_vm6 = vcmask 801792  }
 0x31b   : > { %v4370_v43 = vpack.c.bf16 %v729_v42, %v4973_v15 }
 0x31d   : > { %v807_v46 = vpop.permute.xlu1 %806  ;;  %v825_v50 = vpop.permute.xlu0 %824  ;;  %4371 = vmatprep.subr.bf16.mxu0 %v4370_v43  ;;  %v888_v0 = vld [vmem:[#allocation3 + $0x58] sm:$0xff] }
 0x31e   : > { %v809_v52 = vsel %vm6108_vm11, %v805_v36, %v807_v46  ;;  %815 = vst.msk [vmem:[#allocation3 + $0x88] sm:$0xff] %vm6113_vm8, %v807_v46  ;;  %4373 = vmatpush1.bf16.msra.mxu0 %v4372_v45  ;;  %v4390_v9 = vpack.c.bf16 %v888_v0, %v885_v5  ;;  %v1086_v0 = vld [vmem:[%s6099_s3 + $0x10] sm:$0xff]  ;;  %vm1365_vm11 = vcmask 809984  }
 0x31f   : > { %4375 = vmatprep.subr.bf16.mxu0 %v4374_v51  ;;  %v4378_v62 = vpack.c.bf16 %v809_v52, %v789_v53  ;;  %v1100_v52 = vld [vmem:[%s6099_s3 + $0x80] sm:$0xff]  ;;  %v1101_v53 = vld [vmem:[%s6099_s3 + $0x88] sm:$0xff] }
 0x321   : > { %v827_v57 = vpop.permute.xlu1 %826  ;;  %v845_v59 = vpop.permute.xlu0 %844  ;;  %v882_v61 = vld [vmem:[#allocation3 + $0x28] sm:$0xff]  ;;  %v891_v14 = vld [vmem:[#allocation3 + $0x70] sm:$0xff] }
 0x322   : > { %835 = vst.msk [vmem:[#allocation3 + $0xa0] sm:$0xff] %vm6113_vm8, %v827_v57  ;;  %v4387_v63 = vpack.c.bf16 %v882_v61, %v879_v60  ;;  %4377 = vmatpush1.bf16.msra.mxu0 %v4376_v54  ;;  %v829_v6 = vsel %vm6107_vm7, %v825_v50, %v827_v57  ;;  %v1084_v54 = vld [vmem:[%s6099_s3] sm:$0xff]  ;;  %v4398_v57 = vpack.c.bf16 %v1101_v53, %v1100_v52  ;;  %v1102_v60 = vld [vmem:[%s6099_s3 + $0x90] sm:$0xff]  ;;  %v1103_v61 = vld [vmem:[%s6099_s3 + $0x98] sm:$0xff] }
 0x323   : > { %4379 = vmatprep.subr.bf16.mxu0 %v4378_v62 }
 0x324   : > { %4388 = vmatpush3.bf16.msra.mxu1 %v4387_v63  ;;  %v4402_v63 = vpack.c.bf16 %v1103_v61, %v1102_v60  ;;  %v1098_v60 = vld [vmem:[%s6099_s3 + $0x70] sm:$0xff] }
 0x325   : > { %v847_v2 = vpop.permute.xlu1 %846  ;;  %v823_v3 = vpop.permute.xlu0 %822  ;;  %4389 = vmatprep.subr.bf16.mxu1 %v4780_v48  ;;  %v894_v10 = vld [vmem:[#allocation3 + $0x88] sm:$0xff] }
 0x326   : > { %v849_v7 = vsel %vm6106_vm12, %v845_v59, %v847_v2  ;;  %855 = vst.msk [vmem:[#allocation3 + $0xb8] sm:$0xff] %vm6113_vm8, %v847_v2  ;;  %v828_v8 = vsel %vm6107_vm7, %v823_v3, %v825_v50  ;;  %4381 = vmatpush1.bf16.msra.mxu0 %v4380_v1  ;;  %v4393_v17 = vpack.c.bf16 %v894_v10, %v891_v14  ;;  %v1087_v1 = vld [vmem:[%s6099_s3 + $0x18] sm:$0xff]  ;;  %v1104_v2 = vld [vmem:[%s6099_s3 + $0xa0] sm:$0xff]  ;;  %v1105_v3 = vld [vmem:[%s6099_s3 + $0xa8] sm:$0xff] }
 0x327   : > { %833 = vst [vmem:[#allocation3 + $0x90] sm:$0xff] %v828_v8  ;;  %v4382_v11 = vpack.c.bf16 %v849_v7, %v829_v6  ;;  %v4404_v5 = vpack.c.bf16 %v1087_v1, %v1086_v0  ;;  %v1116_v6 = vld [vmem:[%s6099_s3 + $0x100] sm:$0xff]  ;;  %v4406_v7 = vpack.c.bf16 %v1105_v3, %v1104_v2  ;;  %v1117_v10 = vld [vmem:[%s6099_s3 + $0x108] sm:$0xff]  ;;  %v1118_v14 = vld [vmem:[%s6099_s3 + $0x110] sm:$0xff] }
 0x328   : > { %4391 = vmatpush3.bf16.msra.mxu1 %v4390_v9  ;;  %v1089_v9 = vld [vmem:[%s6099_s3 + $0x28] sm:$0xff] }
 0x329   : > { %v843_v12 = vpop.permute.xlu1 %842  ;;  %v865_v13 = vpop.permute.xlu0 %864  ;;  %4392 = vmatprep.subr.bf16.mxu1 %v4780_v48  ;;  %4383 = vmatprep.subr.bf16.mxu0 %v4382_v11  ;;  %v897_v21 = vld [vmem:[#allocation3 + $0xa0] sm:$0xff] }
 0x32a   : > { %v848_v16 = vsel %vm6106_vm12, %v843_v12, %v845_v59  ;;  %v1085_v59 = vld [vmem:[%s6099_s3 + $0x8] sm:$0xff]  ;;  %v1106_v11 = vld [vmem:[%s6099_s3 + $0xb0] sm:$0xff]  ;;  %v1107_v12 = vld [vmem:[%s6099_s3 + $0xb8] sm:$0xff] }
 0x32b   : > { %853 = vst [vmem:[#allocation3 + $0xa8] sm:$0xff] %v848_v16  ;;  %v4384_v18 = vpack.c.bf16 %v848_v16, %v828_v8  ;;  %v4400_v62 = vpack.c.bf16 %v1085_v59, %v1084_v54  ;;  %v1088_v8 = vld [vmem:[%s6099_s3 + $0x20] sm:$0xff]  ;;  %v1115_v59 = vld [vmem:[%s6099_s3 + $0xf8] sm:$0xff] }
 0x32c   : > { %4394 = vmatpush3.bf16.msra.mxu1 %v4393_v17  ;;  %v1119_v17 = vld [vmem:[%s6099_s3 + $0x118] sm:$0xff] }
 0x32d   : > { %v867_v19 = vpop.permute.xlu1 %866  ;;  %v863_v20 = vpop.permute.xlu0 %862  ;;  %4395 = vmatprep.subr.bf16.mxu1 %v4780_v48  ;;  %v900_v22 = vld [vmem:[#allocation3 + $0xb8] sm:$0xff]  ;;  %4385 = vmatpush1.bf16.msra.mxu0 %v4384_v18  ;;  %v4408_v18 = vpack.c.bf16 %v1089_v9, %v1088_v8 }
 0x32e   : > { %v869_v23 = vsel %vm6105_vm13, %v865_v13, %v867_v19  ;;  %875 = vst.msk [vmem:[#allocation3 + $0xd0] sm:$0xff] %vm6113_vm8, %v867_v19  ;;  %v868_v24 = vsel %vm6105_vm13, %v863_v20, %v865_v13  ;;  %v4396_v25 = vpack.c.bf16 %v900_v22, %v897_v21  ;;  %vm1061_vm13 = vcmp.gt.f32.partialorder %v1060_v28, 0.0  ;;  %v1090_v20 = vld [vmem:[%s6099_s3 + $0x30] sm:$0xff]  ;;  %v1091_v21 = vld [vmem:[%s6099_s3 + $0x38] sm:$0xff]  ;;  %v1108_v22 = vld [vmem:[%s6099_s3 + $0xc0] sm:$0xff] }
 0x32f   : > { %873 = vst [vmem:[#allocation3 + $0xc0] sm:$0xff] %v868_v24  ;;  %932 = vmatprep.subr.mxu0 %v869_v23  ;;  %v1062_v29 = vsel %vm1061_vm13, 1, %v4783_v56  ;;  %v4431_v13 = vpack.c.bf16 %v1117_v10, %v1116_v6  ;;  %v4410_v19 = vpack.c.bf16 %v1107_v12, %v1106_v11  ;;  %v4434_v23 = vpack.c.bf16 %v1119_v17, %v1118_v14 }
 0x330   : > { %4397 = vmatpush3.bf16.msra.mxu1 %v4396_v25  ;;  %v1066_v31 = vrot.slane %v1062_v29, %v4958_v55  ;;  %v1070_v32 = vrot.slane %v1062_v29, %v4961_v58  ;;  %v1074_v38 = vrot.slane %v1062_v29, %v4965_v4  ;;  %v1120_v25 = vld [vmem:[%s6099_s3 + $0x120] sm:$0xff] }
 0x331   : > { %4139 = vmatprep.subr.mxu1 %v4779_v47  ;;  %v912_v26 = vpop.permute.xlu1 %911  ;;  %933 = vmatpush1.msra.mxu0 %v868_v24  ;;  %v1109_v24 = vld [vmem:[%s6099_s3 + $0xc8] sm:$0xff]  ;;  %v1092_v29 = vld [vmem:[%s6099_s3 + $0x40] sm:$0xff] }
 0x332   : > { %3933 = vmatmul.mubr.msk.f32.vlgmr.msra.gmra.mrb[4].mxu0 %vm913_vm0, %v912_v26  ;;  %vm1075_vm12 = vcmp.eq.s32.totalorder %v1066_v31, 1  ;;  %vm1076_vm7 = vcmp.eq.s32.totalorder %v1070_v32, 1  ;;  %vm1077_vm13 = vcmp.eq.s32.totalorder %v1074_v38, 1  ;;  %4399 = vmatprep.subr.bf16.mxu0 %v4398_v57  ;;  %v4414_v28 = vpack.c.bf16 %v1109_v24, %v1108_v22  ;;  %v1110_v32 = vld [vmem:[%s6099_s3 + $0xd0] sm:$0xff] }
 0x333   : > { %4401 = vmatpush3.bf16.msra.mxu0 %v4400_v62  ;;  %v1114_v57 = vld [vmem:[%s6099_s3 + $0xf0] sm:$0xff]  ;;  %v1099_v62 = vld [vmem:[%s6099_s3 + $0x78] sm:$0xff]  ;;  %v4791_v24 = vmov 62  }
 0x334   : > { %4403 = vmatprep.subr.bf16.mxu0 %v4402_v63  ;;  %v4426_v61 = vpack.c.bf16 %v1115_v59, %v1114_v57  ;;  %v4428_v63 = vpack.c.bf16 %v1099_v62, %v1098_v60  ;;  %4752 = vset.pattern.permute.xlu0 %v4791_v24 }
 0x335   : > { %v903_v27 = vld [vmem:[#allocation3 + $0xd0] sm:$0xff] }
 0x336   : > { %4140 = vmatpush3.msra.mxu1 %v903_v27  ;;  %v4412_v27 = vpack.c.bf16 %v1091_v21, %v1090_v20 }
 0x337   : > { %4142 = vmatmul.mubr.msk.f32.vlgmr.msra.gmra.mrb[0].mxu1 %vm913_vm0, %v912_v26  ;;  %4430 = vmatprep.subr.bf16.mxu1 %v4780_v48  ;;  %v1121_v26 = vld [vmem:[%s6099_s3 + $0x128] sm:$0xff] }
 0x338   : > { %4158 = vmatprep.mubr.msk.f32.mxu1 %vm4781_vm4, %v4779_v47  ;;  %4405 = vmatpush3.bf16.msra.mxu0 %v4404_v5  ;;  %v4437_v31 = vpack.c.bf16 %v1121_v26, %v1120_v25  ;;  %v5236_v25 = vld [vmem:[%s6097_s1 + $0x8] sm:$0xff] }
 0x339   : > { %4407 = vmatprep.subr.bf16.mxu0 %v4406_v7  ;;  %4432 = vmatpush3.bf16.msra.mxu1 %v4431_v13 }
 0x33a   : > { %4433 = vmatprep.subr.bf16.mxu1 %v4780_v48 }
 0x33c   : > { %4409 = vmatpush3.bf16.msra.mxu0 %v4408_v18 }
 0x33d   : > { %4411 = vmatprep.subr.bf16.mxu0 %v4410_v19  ;;  %4435 = vmatpush3.bf16.msra.mxu1 %v4434_v23 }
 0x33e   : > { %v908_v30 = vpop.permute.xlu0 %907  ;;  %4436 = vmatprep.subr.bf16.mxu1 %v4780_v48 }
 0x340   : > { %4413 = vmatpush3.bf16.msra.mxu0 %v4412_v27 }
 0x341   : > { %4415 = vmatprep.subr.bf16.mxu0 %v4414_v28  ;;  %4438 = vmatpush3.bf16.msra.mxu1 %v4437_v31 }
 0x342   : > { %4156 = vmatprep.subr.mxu1 %v4779_v47 }
 0x405   : > { %v982_v33 = vpop.f32.mrb[4].mxu0 }
 0x406   : > { %v983_v34 = vadd.f32 %v982_v33, %v908_v30  ;;  %v984_v35 = vpop.f32.mrb[5].mxu0  ;;  %v1111_v33 = vld [vmem:[%s6099_s3 + $0xd8] sm:$0xff] }
 0x407   : > { %v985_v36 = vadd.f32 %v984_v35, %v908_v30  ;;  %v4418_v35 = vpack.c.bf16 %v1111_v33, %v1110_v32 }
 0x408   : > { %v1057_v37 = vmax.f32 %v983_v34, 0.0 }
 0x409   : > { %v1058_v39 = vmax.f32 %v985_v36, 0.0  ;;  %v1094_v36 = vld [vmem:[%s6099_s3 + $0x50] sm:$0xff] }
 0x40a   : > { %v1053_v40 = vpop.f32.mrb[0].mxu1  ;;  %v5067_v42 = vsel %vm1075_vm12, %v1057_v37, 0.0  ;;  %v1095_v37 = vld [vmem:[%s6099_s3 + $0x58] sm:$0xff]  ;;  %vm1160_vm12 = vcmask 400384  }
 0x40b   : > { %v4143_v43 = vpop.f32.mrb[1].mxu1  ;;  %v1054_v44 = vadd.f32 %v1053_v40, %v908_v30  ;;  %v5069_v45 = vsel %vm1076_vm7, %v1058_v39, 0.0  ;;  %1081 = vst [vmem:[#allocation4] sm:$0xff] %v5067_v42  ;;  %v1093_v30 = vld [vmem:[%s6099_s3 + $0x48] sm:$0xff]  ;;  %v4420_v38 = vpack.c.bf16 %v1095_v37, %v1094_v36  ;;  %v1112_v39 = vld [vmem:[%s6099_s3 + $0xe0] sm:$0xff]  ;;  %vm1164_vm7 = vcmask 1040384  }
 0x40c   : > { %1082 = vst [vmem:[#allocation4 + $0x8] sm:$0xff] %v5069_v45  ;;  %v4742_v46 = vpack.i.bf16 %v5067_v42, %v5069_v45  ;;  %v4416_v34 = vpack.c.bf16 %v1093_v30, %v1092_v29  ;;  %v1113_v40 = vld [vmem:[%s6099_s3 + $0xe8] sm:$0xff]  ;;  %v1122_v43 = vld [vmem:[%s6099_s3 + $0x130] sm:$0x1] }
 0x40d   : > { %v1059_v50 = vmax.f32 %v1054_v44, 0.0  ;;  %v4422_v44 = vpack.c.bf16 %v1113_v40, %v1112_v39  ;;  %4157 = vmatpush3.msk.msra.mxu1 %vm1164_vm7, %v1122_v43 }
 0x40e   : > { %4743 = vrot.lane.b32.xlu1 %v4742_v46, %s6126_s9  ;;  %4417 = vmatpush3.bf16.msra.mxu0 %v4416_v34  ;;  %v1096_v46 = vld [vmem:[%s6099_s3 + $0x60] sm:$0xff] }
 0x40f   : > { %v1080_v51 = vsel %vm1077_vm13, %v1059_v50, 0.0  ;;  %4419 = vmatprep.subr.bf16.mxu0 %v4418_v35  ;;  %v1097_v50 = vld [vmem:[%s6099_s3 + $0x68] sm:$0xff]  ;;  %4439 = vmatprep.subr.bf16.mxu1 %v4780_v48  ;;  %vm1312_vm13 = vcmask 973976  }
 0x410   : > { %1083 = vst.msk [vmem:[#allocation4 + $0x10] sm:$0xff] %vm6113_vm8, %v1080_v51  ;;  %v4424_v52 = vpack.c.bf16 %v1097_v50, %v1096_v46  ;;  %vm1504_vm8 = vcmask 646144  }
 0x412   : > { %4421 = vmatpush3.bf16.msra.mxu0 %v4420_v38 }
 0x413   : > { %4423 = vmatprep.subr.bf16.mxu0 %v4422_v44 }
 0x416   : > { %4425 = vmatpush3.bf16.msra.mxu0 %v4424_v52 }
 0x417   : > { %v5128_v16 = vld [vmem:[#allocation4 + $0x10] sm:$0xff]  ;;  %4427 = vmatprep.subr.bf16.mxu0 %v4426_v61 }
 0x418   : > { %1133 = vrot.lane.b32.xlu1 %v5128_v16, %s6126_s9 }
 0x41a   : > { %4429 = vmatpush3.bf16.msra.mxu0 %v4428_v63 }
 0x41b   : > { %4451 = vmatprep.subr.bf16.mxu0 %v4780_v48 }
 0x480   : > { %v4744_v51 = vpop.permute.xlu1 %4743 }
 0x481   : > { %v4746_v53 = vunpack.i.h.bf16 %v4744_v51  ;;  %v4745_v54 = vunpack.i.l.bf16 %v4744_v51 }
 0x483   : > { %v1135_v0 = vsel %vm6112_vm9, %v4746_v53, %v4745_v54 }
 0x484   : > { %v1140_v6 = vmax.f32 %v5067_v42, %v1135_v0 }
 0x48a   : > { %v1134_v1 = vpop.permute.xlu1 %1133 }
 0x48b   : > { %v1136_v2 = vsel %vm6112_vm9, %v4745_v54, %v1134_v1  ;;  %v1142_v3 = vmax.f32 %v5128_v16, %v1134_v1 }
 0x48c   : > { %v1141_v5 = vmax.f32 %v5069_v45, %v1136_v2 }
 0x48d   : > { %1150 = vrot.lane.b32.xlu1 %v1142_v3, %s4774_s11 }
 0x48e   : > { %v4747_v7 = vpack.i.bf16 %v1140_v6, %v1141_v5 }
 0x490   : > { %4748 = vrot.lane.b32.xlu0 %v4747_v7, %s4774_s11 }
 0x4ff   : > { %v1151_v8 = vpop.permute.xlu1 %1150 }
 0x500   : > { %v1159_v9 = vmax.f32 %v1142_v3, %v1151_v8  ;;  %v1479_v3 = vld [vmem:[%s6098_s2 + $0x2] sm:$0x3] }
 0x502   : > { %4159 = vmatmul.mubr.msk.f32.vlgmr.msra.gmra.mrb[2].mxu1 %vm1160_vm12, %v1159_v9  ;;  %v4749_v10 = vpop.permute.xlu0 %4748  ;;  %vm1319_vm12 = vcmask 818176  }
 0x503   : > { %v4751_v11 = vunpack.i.h.bf16 %v4749_v10  ;;  %v4750_v12 = vunpack.i.l.bf16 %v4749_v10  ;;  %4179 = vmatprep.mubr.msk.f32.mxu1 %vm4781_vm4, %v4779_v47 }
 0x505   : > { %v1152_v13 = vsel %vm6110_vm10, %v4751_v11, %v4750_v12  ;;  %v1153_v45 = vsel %vm6110_vm10, %v4750_v12, %v1151_v8  ;;  %vm1404_vm10 = vcmask 162816  }
 0x506   : > { %v1158_v42 = vmax.f32 %v1141_v5, %v1153_v45  ;;  %v1157_v14 = vmax.f32 %v1140_v6, %v1152_v13 }
 0x508   : > { %1232 = vmatprep.mubr.f32.mxu0 %v1158_v42  ;;  %v4795_v42 = vmov 63  }
 0x509   : > { %1233 = vmatmul.mubr.f32.vlgmr.msra.gmra.mrb[6].mxu0 %v1157_v14  ;;  %4753 = vset.pattern.permute.xlu1 %v4795_v42  ;;  %v5287_v14 = vld [vmem:[%s6097_s1 + $0x30] sm:$0xff]  ;;  %v1701_v42 = vld [vmem:[%s6100_s4 + $0x40] sm:$0xff] }
 0x50a   : > { %4200 = vmatprep.mubr.msk.f32.mxu0 %vm4781_vm4, %v4779_v47 }
 0x5d5   : > { %v1304_v16 = vpop.f32.mrb[2].mxu1 }
 0x5d6   : > { %v4160_v17 = vpop.f32.mrb[3].mxu1 }
 0x5dc   : > { %v4006_v18 = vpop.f32.mrb[6].mxu0 }
 0x5dd   : > { %v4007_v19 = vpop.f32.mrb[7].mxu0 }
 0x5de   : > { %v4008_v20 = vadd.f32 %v4007_v19, %v4006_v18 }
 0x5e0   : > { %v1305_v21 = vadd.f32 %v4008_v20, %v1304_v16 }
 0x5e2   : > { %1309 = vrot.lane.b32.xlu0 %v1305_v21, %s4770_s30 }
 0x654   : > { %v1310_v22 = vpop.permute.xlu0 %1309 }
 0x655   : > { %1313 = vst.msk [vmem:[#allocation2] sm:$0xff] %vm1312_vm13, %v1310_v22 }
 0x65c   : > { %v1321_v23 = vld [vmem:[#allocation2] sm:$0xff] }
 0x65d   : > { %1323 = vrot.lane.b32.xlu0 %v1321_v23, %s4785_s28  ;;  %1316 = vrot.lane.b32.xlu1 %v1321_v23, %s4786_s29 }
 0x661   : > { %1335 = vrot.lane.b32.xlu0 %v1321_v23, %s4774_s11  ;;  %1329 = vrot.lane.b32.xlu1 %v1321_v23, %s4787_s16 }
 0x665   : > { %1347 = vrot.lane.b32.xlu0 %v1321_v23, %s4776_s13  ;;  %1341 = vrot.lane.b32.xlu1 %v1321_v23, %s4773_s10 }
 0x669   : > { %1363 = vrot.lane.b32.xlu0 %v4973_v15, %s4788_s17  ;;  %1361 = vrot.lane.b32.xlu1 %v1321_v23, %s4788_s17 }
 0x66d   : > { %1373 = vrot.lane.b32.xlu0 %v1321_v23, %s4789_s18  ;;  %1353 = vrot.lane.b32.xlu1 %v1321_v23, %s4790_s19 }
 0x671   : > { %1375 = vrot.lane.b32.xlu1 %v4973_v15, %s4789_s18  ;;  %1400 = vrot.lane.b32.xlu0 %v4941_v41, %s4792_s20 }
 0x675   : > { %1402 = vrot.lane.b32.xlu1 %v5236_v25, %s4792_s20  ;;  %1395 = vperm.xlu0 %4752, %v4908_v49   ;;  %s4797_s20 = smov 60  }
 0x6cf   : > { %v1324_v26 = vpop.permute.xlu0 %1323  ;;  %v1317_v27 = vpop.permute.xlu1 %1316 }
 0x6d0   : > { %1326 = vst.msk [vmem:[#allocation3 + $0x18] sm:$0xff] %vm1319_vm12, %v1324_v26  ;;  %1320 = vst.msk [vmem:[#allocation3] sm:$0xff] %vm1319_vm12, %v1317_v27 }
 0x6d3   : > { %v1336_v28 = vpop.permute.xlu0 %1335  ;;  %v1330_v29 = vpop.permute.xlu1 %1329 }
 0x6d4   : > { %1338 = vst.msk [vmem:[#allocation3 + $0x48] sm:$0xff] %vm1319_vm12, %v1336_v28  ;;  %1332 = vst.msk [vmem:[#allocation3 + $0x30] sm:$0xff] %vm1319_vm12, %v1330_v29 }
 0x6d7   : > { %v1348_v41 = vpop.permute.xlu0 %1347  ;;  %v1342_v30 = vpop.permute.xlu1 %1341  ;;  %v1383_v31 = vld [vmem:[#allocation3] sm:$0xff]  ;;  %v1384_v32 = vld [vmem:[#allocation3 + $0x18] sm:$0xff] }
 0x6d8   : > { %1350 = vst.msk [vmem:[#allocation3 + $0x78] sm:$0xff] %vm1319_vm12, %v1348_v41  ;;  %1344 = vst.msk [vmem:[#allocation3 + $0x60] sm:$0xff] %vm1319_vm12, %v1342_v30  ;;  %v4440_v49 = vpack.c.bf16 %v1384_v32, %v1383_v31 }
 0x6da   : > { %4441 = vmatpush3.bf16.msra.mxu1 %v4440_v49 }
 0x6db   : > { %v1364_v33 = vpop.permute.xlu0 %1363  ;;  %v1362_v34 = vpop.permute.xlu1 %1361  ;;  %4442 = vmatprep.subr.bf16.mxu1 %v4780_v48  ;;  %v1385_v35 = vld [vmem:[#allocation3 + $0x30] sm:$0xff]  ;;  %v1386_v36 = vld [vmem:[#allocation3 + $0x48] sm:$0xff] }
 0x6dc   : > { %v1366_v37 = vsel %vm1365_vm11, %v1362_v34, %v1364_v33  ;;  %v4443_v38 = vpack.c.bf16 %v1386_v36, %v1385_v35 }
 0x6dd   : > { %1368 = vst.msk [vmem:[#allocation3 + $0xa8] sm:$0xff] %vm1319_vm12, %v1366_v37 }
 0x6de   : > { %4444 = vmatpush3.bf16.msra.mxu1 %v4443_v38 }
 0x6df   : > { %v1354_v39 = vpop.permute.xlu1 %1353  ;;  %4445 = vmatprep.subr.bf16.mxu1 %v4780_v48  ;;  %v1387_v40 = vld [vmem:[#allocation3 + $0x60] sm:$0xff]  ;;  %v1388_v43 = vld [vmem:[#allocation3 + $0x78] sm:$0xff]  ;;  %v1374_v46 = vpop.permute.xlu0 %1373 }
 0x6e0   : > { %1356 = vst.msk [vmem:[#allocation3 + $0x90] sm:$0xff] %vm1319_vm12, %v1354_v39  ;;  %v4446_v44 = vpack.c.bf16 %v1388_v43, %v1387_v40 }
 0x6e2   : > { %4447 = vmatpush3.bf16.msra.mxu1 %v4446_v44 }
 0x6e3   : > { %v1376_v50 = vpop.permute.xlu1 %1375  ;;  %4448 = vmatprep.subr.bf16.mxu1 %v4780_v48  ;;  %v1401_v57 = vpop.permute.xlu0 %1400 }
 0x6e4   : > { %v1378_v51 = vsel %vm1377_vm6, %v1374_v46, %v1376_v50  ;;  %v1390_v53 = vld [vmem:[#allocation3 + $0xa8] sm:$0xff] }
 0x6e5   : > { %1380 = vst.msk [vmem:[#allocation3 + $0xc0] sm:$0xff] %vm1319_vm12, %v1378_v51 }
 0x6e7   : > { %v1389_v52 = vld [vmem:[#allocation3 + $0x90] sm:$0xff]  ;;  %v1403_v59 = vpop.permute.xlu1 %1402 }
 0x6e8   : > { %v4449_v54 = vpack.c.bf16 %v1390_v53, %v1389_v52  ;;  %v1405_v60 = vsel %vm1404_vm10, %v1401_v57, %v1403_v59  ;;  %vm1480_vm10 = vcmp.gt.f32.partialorder %v1479_v3, 0.0  ;;  %v1664_v52 = vld [vmem:[%s6098_s2 + $0x2] sm:$0x3] }
 0x6e9   : > { %v1481_v5 = vsel %vm1480_vm10, 1, %v4783_v56 }
 0x6ea   : > { %4450 = vmatpush3.bf16.msra.mxu1 %v4449_v54  ;;  %v1489_v6 = vrot.slane %v1481_v5, %v4961_v58  ;;  %v1485_v7 = vrot.slane %v1481_v5, %v4958_v55  ;;  %v1696_v5 = vld [vmem:[%s6100_s4 + $0x18] sm:$0xff] }
 0x6eb   : > { %4177 = vmatprep.subr.mxu1 %v4779_v47 }
 0x6ec   : > { %v1391_v61 = vld [vmem:[#allocation3 + $0xc0] sm:$0xff]  ;;  %vm1491_vm5 = vcmp.eq.s32.totalorder %v1489_v6, 1  ;;  %vm1490_vm9 = vcmp.eq.s32.totalorder %v1485_v7, 1 }
 0x6ee   : > { %4178 = vmatpush3.msra.mxu1 %v1391_v61 }
 0x6ef   : > { %4180 = vmatmul.mubr.msk.f32.vlgmr.msra.gmra.mrb[4].mxu1 %vm913_vm0, %v1405_v60  ;;  %4463 = vmatprep.subr.bf16.mxu1 %v4780_v48 }
 0x6f0   : > { %4227 = vmatprep.mubr.msk.f32.mxu1 %vm4781_vm4, %v4779_v47 }
 0x6f4   : > { %v1396_v62 = vpop.permute.xlu0 %1395 }
 0x7c2   : > { %v1474_v63 = vpop.f32.mrb[4].mxu1 }
 0x7c3   : > { %v1475_v0 = vadd.f32 %v1474_v63, %v1396_v62  ;;  %v4181_v1 = vpop.f32.mrb[5].mxu1  ;;  %v1693_v62 = vld [vmem:[%s6100_s4] sm:$0xff]  ;;  %v1694_v63 = vld [vmem:[%s6100_s4 + $0x8] sm:$0xff] }
 0x7c4   : > { %v4464_v3 = vpack.c.bf16 %v1694_v63, %v1693_v62 }
 0x7c5   : > { %v1478_v2 = vmax.f32 %v1475_v0, 0.0  ;;  %v1695_v0 = vld [vmem:[%s6100_s4 + $0x10] sm:$0xff] }
 0x7c6   : > { %4465 = vmatpush3.bf16.msra.mxu1 %v4464_v3  ;;  %v4467_v7 = vpack.c.bf16 %v1696_v5, %v1695_v0  ;;  %v1951_v3 = vld [vmem:[%s6098_s2 + $0x3] sm:$0x1] }
 0x7c7   : > { %1493 = vrot.lane.b32.xlu1 %v1478_v2, %s6128_s23  ;;  %4466 = vmatprep.subr.bf16.mxu1 %v4780_v48 }
 0x7ca   : > { %4468 = vmatpush3.bf16.msra.mxu1 %v4467_v7 }
 0x7cb   : > { %4469 = vmatprep.subr.bf16.mxu1 %v4780_v48 }
 0x839   : > { %v1494_v8 = vpop.permute.xlu1 %1493 }
 0x83a   : > { %v1497_v9 = vsel %vm1491_vm5, %v1494_v8, 0.0  ;;  %v1496_v10 = vsel %vm1490_vm9, %v1494_v8, 0.0  ;;  %vm1665_vm5 = vcmp.gt.f32.partialorder %v1664_v52, 0.0  ;;  %v1697_v8 = vld [vmem:[%s6100_s4 + $0x20] sm:$0xff] }
 0x83b   : > { %1502 = vrot.lane.b32.xlu0 %v1497_v9, %s6124_s21  ;;  %1500 = vrot.lane.b32.xlu1 %v1496_v10, %s6124_s21  ;;  %v1666_v53 = vsel %vm1665_vm5, 1, %v4783_v56  ;;  %v1698_v9 = vld [vmem:[%s6100_s4 + $0x28] sm:$0xff]  ;;  %vm4798_vm5 = vmmov 1   ;;  %s4805_s21 = smov 102  }
 0x83c   : > { %v1674_v54 = vrot.slane %v1666_v53, %v4961_v58  ;;  %v1670_v57 = vrot.slane %v1666_v53, %v4958_v55  ;;  %v4470_v10 = vpack.c.bf16 %v1698_v9, %v1697_v8 }
 0x83e   : > { %vm1676_vm9 = vcmp.eq.s32.totalorder %v1674_v54, 1  ;;  %vm1675_vm10 = vcmp.eq.s32.totalorder %v1670_v57, 1  ;;  %4471 = vmatpush3.bf16.msra.mxu1 %v4470_v10 }
 0x83f   : > { %4472 = vmatprep.subr.bf16.mxu1 %v4780_v48 }
 0x8ad   : > { %v1503_v11 = vpop.permute.xlu0 %1502  ;;  %v1501_v12 = vpop.permute.xlu1 %1500 }
 0x8ae   : > { %v1505_v13 = vsel %vm1504_vm8, %v1501_v12, %v1503_v11  ;;  %v1699_v11 = vld [vmem:[%s6100_s4 + $0x30] sm:$0xff]  ;;  %v1700_v12 = vld [vmem:[%s6100_s4 + $0x38] sm:$0xff] }
 0x8af   : > { %1507 = vst.msk [vmem:[#allocation2] sm:$0xff] %vm1312_vm13, %v1505_v13 }
 0x8b6   : > { %v1514_v45 = vld [vmem:[#allocation2] sm:$0xff] }
 0x8b7   : > { %1516 = vrot.lane.b32.xlu0 %v1514_v45, %s4785_s28  ;;  %1510 = vrot.lane.b32.xlu1 %v1514_v45, %s4786_s29 }
 0x8bb   : > { %1528 = vrot.lane.b32.xlu0 %v1514_v45, %s4774_s11  ;;  %1522 = vrot.lane.b32.xlu1 %v1514_v45, %s4787_s16 }
 0x8bf   : > { %1540 = vrot.lane.b32.xlu0 %v1514_v45, %s4776_s13  ;;  %1534 = vrot.lane.b32.xlu1 %v1514_v45, %s4773_s10 }
 0x8c3   : > { %1556 = vrot.lane.b32.xlu0 %v4973_v15, %s4788_s17  ;;  %1554 = vrot.lane.b32.xlu1 %v1514_v45, %s4788_s17 }
 0x8c7   : > { %1565 = vrot.lane.b32.xlu0 %v1514_v45, %s4789_s18  ;;  %1546 = vrot.lane.b32.xlu1 %v1514_v45, %s4790_s19  ;;  %v4473_v45 = vpack.c.bf16 %v1700_v12, %v1699_v11  ;;  %v4809_v11 = vmov 65   ;;  %v5428_v12 = vld [vmem:[%s6097_s1 + $0x18] sm:$0xff] }
 0x8c9   : > { %4474 = vmatpush3.bf16.msra.mxu1 %v4473_v45 }
 0x8ca   : > { %4475 = vmatprep.subr.bf16.mxu1 %v4780_v48 }
 0x8cb   : > { %1567 = vrot.lane.b32.xlu1 %v4973_v15, %s4789_s18  ;;  %1589 = vrot.lane.b32.xlu0 %v5236_v25, %s4796_s22  ;;  %s4806_s22 = smov 4  }
 0x8cf   : > { %1585 = vperm.xlu1 %4753, %v5287_v14  }
 0x929   : > { %v1517_v16 = vpop.permute.xlu0 %1516  ;;  %v1511_v17 = vpop.permute.xlu1 %1510 }
 0x92a   : > { %1519 = vst.msk [vmem:[#allocation3 + $0x18] sm:$0xff] %vm1319_vm12, %v1517_v16  ;;  %1513 = vst.msk [vmem:[#allocation3] sm:$0xff] %vm1319_vm12, %v1511_v17  ;;  %v1702_v16 = vld [vmem:[%s6100_s4 + $0x48] sm:$0xff] }
 0x92b   : > { %v4476_v17 = vpack.c.bf16 %v1702_v16, %v1701_v42 }
 0x92d   : > { %v1529_v18 = vpop.permute.xlu0 %1528  ;;  %v1523_v19 = vpop.permute.xlu1 %1522  ;;  %4477 = vmatpush3.bf16.msra.mxu1 %v4476_v17 }
 0x92e   : > { %1531 = vst.msk [vmem:[#allocation3 + $0x48] sm:$0xff] %vm1319_vm12, %v1529_v18  ;;  %1525 = vst.msk [vmem:[#allocation3 + $0x30] sm:$0xff] %vm1319_vm12, %v1523_v19  ;;  %v1703_v18 = vld [vmem:[%s6100_s4 + $0x50] sm:$0xff]  ;;  %v1704_v19 = vld [vmem:[%s6100_s4 + $0x58] sm:$0x1]  ;;  %4478 = vmatprep.subr.bf16.mxu1 %v4780_v48 }
 0x931   : > { %v1541_v15 = vpop.permute.xlu0 %1540  ;;  %v1535_v20 = vpop.permute.xlu1 %1534  ;;  %v1573_v21 = vld [vmem:[#allocation3] sm:$0xff]  ;;  %v1574_v22 = vld [vmem:[#allocation3 + $0x18] sm:$0xff] }
 0x932   : > { %1543 = vst.msk [vmem:[#allocation3 + $0x78] sm:$0xff] %vm1319_vm12, %v1541_v15  ;;  %1537 = vst.msk [vmem:[#allocation3 + $0x60] sm:$0xff] %vm1319_vm12, %v1535_v20  ;;  %v4452_v23 = vpack.c.bf16 %v1574_v22, %v1573_v21  ;;  %v4479_v15 = vpack.c.bf16 %v1704_v19, %v1703_v18 }
 0x934   : > { %4453 = vmatpush3.bf16.msra.mxu0 %v4452_v23 }
 0x935   : > { %v1557_v24 = vpop.permute.xlu0 %1556  ;;  %v1555_v26 = vpop.permute.xlu1 %1554  ;;  %4454 = vmatprep.subr.bf16.mxu0 %v4780_v48  ;;  %v1575_v27 = vld [vmem:[#allocation3 + $0x30] sm:$0xff]  ;;  %v1576_v28 = vld [vmem:[#allocation3 + $0x48] sm:$0xff] }
 0x936   : > { %v1558_v29 = vsel %vm1365_vm11, %v1555_v26, %v1557_v24  ;;  %v4455_v41 = vpack.c.bf16 %v1576_v28, %v1575_v27 }
 0x937   : > { %1560 = vst.msk [vmem:[#allocation3 + $0xa8] sm:$0xff] %vm1319_vm12, %v1558_v29  ;;  %v4804_v29 = vmov 64  }
 0x938   : > { %4456 = vmatpush3.bf16.msra.mxu0 %v4455_v41  ;;  %4754 = vset.pattern.permute.xlu1 %v4804_v29  ;;  %v5386_v41 = vld [vmem:[%s6097_s1 + $0x10] sm:$0xff] }
 0x939   : > { %v1547_v30 = vpop.permute.xlu1 %1546  ;;  %4457 = vmatprep.subr.bf16.mxu0 %v4780_v48  ;;  %v1577_v31 = vld [vmem:[#allocation3 + $0x60] sm:$0xff]  ;;  %v1578_v32 = vld [vmem:[#allocation3 + $0x78] sm:$0xff]  ;;  %v1566_v33 = vpop.permute.xlu0 %1565 }
 0x93a   : > { %1549 = vst.msk [vmem:[#allocation3 + $0x90] sm:$0xff] %vm1319_vm12, %v1547_v30  ;;  %v4458_v49 = vpack.c.bf16 %v1578_v32, %v1577_v31 }
 0x93c   : > { %4459 = vmatpush3.bf16.msra.mxu0 %v4458_v49 }
 0x93d   : > { %v1568_v34 = vpop.permute.xlu1 %1567  ;;  %4460 = vmatprep.subr.bf16.mxu0 %v4780_v48  ;;  %v1590_v39 = vpop.permute.xlu0 %1589 }
 0x93e   : > { %v1569_v35 = vsel %vm1377_vm6, %v1566_v33, %v1568_v34  ;;  %v1580_v37 = vld [vmem:[#allocation3 + $0xa8] sm:$0xff] }
 0x93f   : > { %1571 = vst.msk [vmem:[#allocation3 + $0xc0] sm:$0xff] %vm1319_vm12, %v1569_v35 }
 0x941   : > { %v1579_v36 = vld [vmem:[#allocation3 + $0x90] sm:$0xff] }
 0x942   : > { %v4461_v38 = vpack.c.bf16 %v1580_v37, %v1579_v36 }
 0x944   : > { %4462 = vmatpush3.bf16.msra.mxu0 %v4461_v38 }
 0x945   : > { %4198 = vmatprep.subr.mxu0 %v4779_v47 }
 0x946   : > { %v1581_v40 = vld [vmem:[#allocation3 + $0xc0] sm:$0xff] }
 0x948   : > { %4199 = vmatpush3.msra.mxu0 %v1581_v40 }
 0x949   : > { %4201 = vmatmul.mubr.msk.f32.vlgmr.msra.gmra.mrb[8].mxu0 %vm913_vm0, %v1590_v39  ;;  %4482 = vmatprep.subr.bf16.mxu0 %v4780_v48 }
 0x94a   : > { %4248 = vmatprep.mubr.msk.f32.mxu0 %vm4781_vm4, %v4779_v47 }
 0x94e   : > { %v1586_v43 = vpop.permute.xlu1 %1585 }
 0xa1c   : > { %v1659_v44 = vpop.f32.mrb[8].mxu0 }
 0xa1d   : > { %v1660_v46 = vadd.f32 %v1659_v44, %v1586_v43  ;;  %v4202_v50 = vpop.f32.mrb[9].mxu0 }
 0xa1f   : > { %v1663_v51 = vmax.f32 %v1660_v46, 0.0 }
 0xa21   : > { %1678 = vrot.lane.b32.xlu0 %v1663_v51, %s6128_s23  ;;  %s4808_s23 = smov 107  }
 0xa93   : > { %v1679_v59 = vpop.permute.xlu0 %1678 }
 0xa94   : > { %v1682_v60 = vsel %vm1676_vm9, %v1679_v59, 0.0  ;;  %v1681_v61 = vsel %vm1675_vm10, %v1679_v59, 0.0  ;;  %vm4480_vm9 = vmpackc.low %vm1164_vm7, %vm4798_vm5  ;;  %vm1716_vm10 = vcmask 728064   ;;  %vm1797_vm7 = vcmask 449688  }
 0xa95   : > { %1687 = vrot.lane.b32.xlu0 %v1682_v60, %s4797_s20  ;;  %1685 = vrot.lane.b32.xlu1 %v1681_v61, %s4797_s20  ;;  %vm1876_vm5 = vcmask 31744  }
 0xa96   : > { %4481 = vmatpush3.bf16.msk.msra.mxu1 %vm4480_vm9, %v4479_v15  ;;  %vm1952_vm9 = vcmp.gt.f32.partialorder %v1951_v3, 0.0 }
 0xa97   : > { %4494 = vmatprep.subr.bf16.mxu1 %v4780_v48  ;;  %v1953_v5 = vsel %vm1952_vm9, 1, %v4783_v56  ;;  %vm2387_vm9 = vcmask 949248  }
 0xb07   : > { %v1688_v1 = vpop.permute.xlu0 %1687  ;;  %v1686_v2 = vpop.permute.xlu1 %1685 }
 0xb08   : > { %v1690_v6 = vsel %vm1689_vm2, %v1686_v2, %v1688_v1 }
 0xb09   : > { %1692 = vst.msk [vmem:[#allocation5] sm:$0xff] %vm1319_vm12, %v1690_v6  ;;  %v1957_v6 = vrot.slane %v1953_v5, %v4958_v55 }
 0xb10   : > { %v5346_v13 = vld [vmem:[#allocation5] sm:$0xff] }
 0xb11   : > { %1707 = vrot.lane.b32.xlu1 %v5346_v13, %s6126_s9  ;;  %s4807_s9 = smov 40  }
 0xb83   : > { %v1708_v20 = vpop.permute.xlu1 %1707 }
 0xb84   : > { %v1710_v21 = vmax.f32 %v5346_v13, %v1708_v20 }
 0xb86   : > { %1712 = vrot.lane.b32.xlu0 %v1710_v21, %s4787_s16 }
 0xbf8   : > { %v1713_v22 = vpop.permute.xlu0 %1712 }
 0xbf9   : > { %v1715_v23 = vmax.f32 %v1710_v21, %v1713_v22 }
 0xbfb   : > { %4228 = vmatmul.mubr.msk.f32.vlgmr.msra.gmra.mrb[6].mxu1 %vm1716_vm10, %v1715_v23  ;;  %vm1958_vm10 = vcmp.eq.s32.totalorder %v1957_v6, 1 }
 0xbfc   : > { %4269 = vmatprep.mubr.msk.f32.mxu1 %vm4781_vm4, %v4779_v47 }
 0xcce   : > { %v1789_v24 = vpop.f32.mrb[6].mxu1 }
 0xccf   : > { %1794 = vrot.lane.b32.xlu1 %v1789_v24, %s4770_s30  ;;  %v4229_v26 = vpop.f32.mrb[7].mxu1 }
 0xd41   : > { %v1795_v27 = vpop.permute.xlu1 %1794 }
 0xd42   : > { %1798 = vst.msk [vmem:[#allocation2] sm:$0xff] %vm1797_vm7, %v1795_v27 }
 0xd49   : > { %v1805_v28 = vld [vmem:[#allocation2] sm:$0xff] }
 0xd4a   : > { %1807 = vrot.lane.b32.xlu1 %v1805_v28, %s4799_s26  ;;  %1801 = vrot.lane.b32.xlu0 %v1805_v28, %s4800_s15 }
 0xd4e   : > { %1819 = vrot.lane.b32.xlu1 %v1805_v28, %s4774_s11  ;;  %1813 = vrot.lane.b32.xlu0 %v1805_v28, %s4801_s12 }
 0xd52   : > { %1831 = vrot.lane.b32.xlu1 %v1805_v28, %s4776_s13  ;;  %1825 = vrot.lane.b32.xlu0 %v1805_v28, %s4773_s10 }
 0xd56   : > { %1843 = vrot.lane.b32.xlu1 %v1805_v28, %s4802_s14  ;;  %1837 = vrot.lane.b32.xlu0 %v1805_v28, %s4803_s8 }
 0xd5a   : > { %1849 = vrot.lane.b32.xlu0 %v1805_v28, %s4805_s21  ;;  %1872 = vrot.lane.b32.xlu1 %v5236_v25, %s4806_s22 }
 0xd5e   : > { %1874 = vrot.lane.b32.xlu0 %v5386_v41, %s4806_s22  ;;  %1867 = vperm.xlu1 %4754, %v5287_v14  }
 0xd62   : > { %4755 = vset.pattern.permute.xlu1 %v4809_v11 }
 0xdbc   : > { %v1808_v30 = vpop.permute.xlu1 %1807  ;;  %v1802_v31 = vpop.permute.xlu0 %1801 }
 0xdbd   : > { %1810 = vst.msk [vmem:[#allocation3 + $0x18] sm:$0xff] %vm511_vm15, %v1808_v30  ;;  %1804 = vst.msk [vmem:[#allocation3] sm:$0xff] %vm511_vm15, %v1802_v31 }
 0xdc0   : > { %v1820_v32 = vpop.permute.xlu1 %1819  ;;  %v1814_v49 = vpop.permute.xlu0 %1813 }
 0xdc1   : > { %1822 = vst.msk [vmem:[#allocation3 + $0x48] sm:$0xff] %vm511_vm15, %v1820_v32  ;;  %1816 = vst.msk [vmem:[#allocation3 + $0x30] sm:$0xff] %vm511_vm15, %v1814_v49 }
 0xdc4   : > { %v1832_v25 = vpop.permute.xlu1 %1831  ;;  %v1826_v33 = vpop.permute.xlu0 %1825  ;;  %v1855_v34 = vld [vmem:[#allocation3] sm:$0xff]  ;;  %v1856_v35 = vld [vmem:[#allocation3 + $0x18] sm:$0xff] }
 0xdc5   : > { %1834 = vst.msk [vmem:[#allocation3 + $0x78] sm:$0xff] %vm511_vm15, %v1832_v25  ;;  %1828 = vst.msk [vmem:[#allocation3 + $0x60] sm:$0xff] %vm511_vm15, %v1826_v33  ;;  %v4483_v36 = vpack.c.bf16 %v1856_v35, %v1855_v34 }
 0xdc7   : > { %4484 = vmatpush3.bf16.msra.mxu0 %v4483_v36  ;;  %v2133_v36 = vld [vmem:[%s6101_s5] sm:$0xff] }
 0xdc8   : > { %v1844_v37 = vpop.permute.xlu1 %1843  ;;  %v1838_v38 = vpop.permute.xlu0 %1837  ;;  %4485 = vmatprep.subr.bf16.mxu0 %v4780_v48  ;;  %v1857_v39 = vld [vmem:[#allocation3 + $0x30] sm:$0xff]  ;;  %v1858_v40 = vld [vmem:[#allocation3 + $0x48] sm:$0xff] }
 0xdc9   : > { %1846 = vst.msk [vmem:[#allocation3 + $0xa8] sm:$0xff] %vm511_vm15, %v1844_v37  ;;  %1840 = vst.msk [vmem:[#allocation3 + $0x90] sm:$0xff] %vm511_vm15, %v1838_v38  ;;  %v4486_v43 = vpack.c.bf16 %v1858_v40, %v1857_v39  ;;  %v2134_v37 = vld [vmem:[%s6101_s5 + $0x8] sm:$0xff]  ;;  %v2135_v38 = vld [vmem:[%s6101_s5 + $0x10] sm:$0xff] }
 0xdca   : > { %v4507_v40 = vpack.c.bf16 %v2134_v37, %v2133_v36 }
 0xdcb   : > { %4487 = vmatpush3.bf16.msra.mxu0 %v4486_v43  ;;  %v2136_v43 = vld [vmem:[%s6101_s5 + $0x18] sm:$0xff] }
 0xdcc   : > { %v1850_v44 = vpop.permute.xlu0 %1849  ;;  %4488 = vmatprep.subr.bf16.mxu0 %v4780_v48  ;;  %v1859_v46 = vld [vmem:[#allocation3 + $0x60] sm:$0xff]  ;;  %v1860_v50 = vld [vmem:[#allocation3 + $0x78] sm:$0xff]  ;;  %v1873_v57 = vpop.permute.xlu1 %1872 }
 0xdcd   : > { %1852 = vst.msk [vmem:[#allocation3 + $0xc0] sm:$0xff] %vm511_vm15, %v1850_v44  ;;  %v4489_v51 = vpack.c.bf16 %v1860_v50, %v1859_v46  ;;  %v4510_v46 = vpack.c.bf16 %v2136_v43, %v2135_v38 }
 0xdcf   : > { %4490 = vmatpush3.bf16.msra.mxu0 %v4489_v51 }
 0xdd0   : > { %4491 = vmatprep.subr.bf16.mxu0 %v4780_v48  ;;  %v1861_v52 = vld [vmem:[#allocation3 + $0x90] sm:$0xff]  ;;  %v1862_v53 = vld [vmem:[#allocation3 + $0xa8] sm:$0xff]  ;;  %v1875_v59 = vpop.permute.xlu0 %1874 }
 0xdd1   : > { %v4492_v54 = vpack.c.bf16 %v1862_v53, %v1861_v52  ;;  %v1877_v60 = vsel %vm1876_vm5, %v1873_v57, %v1875_v59  ;;  %v2137_v53 = vld [vmem:[%s6101_s5 + $0x20] sm:$0xf] }
 0xdd3   : > { %4493 = vmatpush3.bf16.msra.mxu0 %v4492_v54  ;;  %v2120_v54 = vld [vmem:[%s6098_s2 + $0x3] sm:$0x1] }
 0xdd4   : > { %4246 = vmatprep.subr.mxu0 %v4779_v47  ;;  %v1863_v61 = vld [vmem:[#allocation3 + $0xc0] sm:$0xff] }
 0xdd7   : > { %4247 = vmatpush3.msra.mxu0 %v1863_v61 }
 0xdd8   : > { %4249 = vmatmul.mubr.msk.f32.vlgmr.msra.gmra.mrb[10].mxu0 %vm913_vm0, %v1877_v60  ;;  %4506 = vmatprep.subr.bf16.mxu0 %v4780_v48 }
 0xdd9   : > { %4282 = vmatprep.mubr.msk.f32.mxu0 %vm4781_vm4, %v4779_v47  ;;  %4508 = vmatpush3.bf16.msra.mxu0 %v4507_v40 }
 0xdda   : > { %4509 = vmatprep.subr.bf16.mxu0 %v4780_v48 }
 0xddd   : > { %v1868_v62 = vpop.permute.xlu1 %1867  ;;  %4511 = vmatpush3.bf16.msra.mxu0 %v4510_v46 }
 0xdde   : > { %4280 = vmatprep.subr.mxu0 %v4779_v47 }
 0xde1   : > { %4281 = vmatpush3.msk.msra.mxu0 %vm515_vm14, %v2137_v53 }
 0xde2   : > { %4539 = vmatprep.subr.bf16.mxu0 %v4780_v48 }
 0xeab   : > { %v1946_v63 = vpop.f32.mrb[10].mxu0 }
 0xeac   : > { %v1947_v0 = vadd.f32 %v1946_v63, %v1868_v62  ;;  %v4250_v1 = vpop.f32.mrb[11].mxu0 }
 0xead   : > { %v2314_v1 = vld [vmem:[#allocation2 + $0x20] sm:$0xff] }
 0xeae   : > { %v1950_v2 = vmax.f32 %v1947_v0, 0.0 }
 0xeb0   : > { %1960 = vrot.lane.b32.xlu0 %v1950_v2, %s4807_s9 }
 0xf22   : > { %v1961_v7 = vpop.permute.xlu0 %1960 }
 0xf23   : > { %v1963_v8 = vsel %vm1958_vm10, %v1961_v7, 0.0 }
 0xf24   : > { %1965 = vrot.lane.b32.xlu1 %v1963_v8, %s4808_s23  ;;  %s4816_s23 = smov 12  }
 0xf96   : > { %v1966_v9 = vpop.permute.xlu1 %1965 }
 0xf97   : > { %1968 = vst.msk [vmem:[#allocation2] sm:$0xff] %vm1797_vm7, %v1966_v9  ;;  %vm2121_vm7 = vcmp.gt.f32.partialorder %v2120_v54, 0.0 }
 0xf98   : > { %v2122_v57 = vsel %vm2121_vm7, 1, %v4783_v56 }
 0xf99   : > { %v2126_v59 = vrot.slane %v2122_v57, %v4958_v55 }
 0xf9b   : > { %vm2127_vm5 = vcmp.eq.s32.totalorder %v2126_v59, 1 }
 0xf9e   : > { %v1975_v10 = vld [vmem:[#allocation2] sm:$0xff] }
 0xf9f   : > { %1977 = vrot.lane.b32.xlu1 %v1975_v10, %s4799_s26  ;;  %1971 = vrot.lane.b32.xlu0 %v1975_v10, %s4800_s15 }
 0xfa3   : > { %1989 = vrot.lane.b32.xlu1 %v1975_v10, %s4774_s11  ;;  %1983 = vrot.lane.b32.xlu0 %v1975_v10, %s4801_s12  ;;  %s6131_s12 = smov 79  }
 0xfa7   : > { %2001 = vrot.lane.b32.xlu1 %v1975_v10, %s4776_s13  ;;  %1995 = vrot.lane.b32.xlu0 %v1975_v10, %s4773_s10 }
 0xfab   : > { %2013 = vrot.lane.b32.xlu1 %v1975_v10, %s4802_s14  ;;  %2007 = vrot.lane.b32.xlu0 %v1975_v10, %s4803_s8  ;;  %s6138_s14 = smov 90  }
 0xfaf   : > { %2019 = vrot.lane.b32.xlu0 %v1975_v10, %s4805_s21  ;;  %2042 = vrot.lane.b32.xlu1 %v5386_v41, %s4797_s20 }
 0xfb3   : > { %2044 = vrot.lane.b32.xlu0 %v5428_v12, %s4797_s20  ;;  %2037 = vperm.xlu1 %4755, %v5287_v14  }
0x1011   : > { %v1978_v45 = vpop.permute.xlu1 %1977  ;;  %v1972_v42 = vpop.permute.xlu0 %1971 }
0x1012   : > { %1980 = vst.msk [vmem:[#allocation3 + $0x18] sm:$0xff] %vm511_vm15, %v1978_v45  ;;  %1974 = vst.msk [vmem:[#allocation3] sm:$0xff] %vm511_vm15, %v1972_v42  ;;  %v5507_v45 = vld [vmem:[%s6097_s1 + $0x20] sm:$0xff] }
0x1015   : > { %v1990_v16 = vpop.permute.xlu1 %1989  ;;  %v1984_v17 = vpop.permute.xlu0 %1983 }
0x1016   : > { %1992 = vst.msk [vmem:[#allocation3 + $0x48] sm:$0xff] %vm511_vm15, %v1990_v16  ;;  %1986 = vst.msk [vmem:[#allocation3 + $0x30] sm:$0xff] %vm511_vm15, %v1984_v17 }
0x1019   : > { %v2002_v18 = vpop.permute.xlu1 %2001  ;;  %v1996_v19 = vpop.permute.xlu0 %1995  ;;  %v2025_v15 = vld [vmem:[#allocation3] sm:$0xff]  ;;  %v2026_v20 = vld [vmem:[#allocation3 + $0x18] sm:$0xff] }
0x101a   : > { %2004 = vst.msk [vmem:[#allocation3 + $0x78] sm:$0xff] %vm511_vm15, %v2002_v18  ;;  %1998 = vst.msk [vmem:[#allocation3 + $0x60] sm:$0xff] %vm511_vm15, %v1996_v19  ;;  %v4495_v21 = vpack.c.bf16 %v2026_v20, %v2025_v15 }
0x101c   : > { %4496 = vmatpush3.bf16.msra.mxu1 %v4495_v21 }
0x101d   : > { %v2014_v22 = vpop.permute.xlu1 %2013  ;;  %v2008_v23 = vpop.permute.xlu0 %2007  ;;  %4497 = vmatprep.subr.bf16.mxu1 %v4780_v48  ;;  %v2027_v24 = vld [vmem:[#allocation3 + $0x30] sm:$0xff]  ;;  %v2028_v26 = vld [vmem:[#allocation3 + $0x48] sm:$0xff] }
0x101e   : > { %2016 = vst.msk [vmem:[#allocation3 + $0xa8] sm:$0xff] %vm511_vm15, %v2014_v22  ;;  %2010 = vst.msk [vmem:[#allocation3 + $0x90] sm:$0xff] %vm511_vm15, %v2008_v23  ;;  %v4498_v27 = vpack.c.bf16 %v2028_v26, %v2027_v24  ;;  %v4811_v23 = vmov 66  }
0x101f   : > { %4756 = vset.pattern.permute.xlu0 %v4811_v23 }
0x1020   : > { %4499 = vmatpush3.bf16.msra.mxu1 %v4498_v27 }
0x1021   : > { %v2020_v28 = vpop.permute.xlu0 %2019  ;;  %4500 = vmatprep.subr.bf16.mxu1 %v4780_v48  ;;  %v2029_v29 = vld [vmem:[#allocation3 + $0x60] sm:$0xff]  ;;  %v2030_v41 = vld [vmem:[#allocation3 + $0x78] sm:$0xff]  ;;  %v2043_v25 = vpop.permute.xlu1 %2042 }
0x1022   : > { %2022 = vst.msk [vmem:[#allocation3 + $0xc0] sm:$0xff] %vm511_vm15, %v2020_v28  ;;  %v4501_v30 = vpack.c.bf16 %v2030_v41, %v2029_v29 }
0x1024   : > { %4502 = vmatpush3.bf16.msra.mxu1 %v4501_v30 }
0x1025   : > { %4503 = vmatprep.subr.bf16.mxu1 %v4780_v48  ;;  %v2031_v31 = vld [vmem:[#allocation3 + $0x90] sm:$0xff]  ;;  %v2032_v32 = vld [vmem:[#allocation3 + $0xa8] sm:$0xff]  ;;  %v2045_v33 = vpop.permute.xlu0 %2044 }
0x1026   : > { %v4504_v49 = vpack.c.bf16 %v2032_v32, %v2031_v31  ;;  %v2046_v34 = vsel %vm1689_vm2, %v2043_v25, %v2045_v33 }
0x1028   : > { %4505 = vmatpush3.bf16.msra.mxu1 %v4504_v49 }
0x1029   : > { %4267 = vmatprep.subr.mxu1 %v4779_v47  ;;  %v2033_v35 = vld [vmem:[#allocation3 + $0xc0] sm:$0xff] }
0x102c   : > { %4268 = vmatpush3.msra.mxu1 %v2033_v35 }
0x102d   : > { %4270 = vmatmul.mubr.msk.f32.vlgmr.msra.gmra.mrb[8].mxu1 %vm913_vm0, %v2046_v34  ;;  %4512 = vmatprep.subr.bf16.mxu1 %v4780_v48 }
0x1032   : > { %v2038_v39 = vpop.permute.xlu1 %2037 }
0x1100   : > { %v2115_v44 = vpop.f32.mrb[8].mxu1 }
0x1101   : > { %v2116_v50 = vadd.f32 %v2115_v44, %v2038_v39  ;;  %v4271_v51 = vpop.f32.mrb[9].mxu1 }
0x1103   : > { %v2119_v52 = vmax.f32 %v2116_v50, 0.0 }
0x1105   : > { %2129 = vrot.lane.b32.xlu0 %v2119_v52, %s4807_s9  ;;  %s4810_s9 = smov 88  }
0x1177   : > { %v2130_v60 = vpop.permute.xlu0 %2129 }
0x1178   : > { %v2132_v61 = vsel %vm2127_vm5, %v2130_v60, 0.0 }
0x1179   : > { %2139 = vrot.lane.b32.xlu1 %v2132_v61, %s4810_s9  ;;  %s4813_s9 = smov 28  }
0x117d   : > { %2223 = vrot.lane.b32.xlu1 %v5346_v13, %s4770_s30  ;;  %v5487_v13 = vld [vmem:[#allocation2 + $0x8] sm:$0xff] }
0x11eb   : > { %v2140_v62 = vpop.permute.xlu1 %2139 }
0x11ec   : > { %4283 = vmatmul.mubr.msk.f32.vlgmr.msra.gmra.mrb[12].mxu0 %vm511_vm15, %v2140_v62  ;;  %vm2390_vm15 = vcmask 130048  }
0x11ed   : > { %4303 = vmatprep.mubr.msk.f32.mxu0 %vm4781_vm4, %v4779_v47 }
0x11ef   : > { %v2224_v63 = vpop.permute.xlu1 %2223 }
0x11f0   : > { %2226 = vst.msk [vmem:[#allocation2 + $0x18] sm:$0xff] %vm1312_vm13, %v2224_v63 }
0x11f7   : > { %v2228_v0 = vld [vmem:[#allocation2 + $0x18] sm:$0xff] }
0x11f8   : > { %2233 = vrot.lane.b32.xlu1 %v2228_v0, %s4786_s29 }
0x11fc   : > { %2245 = vrot.lane.b32.xlu1 %v2228_v0, %s4785_s28 }
0x1200   : > { %2257 = vrot.lane.b32.xlu1 %v2228_v0, %s4787_s16 }
0x1204   : > { %2269 = vrot.lane.b32.xlu1 %v2228_v0, %s4774_s11 }
0x1208   : > { %2281 = vrot.lane.b32.xlu1 %v2228_v0, %s4773_s10 }
0x120c   : > { %2293 = vrot.lane.b32.xlu1 %v2228_v0, %s4776_s13 }
0x1210   : > { %2305 = vrot.lane.b32.xlu1 %v2228_v0, %s4790_s19 }
0x1214   : > { %2321 = vrot.lane.b32.xlu1 %v5487_v13, %s4788_s17 }
0x1218   : > { %2325 = vrot.lane.b32.xlu1 %v2314_v1, %s4788_s17 }
0x121c   : > { %2343 = vrot.lane.b32.xlu1 %v5487_v13, %s4789_s18 }
0x1220   : > { %2347 = vrot.lane.b32.xlu1 %v2314_v1, %s4789_s18 }
0x1224   : > { %2385 = vrot.lane.b32.xlu1 %v5507_v45, %s4800_s15 }
0x126a   : > { %v2234_v2 = vpop.permute.xlu1 %2233 }
0x126b   : > { %2238 = vst.msk [vmem:[#allocation3 + $0x18] sm:$0xff] %vm1319_vm12, %v2234_v2 }
0x126e   : > { %v2246_v3 = vpop.permute.xlu1 %2245 }
0x126f   : > { %2250 = vst.msk [vmem:[#allocation3 + $0x48] sm:$0xff] %vm1319_vm12, %v2246_v3 }
0x1272   : > { %v2258_v5 = vpop.permute.xlu1 %2257  ;;  %v2358_v29 = vld [vmem:[#allocation3 + $0x18] sm:$0xff] }
0x1273   : > { %2262 = vst.msk [vmem:[#allocation3 + $0x78] sm:$0xff] %vm1319_vm12, %v2258_v5 }
0x1276   : > { %v2270_v6 = vpop.permute.xlu1 %2269 }
0x1277   : > { %2274 = vst.msk [vmem:[#allocation3 + $0xa8] sm:$0xff] %vm1319_vm12, %v2270_v6 }
0x127a   : > { %v2282_v7 = vpop.permute.xlu1 %2281  ;;  %v2362_v25 = vld [vmem:[#allocation3 + $0x78] sm:$0xff] }
0x127b   : > { %2286 = vst.msk [vmem:[#allocation3 + $0xd8] sm:$0xff] %vm1319_vm12, %v2282_v7 }
0x127e   : > { %v2294_v8 = vpop.permute.xlu1 %2293  ;;  %v2364_v36 = vld [vmem:[#allocation3 + $0xa8] sm:$0xff] }
0x127f   : > { %2298 = vst.msk [vmem:[#allocation3 + $0x108] sm:$0xff] %vm1319_vm12, %v2294_v8 }
0x1282   : > { %v2306_v9 = vpop.permute.xlu1 %2305  ;;  %v2366_v40 = vld [vmem:[#allocation3 + $0xd8] sm:$0xff] }
0x1283   : > { %2310 = vst.msk [vmem:[#allocation3 + $0x138] sm:$0xff] %vm1319_vm12, %v2306_v9 }
0x1286   : > { %v5511_v42 = vpop.permute.xlu1 %2321  ;;  %v2368_v50 = vld [vmem:[#allocation3 + $0x108] sm:$0xff] }
0x128a   : > { %v2326_v17 = vpop.permute.xlu1 %2325  ;;  %v2370_v57 = vld [vmem:[#allocation3 + $0x138] sm:$0xff] }
0x128e   : > { %v5523_v20 = vpop.permute.xlu1 %2343 }
0x1292   : > { %v5526_v21 = vpop.permute.xlu1 %2347 }
0x1296   : > { %v5529_v22 = vpop.permute.xlu1 %2385 }
0x1297   : > { %3945 = vmatprep.mubr.msk.f32.mxu1 %vm2390_vm15, %v5529_v22 }
0x12bf   : > { %v2212_v10 = vpop.f32.mrb[12].mxu0 }
0x12c0   : > { %2218 = vrot.lane.b32.xlu0 %v2212_v10, %s4770_s30  ;;  %v4284_v11 = vpop.f32.mrb[13].mxu0 }
0x12c4   : > { %2323 = vrot.lane.b32.xlu0 %v2228_v0, %s4788_s17 }
0x1332   : > { %v2219_v16 = vpop.permute.xlu0 %2218 }
0x1333   : > { %2221 = vst.msk [vmem:[#allocation2] sm:$0xff] %vm1312_vm13, %v2219_v16  ;;  %v2464_v16 = vld [vmem:[%s6098_s2 + $0x2] sm:$0x3] }
0x1334   : > { %vm2465_vm10 = vcmp.gt.f32.partialorder %v2464_v16, 0.0 }
0x1336   : > { %v2324_v18 = vpop.permute.xlu0 %2323 }
0x1337   : > { %v2328_v19 = vsel %vm1365_vm11, %v2324_v18, %v2326_v17  ;;  %v2466_v17 = vsel %vm2465_vm10, 1, %v4783_v56 }
0x1338   : > { %2332 = vst.msk [vmem:[#allocation3 + $0x168] sm:$0xff] %vm1319_vm12, %v2328_v19  ;;  %v2474_v18 = vrot.slane %v2466_v17, %v4961_v58  ;;  %v2470_v19 = vrot.slane %v2466_v17, %v4958_v55  ;;  %v2676_v17 = vld [vmem:[%s6102_s6 + $0x48] sm:$0xff] }
0x133a   : > { %v2227_v15 = vld [vmem:[#allocation2] sm:$0xff]  ;;  %vm2476_vm7 = vcmp.eq.s32.totalorder %v2474_v18, 1  ;;  %vm2475_vm5 = vcmp.eq.s32.totalorder %v2470_v19, 1  ;;  %v2678_v19 = vld [vmem:[%s6102_s6 + $0x58] sm:$0xff] }
0x133b   : > { %2231 = vrot.lane.b32.xlu0 %v2227_v15, %s4786_s29  ;;  %v2675_v18 = vld [vmem:[%s6102_s6 + $0x40] sm:$0xff] }
0x133f   : > { %2243 = vrot.lane.b32.xlu0 %v2227_v15, %s4785_s28 }
0x1343   : > { %2255 = vrot.lane.b32.xlu0 %v2227_v15, %s4787_s16 }
0x1347   : > { %2267 = vrot.lane.b32.xlu0 %v2227_v15, %s4774_s11 }
0x134b   : > { %2279 = vrot.lane.b32.xlu0 %v2227_v15, %s4773_s10 }
0x134f   : > { %2291 = vrot.lane.b32.xlu0 %v2227_v15, %s4776_s13 }
0x1353   : > { %2303 = vrot.lane.b32.xlu0 %v2227_v15, %s4790_s19 }
0x1357   : > { %2319 = vrot.lane.b32.xlu0 %v2227_v15, %s4788_s17 }
0x135b   : > { %2341 = vrot.lane.b32.xlu0 %v2227_v15, %s4789_s18 }
0x135f   : > { %2345 = vrot.lane.b32.xlu0 %v2228_v0, %s4789_s18  ;;  %v2372_v0 = vld [vmem:[#allocation3 + $0x168] sm:$0xff] }
0x1363   : > { %2383 = vrot.lane.b32.xlu0 %v5428_v12, %s4800_s15  ;;  %v2360_v12 = vld [vmem:[#allocation3 + $0x48] sm:$0xff]  ;;  %s6130_s15 = smov 68  }
0x1367   : > { %2378 = vperm.xlu0 %4756, %v5287_v14  }
0x13ad   : > { %v2232_v24 = vpop.permute.xlu0 %2231 }
0x13ae   : > { %2237 = vst.msk [vmem:[#allocation3] sm:$0xff] %vm1319_vm12, %v2232_v24 }
0x13b1   : > { %v2244_v26 = vpop.permute.xlu0 %2243 }
0x13b2   : > { %2249 = vst.msk [vmem:[#allocation3 + $0x30] sm:$0xff] %vm1319_vm12, %v2244_v26 }
0x13b5   : > { %v2256_v27 = vpop.permute.xlu0 %2255  ;;  %v2357_v28 = vld [vmem:[#allocation3] sm:$0xff] }
0x13b6   : > { %2261 = vst.msk [vmem:[#allocation3 + $0x60] sm:$0xff] %vm1319_vm12, %v2256_v27  ;;  %v4513_v41 = vpack.c.bf16 %v2358_v29, %v2357_v28  ;;  %v4812_v27 = vmov 67   ;;  %v5594_v28 = vld [vmem:[%s6097_s1 + $0x30] sm:$0xff] }
0x13b7   : > { %4757 = vset.pattern.permute.xlu1 %v4812_v27  ;;  %v2681_v27 = vld [vmem:[%s6102_s6 + $0x70] sm:$0xff] }
0x13b8   : > { %4514 = vmatpush1.bf16.msra.mxu1 %v4513_v41 }
0x13b9   : > { %v2268_v30 = vpop.permute.xlu0 %2267  ;;  %4515 = vmatprep.subr.bf16.mxu1 %v4780_v48  ;;  %v2359_v31 = vld [vmem:[#allocation3 + $0x30] sm:$0xff] }
0x13ba   : > { %2273 = vst.msk [vmem:[#allocation3 + $0x90] sm:$0xff] %vm1319_vm12, %v2268_v30  ;;  %v4516_v14 = vpack.c.bf16 %v2360_v12, %v2359_v31 }
0x13bc   : > { %4517 = vmatpush1.bf16.msra.mxu1 %v4516_v14 }
0x13bd   : > { %v2280_v32 = vpop.permute.xlu0 %2279  ;;  %4518 = vmatprep.subr.bf16.mxu1 %v4780_v48  ;;  %v2361_v49 = vld [vmem:[#allocation3 + $0x60] sm:$0xff] }
0x13be   : > { %2285 = vst.msk [vmem:[#allocation3 + $0xc0] sm:$0xff] %vm1319_vm12, %v2280_v32  ;;  %v4519_v33 = vpack.c.bf16 %v2362_v25, %v2361_v49 }
0x13c0   : > { %4520 = vmatpush1.bf16.msra.mxu1 %v4519_v33 }
0x13c1   : > { %v2292_v34 = vpop.permute.xlu0 %2291  ;;  %4521 = vmatprep.subr.bf16.mxu1 %v4780_v48  ;;  %v2363_v35 = vld [vmem:[#allocation3 + $0x90] sm:$0xff] }
0x13c2   : > { %2297 = vst.msk [vmem:[#allocation3 + $0xf0] sm:$0xff] %vm1319_vm12, %v2292_v34  ;;  %v4522_v37 = vpack.c.bf16 %v2364_v36, %v2363_v35 }
0x13c4   : > { %4523 = vmatpush1.bf16.msra.mxu1 %v4522_v37 }
0x13c5   : > { %v2304_v38 = vpop.permute.xlu0 %2303  ;;  %4524 = vmatprep.subr.bf16.mxu1 %v4780_v48  ;;  %v2365_v39 = vld [vmem:[#allocation3 + $0xc0] sm:$0xff] }
0x13c6   : > { %2309 = vst.msk [vmem:[#allocation3 + $0x120] sm:$0xff] %vm1319_vm12, %v2304_v38  ;;  %v4525_v43 = vpack.c.bf16 %v2366_v40, %v2365_v39 }
0x13c8   : > { %4526 = vmatpush1.bf16.msra.mxu1 %v4525_v43 }
0x13c9   : > { %v2320_v44 = vpop.permute.xlu0 %2319  ;;  %4527 = vmatprep.subr.bf16.mxu1 %v4780_v48  ;;  %v2367_v46 = vld [vmem:[#allocation3 + $0xf0] sm:$0xff] }
0x13ca   : > { %v2327_v51 = vsel %vm1365_vm11, %v2320_v44, %v5511_v42  ;;  %v4528_v52 = vpack.c.bf16 %v2368_v50, %v2367_v46 }
0x13cb   : > { %2331 = vst.msk [vmem:[#allocation3 + $0x150] sm:$0xff] %vm1319_vm12, %v2327_v51 }
0x13cc   : > { %4529 = vmatpush1.bf16.msra.mxu1 %v4528_v52 }
0x13cd   : > { %v2342_v53 = vpop.permute.xlu0 %2341  ;;  %4530 = vmatprep.subr.bf16.mxu1 %v4780_v48  ;;  %v2369_v54 = vld [vmem:[#allocation3 + $0x120] sm:$0xff] }
0x13ce   : > { %v2349_v59 = vsel %vm1377_vm6, %v2342_v53, %v5523_v20  ;;  %v4531_v60 = vpack.c.bf16 %v2370_v57, %v2369_v54 }
0x13cf   : > { %2353 = vst.msk [vmem:[#allocation3 + $0x180] sm:$0xff] %vm1319_vm12, %v2349_v59 }
0x13d0   : > { %4532 = vmatpush1.bf16.msra.mxu1 %v4531_v60 }
0x13d1   : > { %v2346_v61 = vpop.permute.xlu0 %2345  ;;  %4533 = vmatprep.subr.bf16.mxu1 %v4780_v48 }
0x13d2   : > { %v2350_v62 = vsel %vm1377_vm6, %v2346_v61, %v5526_v21  ;;  %v2371_v63 = vld [vmem:[#allocation3 + $0x150] sm:$0xff] }
0x13d3   : > { %2354 = vst.msk [vmem:[#allocation3 + $0x198] sm:$0xff] %vm1319_vm12, %v2350_v62  ;;  %v4534_v1 = vpack.c.bf16 %v2372_v0, %v2371_v63  ;;  %v2668_v63 = vld [vmem:[%s6102_s6 + $0x8] sm:$0xff]  ;;  %v2671_v0 = vld [vmem:[%s6102_s6 + $0x20] sm:$0xff] }
0x13d5   : > { %4535 = vmatpush1.bf16.msra.mxu1 %v4534_v1  ;;  %v2384_v5 = vpop.permute.xlu0 %2383  ;;  %v2667_v1 = vld [vmem:[%s6102_s6] sm:$0xff] }
0x13d6   : > { %4536 = vmatprep.subr.bf16.mxu1 %v4780_v48  ;;  %v2373_v2 = vld [vmem:[#allocation3 + $0x180] sm:$0xff]  ;;  %v2388_v7 = vsel %vm2387_vm9, %v2384_v5, %v5529_v22  ;;  %vm6141_vm9 = vcmask 1039360  }
0x13d7   : > { %v2669_v5 = vld [vmem:[%s6102_s6 + $0x10] sm:$0xff]  ;;  %vm6142_vm10 = vmmov %vm6141_vm9 }
0x13da   : > { %v2374_v3 = vld [vmem:[#allocation3 + $0x198] sm:$0xff] }
0x13db   : > { %v4537_v6 = vpack.c.bf16 %v2374_v3, %v2373_v2  ;;  %v4551_v2 = vpack.c.bf16 %v2671_v0, %v2668_v63  ;;  %v2670_v3 = vld [vmem:[%s6102_s6 + $0x18] sm:$0xff]  ;;  %v2648_v63 = vld [vmem:[%s6098_s2 + $0x2] sm:$0x3] }
0x13dc   : > { %v2703_v0 = vld [vmem:[%s6102_s6 + $0x120] sm:$0xf] }
0x13dd   : > { %4538 = vmatpush1.bf16.msra.mxu1 %v4537_v6  ;;  %v2672_v6 = vld [vmem:[%s6102_s6 + $0x28] sm:$0xff] }
0x13de   : > { %4575 = vmatprep.subr.bf16.mxu1 %v4780_v48 }
0x13e0   : > { %2458 = vmatmul.mubr.f32.vlgmr.msra.gmra.mrb[10].mxu1 %v2388_v7 }
0x13e1   : > { %4332 = vmatprep.mubr.msk.f32.mxu1 %vm4781_vm4, %v4779_v47 }
0x13e6   : > { %v2379_v8 = vpop.permute.xlu0 %2378 }
0x14b3   : > { %v2459_v9 = vpop.f32.mrb[10].mxu1 }
0x14b4   : > { %v2460_v10 = vadd.f32 %v2459_v9, %v2379_v8  ;;  %v2461_v11 = vpop.f32.mrb[11].mxu1  ;;  %v4553_v8 = vpack.c.bf16 %v2670_v3, %v2667_v1  ;;  %v4576_v9 = vpack.c.bf16 %v2672_v6, %v2669_v5  ;;  %v2705_v1 = vld [vmem:[%s6102_s6 + $0x130] sm:$0xf] }
0x14b5   : > { %v2677_v11 = vld [vmem:[%s6102_s6 + $0x50] sm:$0xff] }
0x14b6   : > { %v2463_v42 = vmax.f32 %v2460_v10, 0.0  ;;  %v2674_v10 = vld [vmem:[%s6102_s6 + $0x38] sm:$0xff]  ;;  %4577 = vmatpush3.bf16.msra.mxu1 %v4576_v9  ;;  %v2865_v9 = vld [vmem:[#allocation4] sm:$0xff] }
0x14b7   : > { %v4555_v16 = vpack.c.bf16 %v2677_v11, %v2674_v10  ;;  %4578 = vmatprep.subr.bf16.mxu1 %v4780_v48  ;;  %v2866_v10 = vld [vmem:[#allocation4 + $0x8] sm:$0xff]  ;;  %v2867_v11 = vld [vmem:[#allocation4 + $0x10] sm:$0xff] }
0x14b8   : > { %2478 = vrot.lane.b32.xlu1 %v2463_v42, %s6130_s15  ;;  %v2673_v42 = vld [vmem:[%s6102_s6 + $0x30] sm:$0xff] }
0x152a   : > { %v2479_v15 = vpop.permute.xlu1 %2478 }
0x152b   : > { %v2482_v20 = vsel %vm2476_vm7, %v2479_v15, 0.0  ;;  %v2481_v21 = vsel %vm2475_vm5, %v2479_v15, 0.0  ;;  %v4557_v15 = vpack.c.bf16 %v2676_v17, %v2673_v42  ;;  %vm6143_vm7 = vcmask 1031168  }
0x152c   : > { %2487 = vrot.lane.b32.xlu0 %v2482_v20, %s6131_s12  ;;  %2485 = vrot.lane.b32.xlu1 %v2481_v21, %s6131_s12  ;;  %v2680_v20 = vld [vmem:[%s6102_s6 + $0x68] sm:$0xff]  ;;  %v2683_v21 = vld [vmem:[%s6102_s6 + $0x80] sm:$0xff] }
0x159e   : > { %v2488_v22 = vpop.permute.xlu0 %2487  ;;  %v2486_v23 = vpop.permute.xlu1 %2485 }
0x159f   : > { %v2489_v24 = vsel %vm1504_vm8, %v2486_v23, %v2488_v22  ;;  %v4579_v22 = vpack.c.bf16 %v2678_v19, %v2675_v18  ;;  %v4559_v23 = vpack.c.bf16 %v2683_v21, %v2680_v20 }
0x15a0   : > { %2491 = vst.msk [vmem:[#allocation2] sm:$0xff] %vm1312_vm13, %v2489_v24  ;;  %v2679_v24 = vld [vmem:[%s6102_s6 + $0x60] sm:$0xff]  ;;  %vm6133_vm13 = vcmask 556032  }
0x15a1   : > { %4580 = vmatpush3.bf16.msra.mxu1 %v4579_v22 }
0x15a2   : > { %4581 = vmatprep.subr.bf16.mxu1 %v4780_v48 }
0x15a7   : > { %v2498_v26 = vld [vmem:[#allocation2] sm:$0xff] }
0x15a8   : > { %2500 = vrot.lane.b32.xlu0 %v2498_v26, %s4785_s28  ;;  %2494 = vrot.lane.b32.xlu1 %v2498_v26, %s4786_s29  ;;  %s6214_s28 = smul.u32 12, %s6217_s25 }
0x15ac   : > { %2512 = vrot.lane.b32.xlu0 %v2498_v26, %s4774_s11  ;;  %2506 = vrot.lane.b32.xlu1 %v2498_v26, %s4787_s16 }
0x15b0   : > { %2524 = vrot.lane.b32.xlu0 %v2498_v26, %s4776_s13  ;;  %2518 = vrot.lane.b32.xlu1 %v2498_v26, %s4773_s10 }
0x15b4   : > { %2540 = vrot.lane.b32.xlu0 %v5487_v13, %s4788_s17  ;;  %2538 = vrot.lane.b32.xlu1 %v2498_v26, %s4788_s17  ;;  %s6135_s17 = smov 126  }
0x15b8   : > { %2549 = vrot.lane.b32.xlu0 %v2498_v26, %s4789_s18  ;;  %2530 = vrot.lane.b32.xlu1 %v2498_v26, %s4790_s19  ;;  %v2682_v26 = vld [vmem:[%s6102_s6 + $0x78] sm:$0xff] }
0x15bc   : > { %2551 = vrot.lane.b32.xlu1 %v5487_v13, %s4789_s18  ;;  %2573 = vrot.lane.b32.xlu0 %v5507_v45, %s4790_s19  ;;  %s6136_s18 = smov 92   ;;  %s6137_s19 = smov 91  }
0x15c0   : > { %2569 = vperm.xlu1 %4757, %v5594_v28  }
0x161a   : > { %v2501_v29 = vpop.permute.xlu0 %2500  ;;  %v2495_v41 = vpop.permute.xlu1 %2494 }
0x161b   : > { %2503 = vst.msk [vmem:[#allocation3 + $0x18] sm:$0xff] %vm1319_vm12, %v2501_v29  ;;  %2497 = vst.msk [vmem:[#allocation3] sm:$0xff] %vm1319_vm12, %v2495_v41  ;;  %v2684_v29 = vld [vmem:[%s6102_s6 + $0x88] sm:$0xff]  ;;  %v2686_v41 = vld [vmem:[%s6102_s6 + $0x98] sm:$0xff] }
0x161e   : > { %v2513_v30 = vpop.permute.xlu0 %2512  ;;  %v2507_v31 = vpop.permute.xlu1 %2506 }
0x161f   : > { %2515 = vst.msk [vmem:[#allocation3 + $0x48] sm:$0xff] %vm1319_vm12, %v2513_v30  ;;  %2509 = vst.msk [vmem:[#allocation3 + $0x30] sm:$0xff] %vm1319_vm12, %v2507_v31  ;;  %v2689_v30 = vld [vmem:[%s6102_s6 + $0xb0] sm:$0xff]  ;;  %v4561_v31 = vpack.c.bf16 %v2682_v26, %v2679_v24 }
0x1622   : > { %v2525_v13 = vpop.permute.xlu0 %2524  ;;  %v2519_v12 = vpop.permute.xlu1 %2518  ;;  %v2557_v14 = vld [vmem:[#allocation3] sm:$0xff]  ;;  %v2558_v32 = vld [vmem:[#allocation3 + $0x18] sm:$0xff] }
0x1623   : > { %2527 = vst.msk [vmem:[#allocation3 + $0x78] sm:$0xff] %vm1319_vm12, %v2525_v13  ;;  %2521 = vst.msk [vmem:[#allocation3 + $0x60] sm:$0xff] %vm1319_vm12, %v2519_v12  ;;  %v4540_v49 = vpack.c.bf16 %v2558_v32, %v2557_v14  ;;  %v4582_v13 = vpack.c.bf16 %v2684_v29, %v2681_v27  ;;  %v4563_v12 = vpack.c.bf16 %v2689_v30, %v2686_v41  ;;  %v2685_v14 = vld [vmem:[%s6102_s6 + $0x90] sm:$0xff]  ;;  %v2688_v32 = vld [vmem:[%s6102_s6 + $0xa8] sm:$0xff] }
0x1625   : > { %4541 = vmatpush3.bf16.msra.mxu0 %v4540_v49  ;;  %v2687_v49 = vld [vmem:[%s6102_s6 + $0xa0] sm:$0xff]  ;;  %4583 = vmatpush3.bf16.msra.mxu1 %v4582_v13 }
0x1626   : > { %v2541_v25 = vpop.permute.xlu0 %2540  ;;  %v2539_v33 = vpop.permute.xlu1 %2538  ;;  %4542 = vmatprep.subr.bf16.mxu0 %v4780_v48  ;;  %v2559_v34 = vld [vmem:[#allocation3 + $0x30] sm:$0xff]  ;;  %v2560_v35 = vld [vmem:[#allocation3 + $0x48] sm:$0xff]  ;;  %4584 = vmatprep.subr.bf16.mxu1 %v4780_v48 }
0x1627   : > { %v2542_v36 = vsel %vm1365_vm11, %v2539_v33, %v2541_v25  ;;  %v4543_v37 = vpack.c.bf16 %v2560_v35, %v2559_v34  ;;  %v2690_v25 = vld [vmem:[%s6102_s6 + $0xb8] sm:$0xff]  ;;  %v2692_v33 = vld [vmem:[%s6102_s6 + $0xc8] sm:$0xff]  ;;  %v2695_v34 = vld [vmem:[%s6102_s6 + $0xe0] sm:$0xff]  ;;  %v4565_v35 = vpack.c.bf16 %v2688_v32, %v2685_v14 }
0x1628   : > { %2544 = vst.msk [vmem:[#allocation3 + $0xa8] sm:$0xff] %vm1319_vm12, %v2542_v36  ;;  %v4585_v36 = vpack.c.bf16 %v2690_v25, %v2687_v49 }
0x1629   : > { %4544 = vmatpush3.bf16.msra.mxu0 %v4543_v37  ;;  %v4567_v37 = vpack.c.bf16 %v2695_v34, %v2692_v33 }
0x162a   : > { %v2531_v38 = vpop.permute.xlu1 %2530  ;;  %4545 = vmatprep.subr.bf16.mxu0 %v4780_v48  ;;  %v2561_v39 = vld [vmem:[#allocation3 + $0x60] sm:$0xff]  ;;  %v2562_v40 = vld [vmem:[#allocation3 + $0x78] sm:$0xff]  ;;  %v2550_v44 = vpop.permute.xlu0 %2549  ;;  %4586 = vmatpush3.bf16.msra.mxu1 %v4585_v36 }
0x162b   : > { %2533 = vst.msk [vmem:[#allocation3 + $0x90] sm:$0xff] %vm1319_vm12, %v2531_v38  ;;  %v4546_v43 = vpack.c.bf16 %v2562_v40, %v2561_v39  ;;  %v2691_v38 = vld [vmem:[%s6102_s6 + $0xc0] sm:$0xff]  ;;  %v2694_v39 = vld [vmem:[%s6102_s6 + $0xd8] sm:$0xff]  ;;  %v2693_v40 = vld [vmem:[%s6102_s6 + $0xd0] sm:$0xff]  ;;  %4587 = vmatprep.subr.bf16.mxu1 %v4780_v48 }
0x162d   : > { %4547 = vmatpush3.bf16.msra.mxu0 %v4546_v43  ;;  %v2696_v43 = vld [vmem:[%s6102_s6 + $0xe8] sm:$0xff] }
0x162e   : > { %v2552_v46 = vpop.permute.xlu1 %2551  ;;  %4548 = vmatprep.subr.bf16.mxu0 %v4780_v48  ;;  %v2574_v54 = vpop.permute.xlu0 %2573 }
0x162f   : > { %v2553_v50 = vsel %vm1377_vm6, %v2550_v44, %v2552_v46  ;;  %v2564_v52 = vld [vmem:[#allocation3 + $0xa8] sm:$0xff]  ;;  %v2701_v46 = vld [vmem:[%s6102_s6 + $0x110] sm:$0xff]  ;;  %vm2649_vm6 = vcmp.gt.f32.partialorder %v2648_v63, 0.0 }
0x1630   : > { %2555 = vst.msk [vmem:[#allocation3 + $0xc0] sm:$0xff] %vm1319_vm12, %v2553_v50  ;;  %v2698_v44 = vld [vmem:[%s6102_s6 + $0xf8] sm:$0xff]  ;;  %v4569_v50 = vpack.c.bf16 %v2694_v39, %v2691_v38 }
0x1632   : > { %v2563_v51 = vld [vmem:[#allocation3 + $0x90] sm:$0xff] }
0x1633   : > { %v4549_v53 = vpack.c.bf16 %v2564_v52, %v2563_v51  ;;  %v4588_v51 = vpack.c.bf16 %v2696_v43, %v2693_v40  ;;  %v4571_v52 = vpack.c.bf16 %v2701_v46, %v2698_v44 }
0x1635   : > { %4550 = vmatpush3.bf16.msra.mxu0 %v4549_v53  ;;  %v2697_v53 = vld [vmem:[%s6102_s6 + $0xf0] sm:$0xff]  ;;  %4589 = vmatpush3.bf16.msra.mxu1 %v4588_v51 }
0x1636   : > { %4301 = vmatprep.subr.mxu0 %v4779_v47  ;;  %4590 = vmatprep.subr.bf16.mxu1 %v4780_v48 }
0x1637   : > { %v2565_v57 = vld [vmem:[#allocation3 + $0xc0] sm:$0xff] }
0x1639   : > { %4302 = vmatpush3.msra.mxu0 %v2565_v57  ;;  %v2699_v57 = vld [vmem:[%s6102_s6 + $0x100] sm:$0xff] }
0x163a   : > { %4304 = vmatmul.mubr.msk.f32.vlgmr.msra.gmra.mrb[14].mxu0 %vm913_vm0, %v2574_v54  ;;  %4552 = vmatprep.subr.bf16.mxu0 %v4551_v2  ;;  %v2700_v54 = vld [vmem:[%s6102_s6 + $0x108] sm:$0xff]  ;;  %v2650_v2 = vsel %vm2649_vm6, 1, %v4783_v56 }
0x163b   : > { %2788 = vmatprep.mubr.f32.mxu0 %v4779_v47  ;;  %4554 = vmatpush1.bf16.msra.mxu0 %v4553_v8  ;;  %v2654_v3 = vrot.slane %v2650_v2, %v4958_v55  ;;  %v2658_v5 = vrot.slane %v2650_v2, %v4961_v58 }
0x163c   : > { %4556 = vmatprep.subr.bf16.mxu0 %v4555_v16 }
0x163d   : > { %vm2659_vm11 = vcmp.eq.s32.totalorder %v2654_v3, 1  ;;  %vm2660_vm8 = vcmp.eq.s32.totalorder %v2658_v5, 1 }
0x163f   : > { %v2570_v59 = vpop.permute.xlu1 %2569  ;;  %4558 = vmatpush1.bf16.msra.mxu0 %v4557_v15 }
0x1640   : > { %4560 = vmatprep.subr.bf16.mxu0 %v4559_v23 }
0x1643   : > { %4562 = vmatpush1.bf16.msra.mxu0 %v4561_v31 }
0x1644   : > { %4564 = vmatprep.subr.bf16.mxu0 %v4563_v12 }
0x1647   : > { %4566 = vmatpush1.bf16.msra.mxu0 %v4565_v35 }
0x1648   : > { %4568 = vmatprep.subr.bf16.mxu0 %v4567_v37 }
0x164b   : > { %4570 = vmatpush1.bf16.msra.mxu0 %v4569_v50 }
0x164c   : > { %4572 = vmatprep.subr.bf16.mxu0 %v4571_v52 }
0x170d   : > { %v2643_v60 = vpop.f32.mrb[14].mxu0 }
0x170e   : > { %v2644_v61 = vadd.f32 %v2643_v60, %v2570_v59  ;;  %v4305_v62 = vpop.f32.mrb[15].mxu0  ;;  %v2702_v59 = vld [vmem:[%s6102_s6 + $0x118] sm:$0xff]  ;;  %v4573_v60 = vpack.c.bf16 %v2700_v54, %v2697_v53 }
0x170f   : > { %v2704_v62 = vld [vmem:[%s6102_s6 + $0x128] sm:$0xf] }
0x1710   : > { %v2647_v7 = vmax.f32 %v2644_v61, 0.0  ;;  %v4591_v61 = vpack.c.bf16 %v2702_v59, %v2699_v57  ;;  %4574 = vmatpush1.bf16.msra.mxu0 %v4573_v60 }
0x1711   : > { %3947 = vmatprep.subr.msk.mxu0 %vm515_vm14, %v2704_v62 }
0x1712   : > { %2662 = vrot.lane.b32.xlu0 %v2647_v7, %s6130_s15  ;;  %4592 = vmatpush3.bf16.msra.mxu1 %v4591_v61  ;;  %s278_s15 = scalar_lea.vmem %s6103_s7, %s6214_s28 }
0x1713   : > { %4330 = vmatprep.subr.mxu1 %v4779_v47 }
0x1714   : > { %3948 = vmatpush1.msk.msra.mxu0 %vm515_vm14, %v2703_v0 }
0x1716   : > { %4331 = vmatpush3.msk.msra.mxu1 %vm515_vm14, %v2705_v1  ;;  %vm6132_vm14 = vcmask 711680  }
0x1717   : > { %4629 = vmatprep.subr.bf16.mxu1 %v4780_v48 }
0x1784   : > { %v2663_v6 = vpop.permute.xlu0 %2662 }
0x1785   : > { %v2665_v7 = vsel %vm2659_vm11, %v2663_v6, 0.0  ;;  %v2666_v8 = vsel %vm2660_vm8, %v2663_v6, 0.0  ;;  %vm6146_vm11 = vmmov %vm6143_vm7  ;;  %vm6147_vm8 = vcmask 900096  }
0x1786   : > { %2710 = vrot.lane.b32.xlu0 %v2666_v8, %s4797_s20  ;;  %2708 = vrot.lane.b32.xlu1 %v2665_v7, %s4797_s20  ;;  %s6134_s20 = smov 127  }
0x178a   : > { %2888 = vrot.lane.b32.xlu0 %v2865_v9, %s4770_s30  ;;  %2890 = vrot.lane.b32.xlu1 %v2866_v10, %s4770_s30  ;;  %v3235_v10 = vld [vmem:[%s6097_s1 + $0x28] sm:$0xff] }
0x178e   : > { %2892 = vrot.lane.b32.xlu0 %v2867_v11, %s4770_s30 }
0x17f8   : > { %v2711_v42 = vpop.permute.xlu0 %2710  ;;  %v2709_v16 = vpop.permute.xlu1 %2708 }
0x17f9   : > { %v2712_v17 = vsel %vm1689_vm2, %v2709_v16, %v2711_v42  ;;  %vm6139_vm2 = vmmov %vm6132_vm14 }
0x17fa   : > { %3949 = vmatmul.mubr.msk.f32.vlgmr.msra.gmra.mrb[16].mxu0 %vm1319_vm12, %v2712_v17  ;;  %4333 = vmatmul.mubr.msk.f32.vlgmr.msra.gmra.mrb[12].mxu1 %vm1319_vm12, %v2712_v17  ;;  %vm6140_vm12 = vmmov %vm6133_vm13 }
0x17fb   : > { %vm6144_vm5 = vmmov %vm6140_vm12 }
0x17fc   : > { %v2889_v18 = vpop.permute.xlu0 %2888  ;;  %v2891_v19 = vpop.permute.xlu1 %2890  ;;  %vm6145_vm6 = vmmov %vm6144_vm5 }
0x17fd   : > { %2899 = vst.msk [vmem:[#allocation2 + $0x18] sm:$0xff] %vm704_vm3, %v2889_v18  ;;  %v2894_v15 = vsel %vm290_vm1, %v2889_v18, %v2891_v19 }
0x17fe   : > { %2900 = vst [vmem:[#allocation2 + $0x20] sm:$0xff] %v2894_v15 }
0x1800   : > { %v2893_v20 = vpop.permute.xlu0 %2892 }
0x1801   : > { %v2895_v21 = vsel %vm290_vm1, %v2891_v19, %v2893_v20 }
0x1802   : > { %2901 = vst.msk [vmem:[#allocation2 + $0x28] sm:$0xff] %vm6132_vm14, %v2895_v21  ;;  %vm6148_vm14 = vmmov %vm6144_vm5 }
0x1804   : > { %v5766_v29 = vld [vmem:[#allocation2 + $0x18] sm:$0xff] }
0x1809   : > { %v2907_v22 = vld [vmem:[#allocation2 + $0x28] sm:$0xff] }
0x180a   : > { %2913 = vst.msk [vmem:[#allocation3 + $0x28] sm:$0xff] %vm6133_vm13, %v2907_v22  ;;  %vm6149_vm13 = vmmov %vm6147_vm8 }
0x1811   : > { %v3241_v52 = vld [vmem:[#allocation3 + $0x28] sm:$0xff] }
0x18cd   : > { %v2790_v23 = vpop.f32.mrb[16].mxu0  ;;  %v2861_v24 = vpop.f32.mrb[12].mxu1 }
0x18ce   : > { %v4334_v26 = vpop.f32.mrb[13].mxu1  ;;  %2871 = vrot.lane.b32.xlu1 %v2790_v23, %s4770_s30  ;;  %v2792_v27 = vpop.f32.mrb[17].mxu0  ;;  %v4814_v23 = vmov 68  }
0x18cf   : > { %2873 = vrot.lane.b32.xlu0 %v2792_v27, %s4770_s30  ;;  %4758 = vset.pattern.permute.xlu1 %v4814_v23 }
0x18d2   : > { %2875 = vrot.lane.b32.xlu1 %v2861_v24, %s4770_s30 }
0x18d3   : > { %2936 = vrot.lane.b32.xlu0 %v2907_v22, %s6134_s20 }
0x18d6   : > { %2934 = vrot.lane.b32.xlu1 %v2894_v15, %s6134_s20 }
0x18d7   : > { %2932 = vrot.lane.b32.xlu0 %v5766_v29, %s6134_s20 }
0x18da   : > { %2974 = vrot.lane.b32.xlu1 %v2894_v15, %s6135_s17 }
0x18db   : > { %2976 = vrot.lane.b32.xlu0 %v2907_v22, %s6135_s17 }
0x18de   : > { %3014 = vrot.lane.b32.xlu1 %v2894_v15, %s4774_s11 }
0x18df   : > { %2972 = vrot.lane.b32.xlu0 %v5766_v29, %s6135_s17 }
0x18e2   : > { %3054 = vrot.lane.b32.xlu1 %v2894_v15, %s4773_s10 }
0x18e3   : > { %3016 = vrot.lane.b32.xlu0 %v2907_v22, %s4774_s11 }
0x18e6   : > { %3094 = vrot.lane.b32.xlu1 %v2894_v15, %s4776_s13 }
0x18e7   : > { %3012 = vrot.lane.b32.xlu0 %v5766_v29, %s4774_s11 }
0x18ea   : > { %3134 = vrot.lane.b32.xlu1 %v2894_v15, %s6136_s18 }
0x18eb   : > { %3056 = vrot.lane.b32.xlu0 %v2907_v22, %s4773_s10 }
0x18ee   : > { %3174 = vrot.lane.b32.xlu1 %v2894_v15, %s6137_s19 }
0x18ef   : > { %3052 = vrot.lane.b32.xlu0 %v5766_v29, %s4773_s10 }
0x18f2   : > { %3214 = vrot.lane.b32.xlu1 %v2894_v15, %s6138_s14 }
0x18f3   : > { %3096 = vrot.lane.b32.xlu0 %v2907_v22, %s4776_s13 }
0x18f7   : > { %3092 = vrot.lane.b32.xlu0 %v5766_v29, %s4776_s13 }
0x18fb   : > { %3136 = vrot.lane.b32.xlu0 %v2907_v22, %s6136_s18 }
0x18ff   : > { %3132 = vrot.lane.b32.xlu0 %v5766_v29, %s6136_s18 }
0x1903   : > { %3176 = vrot.lane.b32.xlu0 %v2907_v22, %s6137_s19 }
0x1907   : > { %3172 = vrot.lane.b32.xlu0 %v5766_v29, %s6137_s19 }
0x190b   : > { %3216 = vrot.lane.b32.xlu0 %v2907_v22, %s6138_s14 }
0x1940   : > { %v2872_v41 = vpop.permute.xlu1 %2871 }
0x1941   : > { %2882 = vst.msk [vmem:[#allocation2] sm:$0xff] %vm704_vm3, %v2872_v41  ;;  %v2874_v30 = vpop.permute.xlu0 %2873 }
0x1942   : > { %v5798_v31 = vsel %vm290_vm1, %v2872_v41, %v2874_v30 }
0x1943   : > { %v4593_v13 = vpack.c.bf16 %v2894_v15, %v5798_v31 }
0x1944   : > { %v2876_v12 = vpop.permute.xlu1 %2875 }
0x1945   : > { %v2878_v14 = vsel %vm290_vm1, %v2874_v30, %v2876_v12  ;;  %v2937_v32 = vpop.permute.xlu0 %2936  ;;  %4594 = vmatprep.subr.bf16.mxu0 %v4593_v13 }
0x1946   : > { %2884 = vst.msk [vmem:[#allocation2 + $0x10] sm:$0xff] %vm6139_vm2, %v2878_v14  ;;  %vm6150_vm2 = vcmask 891904  }
0x1947   : > { %2953 = vst.msk [vmem:[#allocation3 + $0x58] sm:$0xff] %vm6140_vm12, %v2937_v32  ;;  %vm6151_vm12 = vmmov %vm6144_vm5 }
0x1948   : > { %v2935_v49 = vpop.permute.xlu1 %2934  ;;  %v5804_v25 = vld [vmem:[#allocation2] sm:$0xff] }
0x1949   : > { %v5807_v33 = vsel %vm6141_vm9, %v2935_v49, %v2937_v32  ;;  %v2933_v34 = vpop.permute.xlu0 %2932  ;;  %2926 = vrot.lane.b32.xlu1 %v5804_v25, %s6134_s20  ;;  %v4595_v35 = vpack.c.bf16 %v5766_v29, %v5804_v25  ;;  %vm6152_vm9 = vmmov %vm6150_vm2 }
0x194a   : > { %v5814_v36 = vsel %vm6142_vm10, %v2933_v34, %v2935_v49  ;;  %vm6153_vm10 = vcmask 883712  }
0x194b   : > { %4596 = vmatpush1.bf16.msra.mxu0 %v4595_v35 }
0x194c   : > { %v2975_v37 = vpop.permute.xlu1 %2974 }
0x194d   : > { %v2977_v38 = vpop.permute.xlu0 %2976  ;;  %2966 = vrot.lane.b32.xlu1 %v5804_v25, %s6135_s17  ;;  %v2916_v39 = vld [vmem:[#allocation2 + $0x10] sm:$0xff] }
0x194e   : > { %v5819_v40 = vsel %vm6143_vm7, %v2975_v37, %v2977_v38  ;;  %2993 = vst.msk [vmem:[#allocation3 + $0x88] sm:$0xff] %vm6144_vm5, %v2977_v38  ;;  %2930 = vrot.lane.b32.xlu0 %v2916_v39, %s6134_s20  ;;  %vm6154_vm7 = vmmov %vm6144_vm5  ;;  %v3247_v12 = vld [vmem:[#allocation3 + $0x58] sm:$0xff] }
0x194f   : > { %2910 = vst.msk [vmem:[#allocation3 + $0x10] sm:$0xff] %vm6145_vm6, %v2916_v39  ;;  %vm6155_vm5 = vmmov %vm6153_vm10  ;;  %vm6156_vm6 = vcmask 752640  }
0x1950   : > { %v3015_v46 = vpop.permute.xlu1 %3014 }
0x1951   : > { %v2973_v43 = vpop.permute.xlu0 %2972  ;;  %3006 = vrot.lane.b32.xlu1 %v5804_v25, %s4774_s11 }
0x1952   : > { %v5827_v44 = vsel %vm6146_vm11, %v2973_v43, %v2975_v37  ;;  %2970 = vrot.lane.b32.xlu0 %v2916_v39, %s6135_s17  ;;  %vm6157_vm11 = vmmov %vm6154_vm7 }
0x1954   : > { %v3055_v60 = vpop.permute.xlu1 %3054 }
0x1955   : > { %v3017_v50 = vpop.permute.xlu0 %3016  ;;  %3046 = vrot.lane.b32.xlu1 %v5804_v25, %s4773_s10  ;;  %v3253_v49 = vld [vmem:[#allocation3 + $0x88] sm:$0xff] }
0x1956   : > { %v3238_v51 = vld [vmem:[#allocation3 + $0x10] sm:$0xff]  ;;  %v5833_v53 = vsel %vm6147_vm8, %v3015_v46, %v3017_v50  ;;  %3033 = vst.msk [vmem:[#allocation3 + $0xb8] sm:$0xff] %vm6148_vm14, %v3017_v50  ;;  %3010 = vrot.lane.b32.xlu0 %v2916_v39, %s4774_s11  ;;  %vm6158_vm8 = vmmov %vm6156_vm6  ;;  %vm6159_vm14 = vcmask 744448  }
0x1957   : > { %v4630_v54 = vpack.c.bf16 %v3241_v52, %v3238_v51 }
0x1958   : > { %v3095_v1 = vpop.permute.xlu1 %3094 }
0x1959   : > { %4631 = vmatpush1.bf16.msra.mxu1 %v4630_v54  ;;  %v3013_v57 = vpop.permute.xlu0 %3012  ;;  %3086 = vrot.lane.b32.xlu1 %v5804_v25, %s4776_s13 }
0x195a   : > { %4632 = vmatprep.subr.bf16.mxu1 %v4780_v48  ;;  %v5841_v59 = vsel %vm6149_vm13, %v3013_v57, %v3015_v46  ;;  %3050 = vrot.lane.b32.xlu0 %v2916_v39, %s4773_s10  ;;  %vm6160_vm13 = vmmov %vm6154_vm7 }
0x195c   : > { %v3135_v7 = vpop.permute.xlu1 %3134 }
0x195d   : > { %v3057_v61 = vpop.permute.xlu0 %3056  ;;  %3126 = vrot.lane.b32.xlu1 %v5804_v25, %s6136_s18  ;;  %v3259_v38 = vld [vmem:[#allocation3 + $0xb8] sm:$0xff] }
0x195e   : > { %v5847_v62 = vsel %vm6150_vm2, %v3055_v60, %v3057_v61  ;;  %3073 = vst.msk [vmem:[#allocation3 + $0xe8] sm:$0xff] %vm6151_vm12, %v3057_v61  ;;  %3090 = vrot.lane.b32.xlu0 %v2916_v39, %s4776_s13  ;;  %vm6161_vm2 = vmmov %vm6159_vm14  ;;  %vm6162_vm12 = vcmask 736256  }
0x1960   : > { %v3175_v16 = vpop.permute.xlu1 %3174 }
0x1961   : > { %v3053_v63 = vpop.permute.xlu0 %3052  ;;  %3166 = vrot.lane.b32.xlu1 %v5804_v25, %s6137_s19 }
0x1962   : > { %v5854_v0 = vsel %vm6152_vm9, %v3053_v63, %v3055_v60  ;;  %3130 = vrot.lane.b32.xlu0 %v2916_v39, %s6136_s18  ;;  %vm6163_vm9 = vmmov %vm6154_vm7 }
0x1963   : > { %3071 = vst [vmem:[#allocation3 + $0xd8] sm:$0xff] %v5854_v0 }
0x1964   : > { %v5901_v20 = vpop.permute.xlu1 %3214 }
0x1965   : > { %v3097_v2 = vpop.permute.xlu0 %3096  ;;  %2928 = vrot.lane.b32.xlu1 %v5798_v31, %s6134_s20  ;;  %v3265_v51 = vld [vmem:[#allocation3 + $0xe8] sm:$0xff] }
0x1966   : > { %v5861_v3 = vsel %vm6153_vm10, %v3095_v1, %v3097_v2  ;;  %3113 = vst.msk [vmem:[#allocation3 + $0x118] sm:$0xff] %vm6154_vm7, %v3097_v2  ;;  %3170 = vrot.lane.b32.xlu0 %v2916_v39, %s6137_s19  ;;  %vm6164_vm10 = vmmov %vm6154_vm7 }
0x1969   : > { %v3093_v5 = vpop.permute.xlu0 %3092  ;;  %2968 = vrot.lane.b32.xlu1 %v5798_v31, %s6135_s17 }
0x196a   : > { %v5868_v6 = vsel %vm6155_vm5, %v3093_v5, %v3095_v1  ;;  %3210 = vrot.lane.b32.xlu0 %v2916_v39, %s6138_s14  ;;  %vm6165_vm5 = vmmov %vm6154_vm7 }
0x196b   : > { %3111 = vst [vmem:[#allocation3 + $0x108] sm:$0xff] %v5868_v6 }
0x196d   : > { %v3137_v8 = vpop.permute.xlu0 %3136  ;;  %3008 = vrot.lane.b32.xlu1 %v5798_v31, %s4774_s11  ;;  %v3271_v1 = vld [vmem:[#allocation3 + $0x118] sm:$0xff] }
0x196e   : > { %v5875_v9 = vsel %vm6156_vm6, %v3135_v7, %v3137_v8  ;;  %3153 = vst.msk [vmem:[#allocation3 + $0x148] sm:$0xff] %vm6157_vm11, %v3137_v8  ;;  %3212 = vrot.lane.b32.xlu0 %v5766_v29, %s6138_s14  ;;  %vm6166_vm6 = vmmov %vm6165_vm5 }
0x196f   : > { %vm6167_vm11 = vmmov %vm6165_vm5 }
0x1971   : > { %v3133_v11 = vpop.permute.xlu0 %3132  ;;  %3048 = vrot.lane.b32.xlu1 %v5798_v31, %s4773_s10 }
0x1972   : > { %v5886_v42 = vsel %vm6158_vm8, %v3133_v11, %v3135_v7  ;;  %3300 = vrot.lane.b32.xlu0 %v3235_v10, %s4813_s9  ;;  %vm6168_vm8 = vmmov %vm6165_vm5 }
0x1973   : > { %3151 = vst [vmem:[#allocation3 + $0x138] sm:$0xff] %v5886_v42 }
0x1975   : > { %v3177_v17 = vpop.permute.xlu0 %3176  ;;  %3088 = vrot.lane.b32.xlu1 %v5798_v31, %s4776_s13 }
0x1976   : > { %v5892_v18 = vsel %vm6159_vm14, %v3175_v16, %v3177_v17  ;;  %3193 = vst.msk [vmem:[#allocation3 + $0x178] sm:$0xff] %vm6160_vm13, %v3177_v17  ;;  %vm6169_vm14 = vcmask 1039360  }
0x1977   : > { %vm6170_vm13 = vmmov %vm6169_vm14 }
0x1979   : > { %v3173_v19 = vpop.permute.xlu0 %3172  ;;  %3128 = vrot.lane.b32.xlu1 %v5798_v31, %s6136_s18 }
0x197a   : > { %v5898_v15 = vsel %vm6161_vm2, %v3173_v19, %v3175_v16  ;;  %vm6171_vm2 = vmmov %vm6165_vm5  ;;  %v3277_v19 = vld [vmem:[#allocation3 + $0x148] sm:$0xff] }
0x197b   : > { %3191 = vst [vmem:[#allocation3 + $0x168] sm:$0xff] %v5898_v15 }
0x197d   : > { %v3217_v21 = vpop.permute.xlu0 %3216  ;;  %3168 = vrot.lane.b32.xlu1 %v5798_v31, %s6137_s19 }
0x197e   : > { %v5907_v22 = vsel %vm6162_vm12, %v5901_v20, %v3217_v21  ;;  %3233 = vst.msk [vmem:[#allocation3 + $0x1a8] sm:$0xff] %vm6163_vm9, %v3217_v21  ;;  %vm6172_vm12 = vcmask 1031168  }
0x197f   : > { %vm6173_vm9 = vmmov %vm6172_vm12 }
0x1981   : > { %3208 = vrot.lane.b32.xlu1 %v5798_v31, %s6138_s14 }
0x1985   : > { %3206 = vrot.lane.b32.xlu1 %v5804_v25, %s6138_s14 }
0x1989   : > { %3298 = vrot.lane.b32.xlu1 %v5507_v45, %s4813_s9 }
0x198d   : > { %3293 = vperm.xlu1 %4758, %v5594_v28  }
0x19bb   : > { %v2927_v24 = vpop.permute.xlu1 %2926 }
0x19bf   : > { %v2967_v26 = vpop.permute.xlu1 %2966 }
0x19c0   : > { %v2931_v27 = vpop.permute.xlu0 %2930 }
0x19c1   : > { %2950 = vst.msk [vmem:[#allocation3 + $0x40] sm:$0xff] %vm6164_vm10, %v2931_v27  ;;  %vm6174_vm10 = vmmov %vm6171_vm2 }
0x19c3   : > { %v5917_v29 = vpop.permute.xlu1 %3006 }
0x19c4   : > { %v2971_v41 = vpop.permute.xlu0 %2970 }
0x19c5   : > { %2990 = vst.msk [vmem:[#allocation3 + $0x70] sm:$0xff] %vm6154_vm7, %v2971_v41  ;;  %vm6175_vm7 = vcmask 900096  }
0x19c7   : > { %v5920_v30 = vpop.permute.xlu1 %3046 }
0x19c8   : > { %v3011_v31 = vpop.permute.xlu0 %3010  ;;  %v3244_v13 = vld [vmem:[#allocation3 + $0x40] sm:$0xff] }
0x19c9   : > { %3030 = vst.msk [vmem:[#allocation3 + $0xa0] sm:$0xff] %vm6165_vm5, %v3011_v31  ;;  %v4633_v45 = vpack.c.bf16 %v3247_v12, %v3244_v13  ;;  %vm6176_vm5 = vmmov %vm6175_vm7  ;;  %v3283_v13 = vld [vmem:[#allocation3 + $0x178] sm:$0xff] }
0x19cb   : > { %4634 = vmatpush1.bf16.msra.mxu1 %v4633_v45  ;;  %v5923_v28 = vpop.permute.xlu1 %3086 }
0x19cc   : > { %v5925_v14 = vpop.permute.xlu0 %3050  ;;  %4635 = vmatprep.subr.bf16.mxu1 %v4780_v48  ;;  %v3250_v32 = vld [vmem:[#allocation3 + $0x70] sm:$0xff] }
0x19cd   : > { %3070 = vst.msk [vmem:[#allocation3 + $0xd0] sm:$0xff] %vm6166_vm6, %v5925_v14  ;;  %v4636_v25 = vpack.c.bf16 %v3253_v49, %v3250_v32  ;;  %vm6177_vm6 = vcmask 736256  }
0x19cf   : > { %4637 = vmatpush1.bf16.msra.mxu1 %v4636_v25  ;;  %v5930_v34 = vpop.permute.xlu1 %3126  ;;  %v3289_v25 = vld [vmem:[#allocation3 + $0x1a8] sm:$0xff] }
0x19d0   : > { %v5932_v35 = vpop.permute.xlu0 %3090  ;;  %4638 = vmatprep.subr.bf16.mxu1 %v4780_v48  ;;  %v3256_v37 = vld [vmem:[#allocation3 + $0xa0] sm:$0xff] }
0x19d1   : > { %3110 = vst.msk [vmem:[#allocation3 + $0x100] sm:$0xff] %vm6167_vm11, %v5932_v35  ;;  %v4639_v39 = vpack.c.bf16 %v3259_v38, %v3256_v37  ;;  %vm6178_vm11 = vcmask 891904  }
0x19d3   : > { %4640 = vmatpush1.bf16.msra.mxu1 %v4639_v39  ;;  %v5937_v43 = vpop.permute.xlu1 %3166 }
0x19d4   : > { %v5939_v46 = vpop.permute.xlu0 %3130  ;;  %4641 = vmatprep.subr.bf16.mxu1 %v4780_v48  ;;  %v3262_v50 = vld [vmem:[#allocation3 + $0xd0] sm:$0xff] }
0x19d5   : > { %3150 = vst.msk [vmem:[#allocation3 + $0x130] sm:$0xff] %vm6168_vm8, %v5939_v46  ;;  %v4642_v52 = vpack.c.bf16 %v3265_v51, %v3262_v50  ;;  %vm6179_vm8 = vmmov %vm6178_vm11 }
0x19d7   : > { %4643 = vmatpush1.bf16.msra.mxu1 %v4642_v52  ;;  %v2929_v54 = vpop.permute.xlu1 %2928 }
0x19d8   : > { %v2938_v57 = vsel %vm6169_vm14, %v2927_v24, %v2929_v54  ;;  %v2939_v60 = vsel %vm6170_vm13, %v2929_v54, %v2931_v27  ;;  %v5946_v61 = vpop.permute.xlu0 %3170  ;;  %4644 = vmatprep.subr.bf16.mxu1 %v4780_v48  ;;  %v3268_v63 = vld [vmem:[#allocation3 + $0x100] sm:$0xff]  ;;  %vm6180_vm14 = vcmask 883712  }
0x19d9   : > { %3190 = vst.msk [vmem:[#allocation3 + $0x160] sm:$0xff] %vm6171_vm2, %v5946_v61  ;;  %v4645_v2 = vpack.c.bf16 %v3271_v1, %v3268_v63  ;;  %v4597_v5 = vpack.c.bf16 %v5807_v33, %v2939_v60  ;;  %v4599_v7 = vpack.c.bf16 %v5814_v36, %v2938_v57  ;;  %vm6181_vm13 = vmmov %vm6180_vm14 }
0x19db   : > { %4646 = vmatpush1.bf16.msra.mxu1 %v4645_v2  ;;  %v2969_v8 = vpop.permute.xlu1 %2968  ;;  %4598 = vmatprep.subr.bf16.mxu0 %v4597_v5 }
0x19dc   : > { %v2978_v10 = vsel %vm6172_vm12, %v2967_v26, %v2969_v8  ;;  %v2979_v11 = vsel %vm6173_vm9, %v2969_v8, %v2971_v41  ;;  %v5955_v16 = vpop.permute.xlu0 %3210  ;;  %4647 = vmatprep.subr.bf16.mxu1 %v4780_v48  ;;  %v3274_v17 = vld [vmem:[#allocation3 + $0x130] sm:$0xff]  ;;  %4600 = vmatpush1.bf16.msra.mxu0 %v4599_v7  ;;  %vm6184_vm12 = vcmask 744448  }
0x19dd   : > { %3230 = vst.msk [vmem:[#allocation3 + $0x190] sm:$0xff] %vm6174_vm10, %v5955_v16  ;;  %v4648_v33 = vpack.c.bf16 %v3277_v19, %v3274_v17  ;;  %v4601_v36 = vpack.c.bf16 %v5819_v40, %v2979_v11  ;;  %v4603_v21 = vpack.c.bf16 %v5827_v44, %v2978_v10  ;;  %vm6185_vm9 = vmmov %vm6184_vm12 }
0x19de   : > { %vm6186_vm10 = vmmov %vm6177_vm6 }
0x19df   : > { %4649 = vmatpush1.bf16.msra.mxu1 %v4648_v33  ;;  %v3009_v23 = vpop.permute.xlu1 %3008  ;;  %4602 = vmatprep.subr.bf16.mxu0 %v4601_v36 }
0x19e0   : > { %v3018_v24 = vsel %vm6175_vm7, %v5917_v29, %v3009_v23  ;;  %v3019_v26 = vsel %vm6176_vm5, %v3009_v23, %v3011_v31  ;;  %v3213_v27 = vpop.permute.xlu0 %3212  ;;  %4650 = vmatprep.subr.bf16.mxu1 %v4780_v48  ;;  %v3280_v41 = vld [vmem:[#allocation3 + $0x160] sm:$0xff]  ;;  %4604 = vmatpush1.bf16.msra.mxu0 %v4603_v21  ;;  %vm6187_vm7 = vmmov %vm6177_vm6  ;;  %vm3302_vm5 = vcmask 228352  }
0x19e1   : > { %v3220_v12 = vsel %vm6177_vm6, %v3213_v27, %v5901_v20  ;;  %v4651_v40 = vpack.c.bf16 %v3283_v13, %v3280_v41  ;;  %v4605_v44 = vpack.c.bf16 %v5833_v53, %v3019_v26  ;;  %v4607_v45 = vpack.c.bf16 %v5841_v59, %v3018_v24 }
0x19e2   : > { %3231 = vst [vmem:[#allocation3 + $0x198] sm:$0xff] %v3220_v12 }
0x19e3   : > { %4652 = vmatpush1.bf16.msra.mxu1 %v4651_v40  ;;  %v3049_v32 = vpop.permute.xlu1 %3048  ;;  %4606 = vmatprep.subr.bf16.mxu0 %v4605_v44 }
0x19e4   : > { %v3058_v29 = vsel %vm6178_vm11, %v5920_v30, %v3049_v32  ;;  %v3059_v31 = vsel %vm6179_vm8, %v3049_v32, %v5925_v14  ;;  %4653 = vmatprep.subr.bf16.mxu1 %v4780_v48  ;;  %v3286_v49 = vld [vmem:[#allocation3 + $0x190] sm:$0xff]  ;;  %4608 = vmatpush1.bf16.msra.mxu0 %v4607_v45  ;;  %v3301_v20 = vpop.permute.xlu0 %3300  ;;  %v4815_v32 = vmov 69  }
0x19e5   : > { %v4654_v37 = vpack.c.bf16 %v3289_v25, %v3286_v49  ;;  %v4609_v53 = vpack.c.bf16 %v5847_v62, %v3059_v31  ;;  %v4611_v59 = vpack.c.bf16 %v5854_v0, %v3058_v29  ;;  %3953 = vmatprep.mubr.msk.f32.mxu1 %vm2390_vm15, %v3301_v20  ;;  %3952 = vmatprep.mubr.msk.f32.mxu0 %vm2390_vm15, %v3301_v20  ;;  %vm6182_vm15 = vcmask 752640   ;;  %v3655_v29 = vld [vmem:[%s6097_s1 + $0x28] sm:$0xf]  ;;  %v3656_v31 = vld [vmem:[%s6097_s1 + $0x30] sm:$0xf] }
0x19e6   : > { %vm6183_vm2 = vmmov %vm6182_vm15  ;;  %4759 = vset.pattern.permute.xlu1 %v4815_v32  ;;  %4760 = vset.pattern.permute.xlu0 %v4815_v32 }
0x19e7   : > { %4655 = vmatpush1.bf16.msra.mxu1 %v4654_v37  ;;  %v3089_v30 = vpop.permute.xlu1 %3088  ;;  %4610 = vmatprep.subr.bf16.mxu0 %v4609_v53 }
0x19e8   : > { %v3098_v14 = vsel %vm6180_vm14, %v5923_v28, %v3089_v30  ;;  %v3099_v38 = vsel %vm6181_vm13, %v3089_v30, %v5932_v35  ;;  %4612 = vmatpush1.bf16.msra.mxu0 %v4611_v59  ;;  %4672 = vmatprep.subr.bf16.mxu1 %v4780_v48  ;;  %vm6188_vm14 = vcmask 711680  }
0x19e9   : > { %3108 = vst [vmem:[#allocation3 + $0xf0] sm:$0xff] %v3098_v14  ;;  %v4613_v62 = vpack.c.bf16 %v5861_v3, %v3099_v38  ;;  %v4615_v0 = vpack.c.bf16 %v5868_v6, %v3098_v14 }
0x19eb   : > { %v3129_v39 = vpop.permute.xlu1 %3128  ;;  %4614 = vmatprep.subr.bf16.mxu0 %v4613_v62 }
0x19ec   : > { %v3138_v50 = vsel %vm6182_vm15, %v5930_v34, %v3129_v39  ;;  %v3139_v51 = vsel %vm6183_vm2, %v3129_v39, %v5939_v46  ;;  %4616 = vmatpush1.bf16.msra.mxu0 %v4615_v0 }
0x19ed   : > { %3148 = vst [vmem:[#allocation3 + $0x120] sm:$0xff] %v3138_v50  ;;  %v4617_v28 = vpack.c.bf16 %v5875_v9, %v3139_v51  ;;  %v4619_v35 = vpack.c.bf16 %v5886_v42, %v3138_v50 }
0x19ef   : > { %v3169_v52 = vpop.permute.xlu1 %3168  ;;  %4618 = vmatprep.subr.bf16.mxu0 %v4617_v28 }
0x19f0   : > { %v3178_v3 = vsel %vm6184_vm12, %v5937_v43, %v3169_v52  ;;  %v3179_v6 = vsel %vm6185_vm9, %v3169_v52, %v5946_v61  ;;  %4620 = vmatpush1.bf16.msra.mxu0 %v4619_v35  ;;  %vm6194_vm12 = vcmask 1031168  }
0x19f1   : > { %3188 = vst [vmem:[#allocation3 + $0x150] sm:$0xff] %v3178_v3  ;;  %v4621_v34 = vpack.c.bf16 %v5892_v18, %v3179_v6  ;;  %v4623_v46 = vpack.c.bf16 %v5898_v15, %v3178_v3  ;;  %v3451_v15 = vld [vmem:[%s6098_s2] sm:$0x7]  ;;  %vm6195_vm9 = vmmov %vm6194_vm12 }
0x19f2   : > { %vm3452_vm6 = vcmp.gt.f32.partialorder %v3451_v15, 0.0 }
0x19f3   : > { %v3209_v54 = vpop.permute.xlu1 %3208  ;;  %4622 = vmatprep.subr.bf16.mxu0 %v4621_v34 }
0x19f4   : > { %v3219_v9 = vsel %vm6186_vm10, %v3209_v54, %v5955_v16  ;;  %4624 = vmatpush1.bf16.msra.mxu0 %v4623_v46 }
0x19f5   : > { %v4625_v42 = vpack.c.bf16 %v5907_v22, %v3219_v9  ;;  %v3453_v22 = vsel %vm3452_vm6, 1, %v4783_v56 }
0x19f6   : > { %v3457_v1 = vrot.slane %v3453_v22, %v4958_v55  ;;  %v3461_v5 = vrot.slane %v3453_v22, %v4961_v58  ;;  %v3465_v19 = vrot.slane %v3453_v22, %v4965_v4 }
0x19f7   : > { %v3207_v57 = vpop.permute.xlu1 %3206  ;;  %4626 = vmatprep.subr.bf16.mxu0 %v4625_v42 }
0x19f8   : > { %v3218_v43 = vsel %vm6187_vm7, %v3207_v57, %v3209_v54  ;;  %vm3467_vm11 = vcmp.eq.s32.totalorder %v3461_v5, 1  ;;  %vm3468_vm8 = vcmp.eq.s32.totalorder %v3465_v19, 1  ;;  %vm6197_vm7 = vcmask 900096  }
0x19f9   : > { %3228 = vst [vmem:[#allocation3 + $0x180] sm:$0xff] %v3218_v43  ;;  %v4627_v60 = vpack.c.bf16 %v3220_v12, %v3218_v43 }
0x19fb   : > { %4628 = vmatpush1.bf16.msra.mxu0 %v4627_v60  ;;  %v3299_v61 = vpop.permute.xlu1 %3298 }
0x19fc   : > { %v3303_v18 = vsel %vm3302_vm5, %v3299_v61, %v3301_v20  ;;  %vm6198_vm5 = vmmov %vm6197_vm7 }
0x19fd   : > { %3443 = vmatmul.mubr.f32.vlgmr.msra.gmra.mrb[14].mxu1 %v3303_v18 }
0x19fe   : > { %3372 = vmatmul.mubr.f32.vlgmr.msra.gmra.mrb[18].mxu0 %v3303_v18  ;;  %4353 = vmatprep.mubr.msk.f32.mxu1 %vm4781_vm4, %v4779_v47  ;;  %vm3466_vm4 = vcmp.eq.s32.totalorder %v3457_v1, 1 }
0x19ff   : > { %3762 = vmatprep.mubr.f32.mxu0 %v4779_v47 }
0x1a0c   : > { %v3294_v63 = vpop.permute.xlu1 %3293 }
0x1ad0   : > { %v3444_v2 = vpop.f32.mrb[14].mxu1 }
0x1ad1   : > { %v3373_v7 = vpop.f32.mrb[18].mxu0  ;;  %v3446_v8 = vpop.f32.mrb[15].mxu1  ;;  %v3445_v11 = vadd.f32 %v3444_v2, %v3294_v63 }
0x1ad2   : > { %v3374_v10 = vadd.f32 %v3373_v7, %v3294_v63  ;;  %v3375_v16 = vpop.f32.mrb[19].mxu0 }
0x1ad3   : > { %v3376_v17 = vadd.f32 %v3375_v16, %v3294_v63  ;;  %v3450_v21 = vmax.f32 %v3445_v11, 0.0 }
0x1ad4   : > { %v3448_v33 = vmax.f32 %v3374_v10, 0.0 }
0x1ad5   : > { %v3449_v36 = vmax.f32 %v3376_v17, 0.0  ;;  %v3471_v26 = vsel %vm3468_vm8, %v3450_v21, 0.0 }
0x1ad6   : > { %v3469_v23 = vsel %vm3466_vm4, %v3448_v33, 0.0  ;;  %vm6200_vm4 = vcmask 891904  }
0x1ad7   : > { %v3470_v24 = vsel %vm3467_vm11, %v3449_v36, 0.0  ;;  %3475 = vrot.lane.b32.xlu0 %v3469_v23, %s4770_s30  ;;  %vm6201_vm11 = vmmov %vm6200_vm4 }
0x1ad8   : > { %3477 = vrot.lane.b32.xlu1 %v3470_v24, %s4770_s30 }
0x1adb   : > { %3479 = vrot.lane.b32.xlu0 %v3471_v26, %s4770_s30 }
0x1b49   : > { %v3476_v27 = vpop.permute.xlu0 %3475 }
0x1b4a   : > { %3486 = vst.msk [vmem:[#allocation2] sm:$0xff] %vm704_vm3, %v3476_v27  ;;  %v3478_v41 = vpop.permute.xlu1 %3477  ;;  %vm6189_vm3 = vcmask 556032  }
0x1b4b   : > { %v3481_v13 = vsel %vm290_vm1, %v3476_v27, %v3478_v41  ;;  %vm6192_vm15 = vmmov %vm6189_vm3 }
0x1b4c   : > { %3487 = vst [vmem:[#allocation2 + $0x8] sm:$0xff] %v3481_v13  ;;  %3493 = vst [vmem:[#allocation3 + $0x8] sm:$0xff] %v3481_v13 }
0x1b4d   : > { %v3480_v12 = vpop.permute.xlu0 %3479  ;;  %vm6193_vm2 = vmmov %vm6189_vm3 }
0x1b4e   : > { %v3482_v40 = vsel %vm290_vm1, %v3478_v41, %v3480_v12  ;;  %vm6190_vm1 = vcmask 1039360   ;;  %vm6196_vm10 = vmmov %vm6193_vm2 }
0x1b4f   : > { %3488 = vst.msk [vmem:[#allocation2 + $0x10] sm:$0xff] %vm6188_vm14, %v3482_v40  ;;  %vm6191_vm13 = vmmov %vm6190_vm1  ;;  %vm6203_vm14 = vcmask 883712  }
0x1b50   : > { %vm6199_vm6 = vmmov %vm6193_vm2 }
0x1b51   : > { %v3515_v44 = vld [vmem:[#allocation2] sm:$0xff]  ;;  %vm6202_vm8 = vmmov %vm6193_vm2 }
0x1b52   : > { %3521 = vrot.lane.b32.xlu0 %v3515_v44, %s6135_s17  ;;  %3501 = vrot.lane.b32.xlu1 %v3515_v44, %s6134_s20  ;;  %3492 = vst [vmem:[#allocation3] sm:$0xff] %v3515_v44 }
0x1b56   : > { %3561 = vrot.lane.b32.xlu0 %v3515_v44, %s4773_s10  ;;  %3541 = vrot.lane.b32.xlu1 %v3515_v44, %s4774_s11  ;;  %v3497_v45 = vld [vmem:[#allocation2 + $0x10] sm:$0xff] }
0x1b57   : > { %3494 = vst.msk [vmem:[#allocation3 + $0x10] sm:$0xff] %vm6189_vm3, %v3497_v45  ;;  %vm6204_vm3 = vmmov %vm6203_vm14 }
0x1b5a   : > { %3601 = vrot.lane.b32.xlu0 %v3515_v44, %s6136_s18  ;;  %3581 = vrot.lane.b32.xlu1 %v3515_v44, %s4776_s13 }
0x1b5e   : > { %3503 = vrot.lane.b32.xlu1 %v3481_v13, %s6134_s20  ;;  %3505 = vrot.lane.b32.xlu0 %v3497_v45, %s6134_s20  ;;  %v3659_v6 = vld [vmem:[#allocation3 + $0x10] sm:$0xff] }
0x1b62   : > { %3525 = vrot.lane.b32.xlu1 %v3497_v45, %s6135_s17  ;;  %3523 = vrot.lane.b32.xlu0 %v3481_v13, %s6135_s17 }
0x1b66   : > { %3545 = vrot.lane.b32.xlu1 %v3497_v45, %s4774_s11  ;;  %3543 = vrot.lane.b32.xlu0 %v3481_v13, %s4774_s11 }
0x1b6a   : > { %3565 = vrot.lane.b32.xlu1 %v3497_v45, %s4773_s10  ;;  %3563 = vrot.lane.b32.xlu0 %v3481_v13, %s4773_s10 }
0x1b6e   : > { %3585 = vrot.lane.b32.xlu1 %v3497_v45, %s4776_s13  ;;  %3583 = vrot.lane.b32.xlu0 %v3481_v13, %s4776_s13 }
0x1b72   : > { %3605 = vrot.lane.b32.xlu1 %v3497_v45, %s6136_s18  ;;  %3603 = vrot.lane.b32.xlu0 %v3481_v13, %s6136_s18 }
0x1b76   : > { %3625 = vrot.lane.b32.xlu1 %v3497_v45, %s6137_s19  ;;  %3623 = vrot.lane.b32.xlu0 %v3481_v13, %s6137_s19 }
0x1b7a   : > { %3621 = vrot.lane.b32.xlu1 %v3515_v44, %s6137_s19  ;;  %3643 = vrot.lane.b32.xlu0 %v3481_v13, %s6138_s14 }
0x1b7e   : > { %3645 = vrot.lane.b32.xlu1 %v3497_v45, %s6138_s14  ;;  %3641 = vrot.lane.b32.xlu0 %v3515_v44, %s6138_s14 }
0x1b82   : > { %3690 = vrot.lane.b32.xlu1 %v3655_v29, %s4816_s23  ;;  %3692 = vrot.lane.b32.xlu0 %v3656_v31, %s4816_s23 }
0x1b86   : > { %3686 = vperm.xlu1 %4759, %v3656_v31  }
0x1bc4   : > { %v3502_v49 = vpop.permute.xlu1 %3501  ;;  %v3522_v25 = vpop.permute.xlu0 %3521 }
0x1bc8   : > { %v3542_v20 = vpop.permute.xlu1 %3541  ;;  %v3562_v37 = vpop.permute.xlu0 %3561 }
0x1bcc   : > { %v3582_v53 = vpop.permute.xlu1 %3581  ;;  %v3602_v59 = vpop.permute.xlu0 %3601 }
0x1bd0   : > { %v3504_v30 = vpop.permute.xlu1 %3503  ;;  %v3506_v14 = vpop.permute.xlu0 %3505 }
0x1bd1   : > { %v3507_v38 = vsel %vm6190_vm1, %v3502_v49, %v3504_v30  ;;  %v3508_v62 = vsel %vm6191_vm13, %v3504_v30, %v3506_v14  ;;  %3514 = vst.msk [vmem:[#allocation3 + $0x28] sm:$0xff] %vm6192_vm15, %v3506_v14  ;;  %vm6205_vm1 = vmmov %vm6193_vm2  ;;  %vm6206_vm13 = vcmask 752640  }
0x1bd2   : > { %3512 = vst [vmem:[#allocation3 + $0x18] sm:$0xff] %v3507_v38  ;;  %3513 = vst [vmem:[#allocation3 + $0x20] sm:$0xff] %v3508_v62  ;;  %v4656_v0 = vpack.c.bf16 %v3508_v62, %v3481_v13  ;;  %v4658_v39 = vpack.c.bf16 %v3507_v38, %v3515_v44 }
0x1bd3   : > { %vm6207_vm15 = vmmov %vm6206_vm13 }
0x1bd4   : > { %v3526_v50 = vpop.permute.xlu1 %3525  ;;  %v3524_v51 = vpop.permute.xlu0 %3523  ;;  %4657 = vmatprep.subr.bf16.mxu0 %v4656_v0 }
0x1bd5   : > { %3534 = vst.msk [vmem:[#allocation3 + $0x40] sm:$0xff] %vm6193_vm2, %v3526_v50  ;;  %v3527_v28 = vsel %vm6194_vm12, %v3522_v25, %v3524_v51  ;;  %v3528_v35 = vsel %vm6195_vm9, %v3524_v51, %v3526_v50  ;;  %4659 = vmatpush1.bf16.msra.mxu0 %v4658_v39  ;;  %vm6208_vm2 = vmmov %vm6205_vm1  ;;  %vm6209_vm12 = vcmask 744448  }
0x1bd6   : > { %3532 = vst [vmem:[#allocation3 + $0x30] sm:$0xff] %v3527_v28  ;;  %3533 = vst [vmem:[#allocation3 + $0x38] sm:$0xff] %v3528_v35 }
0x1bd7   : > { %vm6210_vm9 = vmmov %vm6209_vm12 }
0x1bd8   : > { %v3546_v52 = vpop.permute.xlu1 %3545  ;;  %v3544_v3 = vpop.permute.xlu0 %3543  ;;  %v3662_v34 = vld [vmem:[#allocation3 + $0x28] sm:$0xff] }
0x1bd9   : > { %3554 = vst.msk [vmem:[#allocation3 + $0x58] sm:$0xff] %vm6196_vm10, %v3546_v52  ;;  %v3547_v46 = vsel %vm6197_vm7, %v3542_v20, %v3544_v3  ;;  %v3548_v54 = vsel %vm6198_vm5, %v3544_v3, %v3546_v52  ;;  %v4673_v9 = vpack.c.bf16 %v3662_v34, %v3659_v6  ;;  %vm6211_vm10 = vcmask 736256   ;;  %vm6212_vm7 = vmmov %vm6205_vm1 }
0x1bda   : > { %3552 = vst [vmem:[#allocation3 + $0x48] sm:$0xff] %v3547_v46  ;;  %3553 = vst [vmem:[#allocation3 + $0x50] sm:$0xff] %v3548_v54  ;;  %v4660_v42 = vpack.c.bf16 %v3548_v54, %v3528_v35  ;;  %v4662_v57 = vpack.c.bf16 %v3547_v46, %v3527_v28 }
0x1bdb   : > { %4674 = vmatpush3.bf16.msra.mxu1 %v4673_v9  ;;  %vm6213_vm5 = vmmov %vm6211_vm10 }
0x1bdc   : > { %v3566_v43 = vpop.permute.xlu1 %3565  ;;  %v3564_v60 = vpop.permute.xlu0 %3563  ;;  %4675 = vmatprep.subr.bf16.mxu1 %v4780_v48  ;;  %4661 = vmatprep.subr.bf16.mxu0 %v4660_v42  ;;  %v3665_v63 = vld [vmem:[#allocation3 + $0x40] sm:$0xff] }
0x1bdd   : > { %3574 = vst.msk [vmem:[#allocation3 + $0x70] sm:$0xff] %vm6199_vm6, %v3566_v43  ;;  %v3567_v61 = vsel %vm6200_vm4, %v3562_v37, %v3564_v60  ;;  %v3568_v18 = vsel %vm6201_vm11, %v3564_v60, %v3566_v43  ;;  %4663 = vmatpush1.bf16.msra.mxu0 %v4662_v57  ;;  %vm3694_vm6 = vcmask 97280  }
0x1bde   : > { %3572 = vst [vmem:[#allocation3 + $0x60] sm:$0xff] %v3567_v61  ;;  %3573 = vst [vmem:[#allocation3 + $0x68] sm:$0xff] %v3568_v18 }
0x1be0   : > { %v3586_v15 = vpop.permute.xlu1 %3585  ;;  %v3584_v22 = vpop.permute.xlu0 %3583  ;;  %v3668_v1 = vld [vmem:[#allocation3 + $0x58] sm:$0xff] }
0x1be1   : > { %3594 = vst.msk [vmem:[#allocation3 + $0x88] sm:$0xff] %vm6202_vm8, %v3586_v15  ;;  %v3587_v2 = vsel %vm6203_vm14, %v3582_v53, %v3584_v22  ;;  %v3588_v5 = vsel %vm6204_vm3, %v3584_v22, %v3586_v15  ;;  %v4676_v7 = vpack.c.bf16 %v3668_v1, %v3665_v63  ;;  %vm6215_vm14 = vcmask 551936  }
0x1be2   : > { %3592 = vst [vmem:[#allocation3 + $0x78] sm:$0xff] %v3587_v2  ;;  %v4664_v8 = vpack.c.bf16 %v3588_v5, %v3568_v18  ;;  %v4666_v10 = vpack.c.bf16 %v3587_v2, %v3567_v61 }
0x1be3   : > { %4677 = vmatpush3.bf16.msra.mxu1 %v4676_v7 }
0x1be4   : > { %v3606_v11 = vpop.permute.xlu1 %3605  ;;  %v3604_v16 = vpop.permute.xlu0 %3603  ;;  %4678 = vmatprep.subr.bf16.mxu1 %v4780_v48  ;;  %4665 = vmatprep.subr.bf16.mxu0 %v4664_v8  ;;  %v3671_v21 = vld [vmem:[#allocation3 + $0x70] sm:$0xff] }
0x1be5   : > { %3614 = vst.msk [vmem:[#allocation3 + $0xa0] sm:$0xff] %vm6205_vm1, %v3606_v11  ;;  %v3607_v17 = vsel %vm6206_vm13, %v3602_v59, %v3604_v16  ;;  %v3608_v19 = vsel %vm6207_vm15, %v3604_v16, %v3606_v11  ;;  %4667 = vmatpush1.bf16.msra.mxu0 %v4666_v10  ;;  %v3839_v59 = vld [vmem:[%s6098_s2] sm:$0x7] }
0x1be6   : > { %3612 = vst [vmem:[#allocation3 + $0x90] sm:$0xff] %v3607_v17  ;;  %vm3840_vm4 = vcmp.gt.f32.partialorder %v3839_v59, 0.0 }
0x1be7   : > { %v3841_v30 = vsel %vm3840_vm4, 1, %v4783_v56 }
0x1be8   : > { %v3626_v33 = vpop.permute.xlu1 %3625  ;;  %v3624_v36 = vpop.permute.xlu0 %3623  ;;  %v3674_v23 = vld [vmem:[#allocation3 + $0x88] sm:$0xff]  ;;  %v3849_v14 = vrot.slane %v3841_v30, %v4961_v58  ;;  %v3853_v62 = vrot.slane %v3841_v30, %v4965_v4 }
0x1be9   : > { %3634 = vst.msk [vmem:[#allocation3 + $0xb8] sm:$0xff] %vm6208_vm2, %v3626_v33  ;;  %v3628_v24 = vsel %vm6209_vm12, %v3624_v36, %v3626_v33  ;;  %v4679_v26 = vpack.c.bf16 %v3674_v23, %v3671_v21 }
0x1bea   : > { %v4668_v27 = vpack.c.bf16 %v3628_v24, %v3608_v19  ;;  %vm3855_vm8 = vcmp.eq.s32.totalorder %v3849_v14, 1 }
0x1beb   : > { %4680 = vmatpush3.bf16.msra.mxu1 %v4679_v26 }
0x1bec   : > { %v3622_v41 = vpop.permute.xlu1 %3621  ;;  %v3644_v13 = vpop.permute.xlu0 %3643  ;;  %4681 = vmatprep.subr.bf16.mxu1 %v4780_v48  ;;  %4669 = vmatprep.subr.bf16.mxu0 %v4668_v27  ;;  %v3677_v32 = vld [vmem:[#allocation3 + $0xa0] sm:$0xff] }
0x1bed   : > { %v3627_v12 = vsel %vm6210_vm9, %v3622_v41, %v3624_v36 }
0x1bee   : > { %3632 = vst [vmem:[#allocation3 + $0xa8] sm:$0xff] %v3627_v12  ;;  %v4670_v40 = vpack.c.bf16 %v3627_v12, %v3607_v17 }
0x1bf0   : > { %v3646_v44 = vpop.permute.xlu1 %3645  ;;  %v3642_v45 = vpop.permute.xlu0 %3641  ;;  %v3680_v29 = vld [vmem:[#allocation3 + $0xb8] sm:$0xff]  ;;  %4671 = vmatpush1.bf16.msra.mxu0 %v4670_v40 }
0x1bf1   : > { %v3648_v31 = vsel %vm6211_vm10, %v3644_v13, %v3646_v44  ;;  %3654 = vst.msk [vmem:[#allocation3 + $0xd0] sm:$0xff] %vm6212_vm7, %v3646_v44  ;;  %v3647_v49 = vsel %vm6213_vm5, %v3642_v45, %v3644_v13  ;;  %v4682_v25 = vpack.c.bf16 %v3680_v29, %v3677_v32 }
0x1bf2   : > { %3652 = vst [vmem:[#allocation3 + $0xc0] sm:$0xff] %v3647_v49  ;;  %3714 = vmatprep.subr.mxu0 %v3648_v31 }
0x1bf3   : > { %4683 = vmatpush3.bf16.msra.mxu1 %v4682_v25 }
0x1bf4   : > { %4351 = vmatprep.subr.mxu1 %v4779_v47  ;;  %v3691_v48 = vpop.permute.xlu1 %3690  ;;  %v3693_v20 = vpop.permute.xlu0 %3692  ;;  %3715 = vmatpush1.msra.mxu0 %v3647_v49  ;;  %v3845_v47 = vrot.slane %v3841_v30, %v4958_v55 }
0x1bf5   : > { %v3695_v37 = vsel %vm3694_vm6, %v3691_v48, %v3693_v20 }
0x1bf6   : > { %3954 = vmatmul.mubr.msk.f32.vlgmr.msra.gmra.mrb[20].mxu0 %vm913_vm0, %v3695_v37  ;;  %vm3854_vm11 = vcmp.eq.s32.totalorder %v3845_v47, 1 }
0x1bf8   : > { %v3683_v53 = vld [vmem:[#allocation3 + $0xd0] sm:$0xff] }
0x1bf9   : > { %4352 = vmatpush3.msra.mxu1 %v3683_v53 }
0x1bfa   : > { %4354 = vmatmul.mubr.msk.f32.vlgmr.msra.gmra.mrb[16].mxu1 %vm913_vm0, %v3695_v37  ;;  %vm3856_vm0 = vcmp.eq.s32.totalorder %v3853_v62, 1 }
0x1c05   : > { %v3687_v38 = vpop.permute.xlu1 %3686 }
0x1cc9   : > { %v3764_v0 = vpop.f32.mrb[20].mxu0 }
0x1cca   : > { %v3765_v39 = vadd.f32 %v3764_v0, %v3687_v38  ;;  %v3766_v50 = vpop.f32.mrb[21].mxu0 }
0x1ccb   : > { %v3767_v51 = vadd.f32 %v3766_v50, %v3687_v38 }
0x1ccc   : > { %v3857_v28 = vsel %vm3854_vm11, %v3765_v39, 0.0 }
0x1ccd   : > { %v3835_v56 = vpop.f32.mrb[16].mxu1  ;;  %v3858_v55 = vsel %vm3855_vm8, %v3767_v51, 0.0 }
0x1cce   : > { %v3836_v35 = vadd.f32 %v3835_v56, %v3687_v38  ;;  %v4355_v58 = vpop.f32.mrb[17].mxu1  ;;  %v3862_v52 = vcombine.low %v3857_v28, %v3858_v55 }
0x1cd0   : > { %v3859_v3 = vsel %vm3856_vm0, %v3836_v35, 0.0  ;;  %3864 = vst [vmem:[%s278_s15] sm:$0xff] %v3862_v52 }
0x1cd1   : > { %3865 = vst.msk [vmem:[%s278_s15 + $0x8] sm:$0xf] %vm6215_vm14, %v3859_v3 }
0x1cd2 PF: > { %s17_s24 = sadd.s32 1, %s4768_s24  }
0x1cd3   : > { %p14_p4 = scmp.ge.s32.totalorder %s17_s24, 4  }
0x1cd5   :  { %16 = sbr.rel (!%p14_p4) target bundleno = 1 (0x1), region = 78 }

</bundles_post_ra>
